<compile_context>
chip_gen: v7x
topology: tpu7x:2x2x1
jax: 0.10.0
libtpu: 0.0.40
codegen_flags: <defaults>
</compile_context>

<pallas_src>
import functools
import random

import jax
import jax.numpy as jnp
from jax.experimental import pallas as pl
from jax.experimental.pallas import tpu as pltpu


LANE = 128
NEG_INF = -1e30


def _round_up(x, m):
    return ((x + m - 1) // m) * m


def _const_spec(arr):
    """Full-array block with a constant index map (resident across the grid)."""
    zeros = (0,) * arr.ndim
    return pl.BlockSpec(arr.shape, lambda *_: zeros)


# ----------------------------- encoder kernel -----------------------------

def _encoder_kernel(emb_f_ref, emb_b_ref,
                    wih_f_ref, whh_f_ref, b_f_ref,
                    wih_b_ref, whh_b_ref, b_b_ref,
                    fch_w_ref, fch_b_ref, fcc_w_ref, fcc_b_ref,
                    fwd_out_ref, bwd_out_ref, h_out_ref, c_out_ref,
                    hf_scr, cf_scr, hb_scr, cb_scr):
    t = pl.program_id(0)
    S = pl.num_programs(0)
    Hp = hf_scr.shape[-1]

    @pl.when(t == 0)
    def _init():
        hf_scr[...] = jnp.zeros_like(hf_scr)
        cf_scr[...] = jnp.zeros_like(cf_scr)
        hb_scr[...] = jnp.zeros_like(hb_scr)
        cb_scr[...] = jnp.zeros_like(cb_scr)

    def lstm_cell(x, h, c, wih, whh, b):
        gates = (jnp.dot(x, wih, preferred_element_type=jnp.float32)
                 + jnp.dot(h, whh, preferred_element_type=jnp.float32)
                 + b)
        # gate columns are padded to lane-aligned Hp blocks (i, f, g, o)
        i = jax.nn.sigmoid(gates[:, 0 * Hp:1 * Hp])
        f = jax.nn.sigmoid(gates[:, 1 * Hp:2 * Hp])
        g = jnp.tanh(gates[:, 2 * Hp:3 * Hp])
        o = jax.nn.sigmoid(gates[:, 3 * Hp:4 * Hp])
        c_new = f * c + i * g
        h_new = o * jnp.tanh(c_new)
        return h_new, c_new

    hf, cf = lstm_cell(emb_f_ref[0], hf_scr[...], cf_scr[...],
                       wih_f_ref[...], whh_f_ref[...], b_f_ref[...])
    hb, cb = lstm_cell(emb_b_ref[0], hb_scr[...], cb_scr[...],
                       wih_b_ref[...], whh_b_ref[...], b_b_ref[...])
    hf_scr[...] = hf
    cf_scr[...] = cf
    hb_scr[...] = hb
    cb_scr[...] = cb
    fwd_out_ref[...] = hf[None, :, :]
    bwd_out_ref[...] = hb[None, :, :]   # lands at source position S-1-t

    @pl.when(t == S - 1)
    def _final():
        hcat = jnp.concatenate([hf, hb], axis=-1)
        ccat = jnp.concatenate([cf, cb], axis=-1)
        h_out_ref[...] = (jnp.dot(hcat, fch_w_ref[...],
                                  preferred_element_type=jnp.float32)
                          + fch_b_ref[...])
        c_out_ref[...] = (jnp.dot(ccat, fcc_w_ref[...],
                                  preferred_element_type=jnp.float32)
                          + fcc_b_ref[...])


def encoder_forward(source, p):
    S, B = source.shape
    Hp = p["enc_whh_f"].shape[0]
    Ep = p["emb_enc"].shape[1]

    # embedding gather stays in plain JAX glue
    emb = jnp.take(p["emb_enc"], source, axis=0)          # (S, B, Ep)

    weights = [p["enc_wih_f"], p["enc_whh_f"], p["enc_b_f"],
               p["enc_wih_b"], p["enc_whh_b"], p["enc_b_b"],
               p["fc_h_w"], p["fc_h_b"], p["fc_c_w"], p["fc_c_b"]]

    grid_spec = pltpu.PrefetchScalarGridSpec(
        num_scalar_prefetch=0,
        grid=(S,),
        in_specs=[
            pl.BlockSpec((1, B, Ep), lambda t: (t, 0, 0)),          # fwd input
            pl.BlockSpec((1, B, Ep), lambda t: (S - 1 - t, 0, 0)),  # bwd input
        ] + [_const_spec(w) for w in weights],
        out_specs=[
            pl.BlockSpec((1, B, Hp), lambda t: (t, 0, 0)),
            pl.BlockSpec((1, B, Hp), lambda t: (S - 1 - t, 0, 0)),
            pl.BlockSpec((B, Hp), lambda t: (0, 0)),
            pl.BlockSpec((B, Hp), lambda t: (0, 0)),
        ],
        scratch_shapes=[
            pltpu.VMEM((B, Hp), jnp.float32),
            pltpu.VMEM((B, Hp), jnp.float32),
            pltpu.VMEM((B, Hp), jnp.float32),
            pltpu.VMEM((B, Hp), jnp.float32),
        ],
    )

    fwd_states, bwd_states, hidden, cell = pl.pallas_call(
        _encoder_kernel,
        grid_spec=grid_spec,
        out_shape=(
            jax.ShapeDtypeStruct((S, B, Hp), jnp.float32),
            jax.ShapeDtypeStruct((S, B, Hp), jnp.float32),
            jax.ShapeDtypeStruct((B, Hp), jnp.float32),
            jax.ShapeDtypeStruct((B, Hp), jnp.float32),
        ),
        compiler_params=pltpu.CompilerParams(
            dimension_semantics=("arbitrary",)),
    )(emb, emb, *weights)

    enc_states = jnp.concatenate([fwd_states, bwd_states], axis=-1)  # (S,B,2Hp)
    enc_bsd = jnp.transpose(enc_states, (1, 0, 2))                   # (B,S,2Hp)
    return enc_bsd, hidden, cell


# ----------------------------- decoder kernel -----------------------------

def _decoder_kernel(tf_ref,                                  # scalar prefetch (SMEM)
                    h0_ref, c0_ref, enc_ref,
                    tgt_emb0_ref, tgt_embn_ref, emb_dec_ref,
                    weh_ref, wee_ref, be_ref,
                    dec_wih_ref, dec_whh_ref, dec_b_ref,
                    fco_w_ref, fco_b_ref,
                    out_ref,
                    h_scr, c_scr, emb_scr, eenc_scr):
    t = pl.program_id(0)
    B, Hp = h_scr.shape
    Vp = fco_b_ref.shape[-1]

    @pl.when(t == 0)
    def _init():
        h_scr[...] = h0_ref[...]
        c_scr[...] = c0_ref[...]
        # initial decoder input embedding = emb(target[0])
        emb_scr[...] = tgt_emb0_ref[0]
        # source-only part of the attention energy (+bias), constant per seq
        eenc_scr[...] = (jnp.sum(enc_ref[...] * wee_ref[...][None, :, :], axis=-1)
                         + be_ref[...])

    h = h_scr[...]
    c = c_scr[...]
    emb = emb_scr[...]                                          # (B, Ep)

    # --- attention: lane-dense (B, S) energies, softmax over lanes ---
    e_h = jnp.sum(h * weh_ref[...], axis=-1, keepdims=True)    # (B, 1)
    e = jnp.maximum(eenc_scr[...] + e_h, 0.0)                  # relu energy (B, S)
    e = e - jnp.max(e, axis=-1, keepdims=True)
    pexp = jnp.exp(e)
    attn = pexp / jnp.sum(pexp, axis=-1, keepdims=True)        # (B, S)
    ctx = jnp.sum(attn[:, :, None] * enc_ref[...], axis=1)     # (B, 2Hp)

    # --- LSTM cell ---
    rnn_in = jnp.concatenate([ctx, emb], axis=-1)              # (B, 2Hp+Ep)
    gates = (jnp.dot(rnn_in, dec_wih_ref[...], preferred_element_type=jnp.float32)
             + jnp.dot(h, dec_whh_ref[...], preferred_element_type=jnp.float32)
             + dec_b_ref[...])
    i = jax.nn.sigmoid(gates[:, 0 * Hp:1 * Hp])
    f = jax.nn.sigmoid(gates[:, 1 * Hp:2 * Hp])
    g = jnp.tanh(gates[:, 2 * Hp:3 * Hp])
    o = jax.nn.sigmoid(gates[:, 3 * Hp:4 * Hp])
    c_new = f * c + i * g
    h_new = o * jnp.tanh(c_new)
    h_scr[...] = h_new
    c_scr[...] = c_new

    # --- output projection (lane-padded vocab -> unmasked stores) ---
    logits = (jnp.dot(h_new, fco_w_ref[...], preferred_element_type=jnp.float32)
              + fco_b_ref[...])                                # (B, Vp)
    out_ref[...] = logits[None, :, :]

    # --- next input embedding: teacher forcing vs greedy ---
    idx = jax.lax.broadcasted_iota(jnp.int32, (B, Vp), 1)
    m = jnp.max(logits, axis=-1, keepdims=True)
    first_argmax = jnp.min(jnp.where(logits == m, idx, Vp),
                           axis=-1, keepdims=True)             # (B, 1)
    oh_best = (idx == first_argmax).astype(jnp.float32)        # (B, Vp)
    greedy_emb = jnp.dot(oh_best, emb_dec_ref[...],
                         preferred_element_type=jnp.float32)   # (B, Ep)
    teacher_emb = tgt_embn_ref[0]                              # emb(target[t+1])
    use_tf = (tf_ref[t] > 0).astype(jnp.float32)
    emb_scr[...] = use_tf * teacher_emb + (1.0 - use_tf) * greedy_emb


def decoder_forward(target, tf_dec, enc_bsd, hidden, cell, p):
    T, B = target.shape
    Hp = hidden.shape[-1]
    S = enc_bsd.shape[1]
    Ep = p["emb_dec"].shape[-1]
    Vp = p["fc_out_w"].shape[-1]

    # pre-gathered target embeddings (plain JAX glue): (T, B, Ep)
    tgt_emb = jnp.take(p["emb_dec"], target, axis=0)

    const_a = [hidden, cell, enc_bsd]
    const_b = [p["emb_dec"],
               p["energy_wh"], p["energy_we"], p["energy_b"],
               p["dec_wih"], p["dec_whh"], p["dec_b"],
               p["fc_out_w"], p["fc_out_b"]]

    grid_spec = pltpu.PrefetchScalarGridSpec(
        num_scalar_prefetch=1,                 # teacher-forcing mask (SMEM)
        grid=(T - 1,),
        in_specs=(
            [_const_spec(a) for a in const_a]
            + [pl.BlockSpec((1, B, Ep), lambda t, tf: (0, 0, 0)),       # emb(target[0])
               pl.BlockSpec((1, B, Ep), lambda t, tf: (t + 1, 0, 0))]   # emb(target[t+1])
            + [_const_spec(a) for a in const_b]),
        out_specs=pl.BlockSpec((1, B, Vp), lambda t, *_: (t, 0, 0)),
        scratch_shapes=[
            pltpu.VMEM((B, Hp), jnp.float32),   # hidden
            pltpu.VMEM((B, Hp), jnp.float32),   # cell
            pltpu.VMEM((B, Ep), jnp.float32),   # next input embedding
            pltpu.VMEM((B, S), jnp.float32),    # enc part of attention energy
        ],
    )

    logits = pl.pallas_call(
        _decoder_kernel,
        grid_spec=grid_spec,
        out_shape=jax.ShapeDtypeStruct((T - 1, B, Vp), jnp.float32),
        compiler_params=pltpu.CompilerParams(
            dimension_semantics=("arbitrary",)),
    )(tf_dec, *const_a, tgt_emb, tgt_emb, *const_b)
    return logits


# ----------------------------- model (glue) -----------------------------

def seq2seq_forward(source, target, params, target_vocab_size,
                    teacher_force_ratio=0.5, seed=0):
    # Trace-time RNG (like random.random() in the reference), deterministic.
    # TODO(synk): per-call stochastic teacher forcing would need a runtime key.
    rng = random.Random(seed)
    T, B = target.shape
    tf_dec = jnp.asarray(
        [1 if rng.random() < teacher_force_ratio else 0 for _ in range(1, T)],
        dtype=jnp.int32)

    enc_bsd, hidden, cell = encoder_forward(source, params)
    dec_logits = decoder_forward(target, tf_dec, enc_bsd, hidden, cell, params)

    Vp = dec_logits.shape[-1]
    outputs = jnp.concatenate(
        [jnp.zeros((1, B, Vp), jnp.float32), dec_logits], axis=0)  # outputs[0]=0
    return outputs[:, :, :target_vocab_size]                       # (T, B, V)


# ----------------------------- params -----------------------------

def init_params(key, src_vocab, tgt_vocab, emb, H):
    ks = iter(jax.random.split(key, 24))

    def w(shape, scale=0.1):
        return jax.random.normal(next(ks), shape, jnp.float32) * scale

    return {
        # encoder
        "emb_enc":   w((src_vocab, emb)),
        "enc_wih_f": w((emb, 4 * H)),
        "enc_whh_f": w((H, 4 * H)),
        "enc_b_f":   w((4 * H,)),
        "enc_wih_b": w((emb, 4 * H)),
        "enc_whh_b": w((H, 4 * H)),
        "enc_b_b":   w((4 * H,)),
        "fc_h_w":    w((2 * H, H)),
        "fc_h_b":    w((H,)),
        "fc_c_w":    w((2 * H, H)),
        "fc_c_b":    w((H,)),
        # decoder
        "emb_dec":   w((tgt_vocab, emb)),
        "energy_w":  w((3 * H, 1)),
        "energy_b":  w((1,)),
        "dec_wih":   w((2 * H + emb, 4 * H)),
        "dec_whh":   w((H, 4 * H)),
        "dec_b":     w((4 * H,)),
        "fc_out_w":  w((H, tgt_vocab)),
        "fc_out_b":  w((tgt_vocab,)),
    }


def prepare_params(p, emb, H, lane=LANE):
    """Zero-pad all params to lane-aligned kernel layouts (semantics preserved)."""
    Hp = _round_up(H, lane)
    Ep = _round_up(emb, lane)
    tgt_vocab = p["emb_dec"].shape[0]
    Vp = _round_up(tgt_vocab, lane)

    def pad2(x, rows, cols):
        return jnp.pad(x, ((0, rows - x.shape[0]), (0, cols - x.shape[1])))

    def pad1(x, n, value=0.0):
        return jnp.pad(x, (0, n - x.shape[0]), constant_values=value)

    def pad_gate_cols(w):                      # (K, 4H) -> (K, 4Hp)
        return jnp.concatenate(
            [pad2(w[:, g * H:(g + 1) * H], w.shape[0], Hp) for g in range(4)],
            axis=1)

    def pad_gate_bias(b):                      # (4H,) -> (1, 4Hp)
        return jnp.concatenate(
            [pad1(b[g * H:(g + 1) * H], Hp) for g in range(4)]).reshape(1, -1)

    def pad_2h_rows(w):                        # rows [fwd(H); bwd(H)] -> 2Hp rows
        return jnp.concatenate(
            [pad2(w[:H], Hp, w.shape[1]), pad2(w[H:2 * H], Hp, w.shape[1])],
            axis=0)

    # decoder input-weight rows: [ctx fwd(H); ctx bwd(H); emb(E)]
    dw = p["dec_wih"]
    dec_wih_rows = jnp.concatenate(
        [pad2(dw[:H], Hp, dw.shape[1]),
         pad2(dw[H:2 * H], Hp, dw.shape[1]),
         pad2(dw[2 * H:], Ep, dw.shape[1])], axis=0)       # (2Hp+Ep, 4H)

    ew = p["energy_w"][:, 0]
    return {
        # encoder
        "emb_enc":   pad2(p["emb_enc"], p["emb_enc"].shape[0], Ep),
        "enc_wih_f": pad_gate_cols(pad2(p["enc_wih_f"], Ep, 4 * H)),
        "enc_whh_f": pad_gate_cols(pad2(p["enc_whh_f"], Hp, 4 * H)),
        "enc_b_f":   pad_gate_bias(p["enc_b_f"]),
        "enc_wih_b": pad_gate_cols(pad2(p["enc_wih_b"], Ep, 4 * H)),
        "enc_whh_b": pad_gate_cols(pad2(p["enc_whh_b"], Hp, 4 * H)),
        "enc_b_b":   pad_gate_bias(p["enc_b_b"]),
        "fc_h_w":    pad2(pad_2h_rows(p["fc_h_w"]), 2 * Hp, Hp),
        "fc_h_b":    pad1(p["fc_h_b"], Hp).reshape(1, -1),
        "fc_c_w":    pad2(pad_2h_rows(p["fc_c_w"]), 2 * Hp, Hp),
        "fc_c_b":    pad1(p["fc_c_b"], Hp).reshape(1, -1),
        # decoder
        "emb_dec":   pad2(p["emb_dec"], Vp, Ep),
        "energy_wh": pad1(ew[:H], Hp).reshape(1, -1),                      # (1, Hp)
        "energy_we": jnp.concatenate(
            [pad1(ew[H:2 * H], Hp), pad1(ew[2 * H:3 * H], Hp)]).reshape(1, -1),
        "energy_b":  p["energy_b"].reshape(1, 1),
        "dec_wih":   pad_gate_cols(dec_wih_rows),
        "dec_whh":   pad_gate_cols(pad2(p["dec_whh"], Hp, 4 * H)),
        "dec_b":     pad_gate_bias(p["dec_b"]),
        "fc_out_w":  pad2(p["fc_out_w"], Hp, Vp),
        "fc_out_b":  pad1(p["fc_out_b"], Vp, value=NEG_INF).reshape(1, -1),
    }


# ----------------------------- main -----------------------------

if __name__ == "__main__":
    SRC_VOCAB, TGT_VOCAB = 20, 18
    EMB, HIDDEN = 16, 32
    SRC_LEN, TGT_LEN, BATCH = 7, 6, 2

    key = jax.random.PRNGKey(0)
    k_p, k_s, k_t = jax.random.split(key, 3)
    raw_params = init_params(k_p, SRC_VOCAB, TGT_VOCAB, EMB, HIDDEN)
    params = prepare_params(raw_params, EMB, HIDDEN)

    source = jax.random.randint(k_s, (SRC_LEN, BATCH), 0, SRC_VOCAB, dtype=jnp.int32)
    target = jax.random.randint(k_t, (TGT_LEN, BATCH), 0, TGT_VOCAB, dtype=jnp.int32)

    fwd = jax.jit(functools.partial(
        seq2seq_forward, params=params, target_vocab_size=TGT_VOCAB,
        teacher_force_ratio=0.5, seed=0))

    outputs = fwd(source, target)
    jax.block_until_ready(outputs)
    assert outputs.shape == (TGT_LEN, BATCH, TGT_VOCAB)
    assert bool(jnp.all(jnp.isfinite(outputs)))
    print("KERNEL_OK")
</pallas_src>

<mosaic_0001>
module attributes {stable_mosaic.version = 11 : i64} {
  func.func @_encoder_kernel(%arg0: i32, %arg1: memref<1x2x128xf32, #tpu.memory_space<vmem>>, %arg2: memref<1x2x128xf32, #tpu.memory_space<vmem>>, %arg3: memref<128x512xf32, #tpu.memory_space<vmem>>, %arg4: memref<128x512xf32, #tpu.memory_space<vmem>>, %arg5: memref<1x512xf32, #tpu.memory_space<vmem>>, %arg6: memref<128x512xf32, #tpu.memory_space<vmem>>, %arg7: memref<128x512xf32, #tpu.memory_space<vmem>>, %arg8: memref<1x512xf32, #tpu.memory_space<vmem>>, %arg9: memref<256x128xf32, #tpu.memory_space<vmem>>, %arg10: memref<1x128xf32, #tpu.memory_space<vmem>>, %arg11: memref<256x128xf32, #tpu.memory_space<vmem>>, %arg12: memref<1x128xf32, #tpu.memory_space<vmem>>, %arg13: memref<1x2x128xf32, #tpu.memory_space<vmem>>, %arg14: memref<1x2x128xf32, #tpu.memory_space<vmem>>, %arg15: memref<2x128xf32, #tpu.memory_space<vmem>>, %arg16: memref<2x128xf32, #tpu.memory_space<vmem>>, %arg17: memref<2x128xf32, #tpu.memory_space<vmem>>, %arg18: memref<2x128xf32, #tpu.memory_space<vmem>>, %arg19: memref<2x128xf32, #tpu.memory_space<vmem>>, %arg20: memref<2x128xf32, #tpu.memory_space<vmem>>) attributes {dimension_semantics = [#tpu.dimension_semantics<arbitrary>], iteration_bounds = array<i64: 7>, scalar_prefetch = 0 : i64, scratch_operands = 4 : i64, tpu.core_type = #tpu.core_type<tc>, window_params = [{transform_indices = @transform_0, window_bounds = array<i64: 1, 2, 128>}, {transform_indices = @transform_1, window_bounds = array<i64: 1, 2, 128>}, {pipeline_mode = #tpu.pipeline_mode<synchronous>, transform_indices = @transform_2, window_bounds = array<i64: 128, 512>}, {pipeline_mode = #tpu.pipeline_mode<synchronous>, transform_indices = @transform_3, window_bounds = array<i64: 128, 512>}, {pipeline_mode = #tpu.pipeline_mode<synchronous>, transform_indices = @transform_4, window_bounds = array<i64: 1, 512>}, {pipeline_mode = #tpu.pipeline_mode<synchronous>, transform_indices = @transform_5, window_bounds = array<i64: 128, 512>}, {pipeline_mode = #tpu.pipeline_mode<synchronous>, transform_indices = @transform_6, window_bounds = array<i64: 128, 512>}, {pipeline_mode = #tpu.pipeline_mode<synchronous>, transform_indices = @transform_7, window_bounds = array<i64: 1, 512>}, {pipeline_mode = #tpu.pipeline_mode<synchronous>, transform_indices = @transform_8, window_bounds = array<i64: 256, 128>}, {pipeline_mode = #tpu.pipeline_mode<synchronous>, transform_indices = @transform_9, window_bounds = array<i64: 1, 128>}, {pipeline_mode = #tpu.pipeline_mode<synchronous>, transform_indices = @transform_10, window_bounds = array<i64: 256, 128>}, {pipeline_mode = #tpu.pipeline_mode<synchronous>, transform_indices = @transform_11, window_bounds = array<i64: 1, 128>}, {transform_indices = @transform_12, window_bounds = array<i64: 1, 2, 128>}, {transform_indices = @transform_13, window_bounds = array<i64: 1, 2, 128>}, {pipeline_mode = #tpu.pipeline_mode<synchronous>, transform_indices = @transform_14, window_bounds = array<i64: 2, 128>}, {pipeline_mode = #tpu.pipeline_mode<synchronous>, transform_indices = @transform_15, window_bounds = array<i64: 2, 128>}]} {
    %c0_i32 = arith.constant 0 : i32
    %0 = arith.cmpi eq, %arg0, %c0_i32 : i32
    %1 = arith.extui %0 : i1 to i32
    %c0_i32_0 = arith.constant 0 : i32
    %2 = arith.cmpi ne, %1, %c0_i32_0 : i32
    scf.if %2 {
      %cst_50 = arith.constant 0.000000e+00 : f32
      %88 = vector.broadcast %cst_50 : f32 to vector<2x128xf32>
      %c0_51 = arith.constant 0 : index
      %c0_52 = arith.constant 0 : index
      %89 = vector.load %arg17[%c0_51, %c0_52] : memref<2x128xf32, #tpu.memory_space<vmem>>, vector<2x128xf32>
      tpu.vector_store %arg17[%c0_51, %c0_52], %88 {strides = array<i32>} : memref<2x128xf32, #tpu.memory_space<vmem>>, vector<2x128xf32>,
      %cst_53 = arith.constant 0.000000e+00 : f32
      %90 = vector.broadcast %cst_53 : f32 to vector<2x128xf32>
      %c0_54 = arith.constant 0 : index
      %c0_55 = arith.constant 0 : index
      %91 = vector.load %arg18[%c0_54, %c0_55] : memref<2x128xf32, #tpu.memory_space<vmem>>, vector<2x128xf32>
      tpu.vector_store %arg18[%c0_54, %c0_55], %90 {strides = array<i32>} : memref<2x128xf32, #tpu.memory_space<vmem>>, vector<2x128xf32>,
      %cst_56 = arith.constant 0.000000e+00 : f32
      %92 = vector.broadcast %cst_56 : f32 to vector<2x128xf32>
      %c0_57 = arith.constant 0 : index
      %c0_58 = arith.constant 0 : index
      %93 = vector.load %arg19[%c0_57, %c0_58] : memref<2x128xf32, #tpu.memory_space<vmem>>, vector<2x128xf32>
      tpu.vector_store %arg19[%c0_57, %c0_58], %92 {strides = array<i32>} : memref<2x128xf32, #tpu.memory_space<vmem>>, vector<2x128xf32>,
      %cst_59 = arith.constant 0.000000e+00 : f32
      %94 = vector.broadcast %cst_59 : f32 to vector<2x128xf32>
      %c0_60 = arith.constant 0 : index
      %c0_61 = arith.constant 0 : index
      %95 = vector.load %arg20[%c0_60, %c0_61] : memref<2x128xf32, #tpu.memory_space<vmem>>, vector<2x128xf32>
      tpu.vector_store %arg20[%c0_60, %c0_61], %94 {strides = array<i32>} : memref<2x128xf32, #tpu.memory_space<vmem>>, vector<2x128xf32>,
    } else {
    }
    %c0 = arith.constant 0 : index
    %c0_1 = arith.constant 0 : index
    %c0_2 = arith.constant 0 : index
    %3 = vector.load %arg1[%c0, %c0_1, %c0_2] : memref<1x2x128xf32, #tpu.memory_space<vmem>>, vector<1x2x128xf32>
    %4 = vector.shape_cast %3 : vector<1x2x128xf32> to vector<2x128xf32>
    %c0_3 = arith.constant 0 : index
    %c0_4 = arith.constant 0 : index
    %5 = vector.load %arg17[%c0_3, %c0_4] : memref<2x128xf32, #tpu.memory_space<vmem>>, vector<2x128xf32>
    %c0_5 = arith.constant 0 : index
    %c0_6 = arith.constant 0 : index
    %6 = vector.load %arg18[%c0_5, %c0_6] : memref<2x128xf32, #tpu.memory_space<vmem>>, vector<2x128xf32>
    %c0_7 = arith.constant 0 : index
    %c0_8 = arith.constant 0 : index
    %7 = vector.load %arg3[%c0_7, %c0_8] : memref<128x512xf32, #tpu.memory_space<vmem>>, vector<128x512xf32>
    %c0_9 = arith.constant 0 : index
    %c0_10 = arith.constant 0 : index
    %8 = vector.load %arg4[%c0_9, %c0_10] : memref<128x512xf32, #tpu.memory_space<vmem>>, vector<128x512xf32>
    %c0_11 = arith.constant 0 : index
    %c0_12 = arith.constant 0 : index
    %9 = vector.load %arg5[%c0_11, %c0_12] : memref<1x512xf32, #tpu.memory_space<vmem>>, vector<1x512xf32>
    %cst = arith.constant dense<0.000000e+00> : vector<2x512xf32>
    %10 = tpu.matmul %4, %7, %cst {dimension_numbers = #tpu.dot_dimension_numbers<[1], [0], [0], [1], [0, 0, 1, 1], [], []>} : vector<2x128xf32>, vector<128x512xf32>, vector<2x512xf32> -> vector<2x512xf32>
    %cst_13 = arith.constant dense<0.000000e+00> : vector<2x512xf32>
    %11 = tpu.matmul %5, %8, %cst_13 {dimension_numbers = #tpu.dot_dimension_numbers<[1], [0], [0], [1], [0, 0, 1, 1], [], []>} : vector<2x128xf32>, vector<128x512xf32>, vector<2x512xf32> -> vector<2x512xf32>
    %12 = arith.addf %10, %11 : vector<2x512xf32>
    %13 = vector.broadcast %9 : vector<1x512xf32> to vector<2x512xf32>
    %14 = arith.addf %12, %13 : vector<2x512xf32>
    %15 = vector.extract_strided_slice %14 {offsets = [0, 0], sizes = [2, 128], strides = [1, 1]} : vector<2x512xf32> to vector<2x128xf32>
    %16 = arith.negf %15 : vector<2x128xf32>
    %17 = math.exp %16 : vector<2x128xf32>
    %cst_14 = arith.constant 1.000000e+00 : f32
    %18 = vector.broadcast %cst_14 : f32 to vector<2x128xf32>
    %19 = arith.addf %18, %17 : vector<2x128xf32>
    %20 = arith.divf %18, %19 : vector<2x128xf32>
    %21 = vector.extract_strided_slice %14 {offsets = [0, 128], sizes = [2, 128], strides = [1, 1]} : vector<2x512xf32> to vector<2x128xf32>
    %22 = arith.negf %21 : vector<2x128xf32>
    %23 = math.exp %22 : vector<2x128xf32>
    %cst_15 = arith.constant 1.000000e+00 : f32
    %24 = vector.broadcast %cst_15 : f32 to vector<2x128xf32>
    %25 = arith.addf %24, %23 : vector<2x128xf32>
    %26 = arith.divf %24, %25 : vector<2x128xf32>
    %27 = vector.extract_strided_slice %14 {offsets = [0, 256], sizes = [2, 128], strides = [1, 1]} : vector<2x512xf32> to vector<2x128xf32>
    %28 = math.tanh %27 : vector<2x128xf32>
    %29 = vector.extract_strided_slice %14 {offsets = [0, 384], sizes = [2, 128], strides = [1, 1]} : vector<2x512xf32> to vector<2x128xf32>
    %30 = arith.negf %29 : vector<2x128xf32>
    %31 = math.exp %30 : vector<2x128xf32>
    %cst_16 = arith.constant 1.000000e+00 : f32
    %32 = vector.broadcast %cst_16 : f32 to vector<2x128xf32>
    %33 = arith.addf %32, %31 : vector<2x128xf32>
    %34 = arith.divf %32, %33 : vector<2x128xf32>
    %35 = arith.mulf %26, %6 : vector<2x128xf32>
    %36 = arith.mulf %20, %28 : vector<2x128xf32>
    %37 = arith.addf %35, %36 : vector<2x128xf32>
    %38 = math.tanh %37 : vector<2x128xf32>
    %39 = arith.mulf %34, %38 : vector<2x128xf32>
    %c0_17 = arith.constant 0 : index
    %c0_18 = arith.constant 0 : index
    %c0_19 = arith.constant 0 : index
    %40 = vector.load %arg2[%c0_17, %c0_18, %c0_19] : memref<1x2x128xf32, #tpu.memory_space<vmem>>, vector<1x2x128xf32>
    %41 = vector.shape_cast %40 : vector<1x2x128xf32> to vector<2x128xf32>
    %c0_20 = arith.constant 0 : index
    %c0_21 = arith.constant 0 : index
    %42 = vector.load %arg19[%c0_20, %c0_21] : memref<2x128xf32, #tpu.memory_space<vmem>>, vector<2x128xf32>
    %c0_22 = arith.constant 0 : index
    %c0_23 = arith.constant 0 : index
    %43 = vector.load %arg20[%c0_22, %c0_23] : memref<2x128xf32, #tpu.memory_space<vmem>>, vector<2x128xf32>
    %c0_24 = arith.constant 0 : index
    %c0_25 = arith.constant 0 : index
    %44 = vector.load %arg6[%c0_24, %c0_25] : memref<128x512xf32, #tpu.memory_space<vmem>>, vector<128x512xf32>
    %c0_26 = arith.constant 0 : index
    %c0_27 = arith.constant 0 : index
    %45 = vector.load %arg7[%c0_26, %c0_27] : memref<128x512xf32, #tpu.memory_space<vmem>>, vector<128x512xf32>
    %c0_28 = arith.constant 0 : index
    %c0_29 = arith.constant 0 : index
    %46 = vector.load %arg8[%c0_28, %c0_29] : memref<1x512xf32, #tpu.memory_space<vmem>>, vector<1x512xf32>
    %cst_30 = arith.constant dense<0.000000e+00> : vector<2x512xf32>
    %47 = tpu.matmul %41, %44, %cst_30 {dimension_numbers = #tpu.dot_dimension_numbers<[1], [0], [0], [1], [0, 0, 1, 1], [], []>} : vector<2x128xf32>, vector<128x512xf32>, vector<2x512xf32> -> vector<2x512xf32>
    %cst_31 = arith.constant dense<0.000000e+00> : vector<2x512xf32>
    %48 = tpu.matmul %42, %45, %cst_31 {dimension_numbers = #tpu.dot_dimension_numbers<[1], [0], [0], [1], [0, 0, 1, 1], [], []>} : vector<2x128xf32>, vector<128x512xf32>, vector<2x512xf32> -> vector<2x512xf32>
    %49 = arith.addf %47, %48 : vector<2x512xf32>
    %50 = vector.broadcast %46 : vector<1x512xf32> to vector<2x512xf32>
    %51 = arith.addf %49, %50 : vector<2x512xf32>
    %52 = vector.extract_strided_slice %51 {offsets = [0, 0], sizes = [2, 128], strides = [1, 1]} : vector<2x512xf32> to vector<2x128xf32>
    %53 = arith.negf %52 : vector<2x128xf32>
    %54 = math.exp %53 : vector<2x128xf32>
    %cst_32 = arith.constant 1.000000e+00 : f32
    %55 = vector.broadcast %cst_32 : f32 to vector<2x128xf32>
    %56 = arith.addf %55, %54 : vector<2x128xf32>
    %57 = arith.divf %55, %56 : vector<2x128xf32>
    %58 = vector.extract_strided_slice %51 {offsets = [0, 128], sizes = [2, 128], strides = [1, 1]} : vector<2x512xf32> to vector<2x128xf32>
    %59 = arith.negf %58 : vector<2x128xf32>
    %60 = math.exp %59 : vector<2x128xf32>
    %cst_33 = arith.constant 1.000000e+00 : f32
    %61 = vector.broadcast %cst_33 : f32 to vector<2x128xf32>
    %62 = arith.addf %61, %60 : vector<2x128xf32>
    %63 = arith.divf %61, %62 : vector<2x128xf32>
    %64 = vector.extract_strided_slice %51 {offsets = [0, 256], sizes = [2, 128], strides = [1, 1]} : vector<2x512xf32> to vector<2x128xf32>
    %65 = math.tanh %64 : vector<2x128xf32>
    %66 = vector.extract_strided_slice %51 {offsets = [0, 384], sizes = [2, 128], strides = [1, 1]} : vector<2x512xf32> to vector<2x128xf32>
    %67 = arith.negf %66 : vector<2x128xf32>
    %68 = math.exp %67 : vector<2x128xf32>
    %cst_34 = arith.constant 1.000000e+00 : f32
    %69 = vector.broadcast %cst_34 : f32 to vector<2x128xf32>
    %70 = arith.addf %69, %68 : vector<2x128xf32>
    %71 = arith.divf %69, %70 : vector<2x128xf32>
    %72 = arith.mulf %63, %43 : vector<2x128xf32>
    %73 = arith.mulf %57, %65 : vector<2x128xf32>
    %74 = arith.addf %72, %73 : vector<2x128xf32>
    %75 = math.tanh %74 : vector<2x128xf32>
    %76 = arith.mulf %71, %75 : vector<2x128xf32>
    %c0_35 = arith.constant 0 : index
    %c0_36 = arith.constant 0 : index
    %77 = vector.load %arg17[%c0_35, %c0_36] : memref<2x128xf32, #tpu.memory_space<vmem>>, vector<2x128xf32>
    tpu.vector_store %arg17[%c0_35, %c0_36], %39 {strides = array<i32>} : memref<2x128xf32, #tpu.memory_space<vmem>>, vector<2x128xf32>,
    %c0_37 = arith.constant 0 : index
    %c0_38 = arith.constant 0 : index
    %78 = vector.load %arg18[%c0_37, %c0_38] : memref<2x128xf32, #tpu.memory_space<vmem>>, vector<2x128xf32>
    tpu.vector_store %arg18[%c0_37, %c0_38], %37 {strides = array<i32>} : memref<2x128xf32, #tpu.memory_space<vmem>>, vector<2x128xf32>,
    %c0_39 = arith.constant 0 : index
    %c0_40 = arith.constant 0 : index
    %79 = vector.load %arg19[%c0_39, %c0_40] : memref<2x128xf32, #tpu.memory_space<vmem>>, vector<2x128xf32>
    tpu.vector_store %arg19[%c0_39, %c0_40], %76 {strides = array<i32>} : memref<2x128xf32, #tpu.memory_space<vmem>>, vector<2x128xf32>,
    %c0_41 = arith.constant 0 : index
    %c0_42 = arith.constant 0 : index
    %80 = vector.load %arg20[%c0_41, %c0_42] : memref<2x128xf32, #tpu.memory_space<vmem>>, vector<2x128xf32>
    tpu.vector_store %arg20[%c0_41, %c0_42], %74 {strides = array<i32>} : memref<2x128xf32, #tpu.memory_space<vmem>>, vector<2x128xf32>,
    %81 = vector.shape_cast %39 : vector<2x128xf32> to vector<1x2x128xf32>
    %c0_43 = arith.constant 0 : index
    %c0_44 = arith.constant 0 : index
    %c0_45 = arith.constant 0 : index
    %82 = vector.load %arg13[%c0_43, %c0_44, %c0_45] : memref<1x2x128xf32, #tpu.memory_space<vmem>>, vector<1x2x128xf32>
    tpu.vector_store %arg13[%c0_43, %c0_44, %c0_45], %81 {strides = array<i32>} : memref<1x2x128xf32, #tpu.memory_space<vmem>>, vector<1x2x128xf32>,
    %83 = vector.shape_cast %76 : vector<2x128xf32> to vector<1x2x128xf32>
    %c0_46 = arith.constant 0 : index
    %c0_47 = arith.constant 0 : index
    %c0_48 = arith.constant 0 : index
    %84 = vector.load %arg14[%c0_46, %c0_47, %c0_48] : memref<1x2x128xf32, #tpu.memory_space<vmem>>, vector<1x2x128xf32>
    tpu.vector_store %arg14[%c0_46, %c0_47, %c0_48], %83 {strides = array<i32>} : memref<1x2x128xf32, #tpu.memory_space<vmem>>, vector<1x2x128xf32>,
    %c6_i32 = arith.constant 6 : i32
    %85 = arith.cmpi eq, %arg0, %c6_i32 : i32
    %86 = arith.extui %85 : i1 to i32
    %c0_i32_49 = arith.constant 0 : i32
    %87 = arith.cmpi ne, %86, %c0_i32_49 : i32
    scf.if %87 {
      %88 = tpu.concatenate %39, %76 in 1 : vector<2x128xf32>, vector<2x128xf32> -> vector<2x256xf32>
      %89 = tpu.concatenate %37, %74 in 1 : vector<2x128xf32>, vector<2x128xf32> -> vector<2x256xf32>
      %c0_50 = arith.constant 0 : index
      %c0_51 = arith.constant 0 : index
      %90 = vector.load %arg9[%c0_50, %c0_51] : memref<256x128xf32, #tpu.memory_space<vmem>>, vector<256x128xf32>
      %cst_52 = arith.constant dense<0.000000e+00> : vector<2x128xf32>
      %91 = tpu.matmul %88, %90, %cst_52 {dimension_numbers = #tpu.dot_dimension_numbers<[1], [0], [0], [1], [0, 0, 1, 1], [], []>} : vector<2x256xf32>, vector<256x128xf32>, vector<2x128xf32> -> vector<2x128xf32>
      %c0_53 = arith.constant 0 : index
      %c0_54 = arith.constant 0 : index
      %92 = vector.load %arg10[%c0_53, %c0_54] : memref<1x128xf32, #tpu.memory_space<vmem>>, vector<1x128xf32>
      %93 = vector.broadcast %92 : vector<1x128xf32> to vector<2x128xf32>
      %94 = arith.addf %91, %93 : vector<2x128xf32>
      %c0_55 = arith.constant 0 : index
      %c0_56 = arith.constant 0 : index
      %95 = vector.load %arg15[%c0_55, %c0_56] : memref<2x128xf32, #tpu.memory_space<vmem>>, vector<2x128xf32>
      tpu.vector_store %arg15[%c0_55, %c0_56], %94 {strides = array<i32>} : memref<2x128xf32, #tpu.memory_space<vmem>>, vector<2x128xf32>,
      %c0_57 = arith.constant 0 : index
      %c0_58 = arith.constant 0 : index
      %96 = vector.load %arg11[%c0_57, %c0_58] : memref<256x128xf32, #tpu.memory_space<vmem>>, vector<256x128xf32>
      %cst_59 = arith.constant dense<0.000000e+00> : vector<2x128xf32>
      %97 = tpu.matmul %89, %96, %cst_59 {dimension_numbers = #tpu.dot_dimension_numbers<[1], [0], [0], [1], [0, 0, 1, 1], [], []>} : vector<2x256xf32>, vector<256x128xf32>, vector<2x128xf32> -> vector<2x128xf32>
      %c0_60 = arith.constant 0 : index
      %c0_61 = arith.constant 0 : index
      %98 = vector.load %arg12[%c0_60, %c0_61] : memref<1x128xf32, #tpu.memory_space<vmem>>, vector<1x128xf32>
      %99 = vector.broadcast %98 : vector<1x128xf32> to vector<2x128xf32>
      %100 = arith.addf %97, %99 : vector<2x128xf32>
      %c0_62 = arith.constant 0 : index
      %c0_63 = arith.constant 0 : index
      %101 = vector.load %arg16[%c0_62, %c0_63] : memref<2x128xf32, #tpu.memory_space<vmem>>, vector<2x128xf32>
      tpu.vector_store %arg16[%c0_62, %c0_63], %100 {strides = array<i32>} : memref<2x128xf32, #tpu.memory_space<vmem>>, vector<2x128xf32>,
    } else {
    }
    return
  }
  func.func @transform_0(%arg0: i32) -> (i32, i32, i32) {
    %c0_i32 = arith.constant 0 : i32
    %c0_i32_0 = arith.constant 0 : i32
    %c0_i32_1 = arith.constant 0 : i32
    return %arg0, %c0_i32, %c0_i32_0 : i32, i32, i32
  }
  func.func @transform_1(%arg0: i32) -> (i32, i32, i32) {
    %c6_i32 = arith.constant 6 : i32
    %0 = arith.subi %c6_i32, %arg0 : i32
    %c0_i32 = arith.constant 0 : i32
    %c0_i32_0 = arith.constant 0 : i32
    %c0_i32_1 = arith.constant 0 : i32
    return %0, %c0_i32, %c0_i32_0 : i32, i32, i32
  }
  func.func @transform_2(%arg0: i32) -> (i32, i32) {
    %c0_i32 = arith.constant 0 : i32
    %c0_i32_0 = arith.constant 0 : i32
    %c0_i32_1 = arith.constant 0 : i32
    return %c0_i32, %c0_i32_0 : i32, i32
  }
  func.func @transform_3(%arg0: i32) -> (i32, i32) {
    %c0_i32 = arith.constant 0 : i32
    %c0_i32_0 = arith.constant 0 : i32
    %c0_i32_1 = arith.constant 0 : i32
    return %c0_i32, %c0_i32_0 : i32, i32
  }
  func.func @transform_4(%arg0: i32) -> (i32, i32) {
    %c0_i32 = arith.constant 0 : i32
    %c0_i32_0 = arith.constant 0 : i32
    %c0_i32_1 = arith.constant 0 : i32
    return %c0_i32, %c0_i32_0 : i32, i32
  }
  func.func @transform_5(%arg0: i32) -> (i32, i32) {
    %c0_i32 = arith.constant 0 : i32
    %c0_i32_0 = arith.constant 0 : i32
    %c0_i32_1 = arith.constant 0 : i32
    return %c0_i32, %c0_i32_0 : i32, i32
  }
  func.func @transform_6(%arg0: i32) -> (i32, i32) {
    %c0_i32 = arith.constant 0 : i32
    %c0_i32_0 = arith.constant 0 : i32
    %c0_i32_1 = arith.constant 0 : i32
    return %c0_i32, %c0_i32_0 : i32, i32
  }
  func.func @transform_7(%arg0: i32) -> (i32, i32) {
    %c0_i32 = arith.constant 0 : i32
    %c0_i32_0 = arith.constant 0 : i32
    %c0_i32_1 = arith.constant 0 : i32
    return %c0_i32, %c0_i32_0 : i32, i32
  }
  func.func @transform_8(%arg0: i32) -> (i32, i32) {
    %c0_i32 = arith.constant 0 : i32
    %c0_i32_0 = arith.constant 0 : i32
    %c0_i32_1 = arith.constant 0 : i32
    return %c0_i32, %c0_i32_0 : i32, i32
  }
  func.func @transform_9(%arg0: i32) -> (i32, i32) {
    %c0_i32 = arith.constant 0 : i32
    %c0_i32_0 = arith.constant 0 : i32
    %c0_i32_1 = arith.constant 0 : i32
    return %c0_i32, %c0_i32_0 : i32, i32
  }
  func.func @transform_10(%arg0: i32) -> (i32, i32) {
    %c0_i32 = arith.constant 0 : i32
    %c0_i32_0 = arith.constant 0 : i32
    %c0_i32_1 = arith.constant 0 : i32
    return %c0_i32, %c0_i32_0 : i32, i32
  }
  func.func @transform_11(%arg0: i32) -> (i32, i32) {
    %c0_i32 = arith.constant 0 : i32
    %c0_i32_0 = arith.constant 0 : i32
    %c0_i32_1 = arith.constant 0 : i32
    return %c0_i32, %c0_i32_0 : i32, i32
  }
  func.func @transform_12(%arg0: i32) -> (i32, i32, i32) {
    %c0_i32 = arith.constant 0 : i32
    %c0_i32_0 = arith.constant 0 : i32
    %c0_i32_1 = arith.constant 0 : i32
    return %arg0, %c0_i32, %c0_i32_0 : i32, i32, i32
  }
  func.func @transform_13(%arg0: i32) -> (i32, i32, i32) {
    %c6_i32 = arith.constant 6 : i32
    %0 = arith.subi %c6_i32, %arg0 : i32
    %c0_i32 = arith.constant 0 : i32
    %c0_i32_0 = arith.constant 0 : i32
    %c0_i32_1 = arith.constant 0 : i32
    return %0, %c0_i32, %c0_i32_0 : i32, i32, i32
  }
  func.func @transform_14(%arg0: i32) -> (i32, i32) {
    %c0_i32 = arith.constant 0 : i32
    %c0_i32_0 = arith.constant 0 : i32
    %c0_i32_1 = arith.constant 0 : i32
    return %c0_i32, %c0_i32_0 : i32, i32
  }
  func.func @transform_15(%arg0: i32) -> (i32, i32) {
    %c0_i32 = arith.constant 0 : i32
    %c0_i32_0 = arith.constant 0 : i32
    %c0_i32_1 = arith.constant 0 : i32
    return %c0_i32, %c0_i32_0 : i32, i32
  }
}

module attributes {stable_mosaic.version = 11 : i64} {
  func.func @_decoder_kernel(%arg0: i32, %arg1: memref<5xi32, #tpu.memory_space<smem>>, %arg2: memref<2x128xf32, #tpu.memory_space<vmem>>, %arg3: memref<2x128xf32, #tpu.memory_space<vmem>>, %arg4: memref<2x7x256xf32, #tpu.memory_space<vmem>>, %arg5: memref<1x2x128xf32, #tpu.memory_space<vmem>>, %arg6: memref<1x2x128xf32, #tpu.memory_space<vmem>>, %arg7: memref<128x128xf32, #tpu.memory_space<vmem>>, %arg8: memref<1x128xf32, #tpu.memory_space<vmem>>, %arg9: memref<1x256xf32, #tpu.memory_space<vmem>>, %arg10: memref<1x1xf32, #tpu.memory_space<vmem>>, %arg11: memref<384x512xf32, #tpu.memory_space<vmem>>, %arg12: memref<128x512xf32, #tpu.memory_space<vmem>>, %arg13: memref<1x512xf32, #tpu.memory_space<vmem>>, %arg14: memref<128x128xf32, #tpu.memory_space<vmem>>, %arg15: memref<1x128xf32, #tpu.memory_space<vmem>>, %arg16: memref<1x2x128xf32, #tpu.memory_space<vmem>>, %arg17: memref<2x128xf32, #tpu.memory_space<vmem>>, %arg18: memref<2x128xf32, #tpu.memory_space<vmem>>, %arg19: memref<2x128xf32, #tpu.memory_space<vmem>>, %arg20: memref<2x7xf32, #tpu.memory_space<vmem>>) attributes {dimension_semantics = [#tpu.dimension_semantics<arbitrary>], iteration_bounds = array<i64: 5>, scalar_prefetch = 1 : i64, scratch_operands = 4 : i64, tpu.core_type = #tpu.core_type<tc>, window_params = [{pipeline_mode = #tpu.pipeline_mode<synchronous>, transform_indices = @transform_0, window_bounds = array<i64: 2, 128>}, {pipeline_mode = #tpu.pipeline_mode<synchronous>, transform_indices = @transform_1, window_bounds = array<i64: 2, 128>}, {pipeline_mode = #tpu.pipeline_mode<synchronous>, transform_indices = @transform_2, window_bounds = array<i64: 2, 7, 256>}, {transform_indices = @transform_3, window_bounds = array<i64: 1, 2, 128>}, {transform_indices = @transform_4, window_bounds = array<i64: 1, 2, 128>}, {pipeline_mode = #tpu.pipeline_mode<synchronous>, transform_indices = @transform_5, window_bounds = array<i64: 128, 128>}, {pipeline_mode = #tpu.pipeline_mode<synchronous>, transform_indices = @transform_6, window_bounds = array<i64: 1, 128>}, {pipeline_mode = #tpu.pipeline_mode<synchronous>, transform_indices = @transform_7, window_bounds = array<i64: 1, 256>}, {pipeline_mode = #tpu.pipeline_mode<synchronous>, transform_indices = @transform_8, window_bounds = array<i64: 1, 1>}, {pipeline_mode = #tpu.pipeline_mode<synchronous>, transform_indices = @transform_9, window_bounds = array<i64: 384, 512>}, {pipeline_mode = #tpu.pipeline_mode<synchronous>, transform_indices = @transform_10, window_bounds = array<i64: 128, 512>}, {pipeline_mode = #tpu.pipeline_mode<synchronous>, transform_indices = @transform_11, window_bounds = array<i64: 1, 512>}, {pipeline_mode = #tpu.pipeline_mode<synchronous>, transform_indices = @transform_12, window_bounds = array<i64: 128, 128>}, {pipeline_mode = #tpu.pipeline_mode<synchronous>, transform_indices = @transform_13, window_bounds = array<i64: 1, 128>}, {transform_indices = @transform_14, window_bounds = array<i64: 1, 2, 128>}]} {
    %c0_i32 = arith.constant 0 : i32
    %0 = arith.cmpi eq, %arg0, %c0_i32 : i32
    %1 = arith.extui %0 : i1 to i32
    %c0_i32_0 = arith.constant 0 : i32
    %2 = arith.cmpi ne, %1, %c0_i32_0 : i32
    scf.if %2 {
      %c0_52 = arith.constant 0 : index
      %c0_53 = arith.constant 0 : index
      %102 = vector.load %arg2[%c0_52, %c0_53] : memref<2x128xf32, #tpu.memory_space<vmem>>, vector<2x128xf32>
      %c0_54 = arith.constant 0 : index
      %c0_55 = arith.constant 0 : index
      %103 = vector.load %arg17[%c0_54, %c0_55] : memref<2x128xf32, #tpu.memory_space<vmem>>, vector<2x128xf32>
      tpu.vector_store %arg17[%c0_54, %c0_55], %102 {strides = array<i32>} : memref<2x128xf32, #tpu.memory_space<vmem>>, vector<2x128xf32>,
      %c0_56 = arith.constant 0 : index
      %c0_57 = arith.constant 0 : index
      %104 = vector.load %arg3[%c0_56, %c0_57] : memref<2x128xf32, #tpu.memory_space<vmem>>, vector<2x128xf32>
      %c0_58 = arith.constant 0 : index
      %c0_59 = arith.constant 0 : index
      %105 = vector.load %arg18[%c0_58, %c0_59] : memref<2x128xf32, #tpu.memory_space<vmem>>, vector<2x128xf32>
      tpu.vector_store %arg18[%c0_58, %c0_59], %104 {strides = array<i32>} : memref<2x128xf32, #tpu.memory_space<vmem>>, vector<2x128xf32>,
      %c0_60 = arith.constant 0 : index
      %c0_61 = arith.constant 0 : index
      %c0_62 = arith.constant 0 : index
      %106 = vector.load %arg5[%c0_60, %c0_61, %c0_62] : memref<1x2x128xf32, #tpu.memory_space<vmem>>, vector<1x2x128xf32>
      %107 = vector.shape_cast %106 : vector<1x2x128xf32> to vector<2x128xf32>
      %c0_63 = arith.constant 0 : index
      %c0_64 = arith.constant 0 : index
      %108 = vector.load %arg19[%c0_63, %c0_64] : memref<2x128xf32, #tpu.memory_space<vmem>>, vector<2x128xf32>
      tpu.vector_store %arg19[%c0_63, %c0_64], %107 {strides = array<i32>} : memref<2x128xf32, #tpu.memory_space<vmem>>, vector<2x128xf32>,
      %c0_65 = arith.constant 0 : index
      %c0_66 = arith.constant 0 : index
      %c0_67 = arith.constant 0 : index
      %109 = vector.load %arg4[%c0_65, %c0_66, %c0_67] : memref<2x7x256xf32, #tpu.memory_space<vmem>>, vector<2x7x256xf32>
      %c0_68 = arith.constant 0 : index
      %c0_69 = arith.constant 0 : index
      %110 = vector.load %arg9[%c0_68, %c0_69] : memref<1x256xf32, #tpu.memory_space<vmem>>, vector<1x256xf32>
      %111 = vector.shape_cast %110 : vector<1x256xf32> to vector<1x1x256xf32>
      %112 = vector.broadcast %111 : vector<1x1x256xf32> to vector<2x7x256xf32>
      %113 = arith.mulf %109, %112 : vector<2x7x256xf32>
      %cst_70 = arith.constant dense<0.000000e+00> : vector<2x7xf32>
      %114 = vector.multi_reduction <add>, %113, %cst_70 [2] : vector<2x7x256xf32> to vector<2x7xf32>
      %c0_71 = arith.constant 0 : index
      %c0_72 = arith.constant 0 : index
      %115 = vector.load %arg10[%c0_71, %c0_72] : memref<1x1xf32, #tpu.memory_space<vmem>>, vector<1x1xf32>
      %116 = vector.broadcast %115 : vector<1x1xf32> to vector<2x7xf32>
      %117 = arith.addf %114, %116 : vector<2x7xf32>
      %c0_73 = arith.constant 0 : index
      %c0_74 = arith.constant 0 : index
      %118 = vector.load %arg20[%c0_73, %c0_74] : memref<2x7xf32, #tpu.memory_space<vmem>>, vector<2x7xf32>
      tpu.vector_store %arg20[%c0_73, %c0_74], %117 {strides = array<i32>} : memref<2x7xf32, #tpu.memory_space<vmem>>, vector<2x7xf32>,
    } else {
    }
    %c0 = arith.constant 0 : index
    %c0_1 = arith.constant 0 : index
    %3 = vector.load %arg17[%c0, %c0_1] : memref<2x128xf32, #tpu.memory_space<vmem>>, vector<2x128xf32>
    %c0_2 = arith.constant 0 : index
    %c0_3 = arith.constant 0 : index
    %4 = vector.load %arg18[%c0_2, %c0_3] : memref<2x128xf32, #tpu.memory_space<vmem>>, vector<2x128xf32>
    %c0_4 = arith.constant 0 : index
    %c0_5 = arith.constant 0 : index
    %5 = vector.load %arg19[%c0_4, %c0_5] : memref<2x128xf32, #tpu.memory_space<vmem>>, vector<2x128xf32>
    %c0_6 = arith.constant 0 : index
    %c0_7 = arith.constant 0 : index
    %6 = vector.load %arg8[%c0_6, %c0_7] : memref<1x128xf32, #tpu.memory_space<vmem>>, vector<1x128xf32>
    %7 = vector.broadcast %6 : vector<1x128xf32> to vector<2x128xf32>
    %8 = arith.mulf %3, %7 : vector<2x128xf32>
    %cst = arith.constant dense<0.000000e+00> : vector<2xf32>
    %9 = vector.multi_reduction <add>, %8, %cst [1] : vector<2x128xf32> to vector<2xf32>
    %10 = vector.shape_cast %9 : vector<2xf32> to vector<2x1xf32>
    %c0_8 = arith.constant 0 : index
    %c0_9 = arith.constant 0 : index
    %11 = vector.load %arg20[%c0_8, %c0_9] : memref<2x7xf32, #tpu.memory_space<vmem>>, vector<2x7xf32>
    %12 = vector.broadcast %10 : vector<2x1xf32> to vector<2x7xf32>
    %13 = arith.addf %11, %12 : vector<2x7xf32>
    %cst_10 = arith.constant 0.000000e+00 : f32
    %14 = vector.broadcast %cst_10 : f32 to vector<2x7xf32>
    %15 = arith.maximumf %13, %14 : vector<2x7xf32>
    %cst_11 = arith.constant dense<0xFF800000> : vector<2xf32>
    %16 = vector.multi_reduction <maximumf>, %15, %cst_11 [1] : vector<2x7xf32> to vector<2xf32>
    %17 = vector.shape_cast %16 : vector<2xf32> to vector<2x1xf32>
    %18 = vector.broadcast %17 : vector<2x1xf32> to vector<2x7xf32>
    %19 = arith.subf %15, %18 : vector<2x7xf32>
    %20 = math.exp %19 : vector<2x7xf32>
    %cst_12 = arith.constant dense<0.000000e+00> : vector<2xf32>
    %21 = vector.multi_reduction <add>, %20, %cst_12 [1] : vector<2x7xf32> to vector<2xf32>
    %22 = vector.shape_cast %21 : vector<2xf32> to vector<2x1xf32>
    %23 = vector.broadcast %22 : vector<2x1xf32> to vector<2x7xf32>
    %24 = arith.divf %20, %23 : vector<2x7xf32>
    %25 = vector.shape_cast %24 : vector<2x7xf32> to vector<2x7x1xf32>
    %c0_13 = arith.constant 0 : index
    %c0_14 = arith.constant 0 : index
    %c0_15 = arith.constant 0 : index
    %26 = vector.load %arg4[%c0_13, %c0_14, %c0_15] : memref<2x7x256xf32, #tpu.memory_space<vmem>>, vector<2x7x256xf32>
    %27 = vector.broadcast %25 : vector<2x7x1xf32> to vector<2x7x256xf32>
    %28 = arith.mulf %27, %26 : vector<2x7x256xf32>
    %cst_16 = arith.constant dense<0.000000e+00> : vector<2x256xf32>
    %29 = vector.multi_reduction <add>, %28, %cst_16 [1] : vector<2x7x256xf32> to vector<2x256xf32>
    %30 = tpu.concatenate %29, %5 in 1 : vector<2x256xf32>, vector<2x128xf32> -> vector<2x384xf32>
    %c0_17 = arith.constant 0 : index
    %c0_18 = arith.constant 0 : index
    %31 = vector.load %arg11[%c0_17, %c0_18] : memref<384x512xf32, #tpu.memory_space<vmem>>, vector<384x512xf32>
    %cst_19 = arith.constant dense<0.000000e+00> : vector<2x512xf32>
    %32 = tpu.matmul %30, %31, %cst_19 {dimension_numbers = #tpu.dot_dimension_numbers<[1], [0], [0], [1], [0, 0, 1, 1], [], []>} : vector<2x384xf32>, vector<384x512xf32>, vector<2x512xf32> -> vector<2x512xf32>
    %c0_20 = arith.constant 0 : index
    %c0_21 = arith.constant 0 : index
    %33 = vector.load %arg12[%c0_20, %c0_21] : memref<128x512xf32, #tpu.memory_space<vmem>>, vector<128x512xf32>
    %cst_22 = arith.constant dense<0.000000e+00> : vector<2x512xf32>
    %34 = tpu.matmul %3, %33, %cst_22 {dimension_numbers = #tpu.dot_dimension_numbers<[1], [0], [0], [1], [0, 0, 1, 1], [], []>} : vector<2x128xf32>, vector<128x512xf32>, vector<2x512xf32> -> vector<2x512xf32>
    %35 = arith.addf %32, %34 : vector<2x512xf32>
    %c0_23 = arith.constant 0 : index
    %c0_24 = arith.constant 0 : index
    %36 = vector.load %arg13[%c0_23, %c0_24] : memref<1x512xf32, #tpu.memory_space<vmem>>, vector<1x512xf32>
    %37 = vector.broadcast %36 : vector<1x512xf32> to vector<2x512xf32>
    %38 = arith.addf %35, %37 : vector<2x512xf32>
    %39 = vector.extract_strided_slice %38 {offsets = [0, 0], sizes = [2, 128], strides = [1, 1]} : vector<2x512xf32> to vector<2x128xf32>
    %40 = arith.negf %39 : vector<2x128xf32>
    %41 = math.exp %40 : vector<2x128xf32>
    %cst_25 = arith.constant 1.000000e+00 : f32
    %42 = vector.broadcast %cst_25 : f32 to vector<2x128xf32>
    %43 = arith.addf %42, %41 : vector<2x128xf32>
    %44 = arith.divf %42, %43 : vector<2x128xf32>
    %45 = vector.extract_strided_slice %38 {offsets = [0, 128], sizes = [2, 128], strides = [1, 1]} : vector<2x512xf32> to vector<2x128xf32>
    %46 = arith.negf %45 : vector<2x128xf32>
    %47 = math.exp %46 : vector<2x128xf32>
    %cst_26 = arith.constant 1.000000e+00 : f32
    %48 = vector.broadcast %cst_26 : f32 to vector<2x128xf32>
    %49 = arith.addf %48, %47 : vector<2x128xf32>
    %50 = arith.divf %48, %49 : vector<2x128xf32>
    %51 = vector.extract_strided_slice %38 {offsets = [0, 256], sizes = [2, 128], strides = [1, 1]} : vector<2x512xf32> to vector<2x128xf32>
    %52 = math.tanh %51 : vector<2x128xf32>
    %53 = vector.extract_strided_slice %38 {offsets = [0, 384], sizes = [2, 128], strides = [1, 1]} : vector<2x512xf32> to vector<2x128xf32>
    %54 = arith.negf %53 : vector<2x128xf32>
    %55 = math.exp %54 : vector<2x128xf32>
    %cst_27 = arith.constant 1.000000e+00 : f32
    %56 = vector.broadcast %cst_27 : f32 to vector<2x128xf32>
    %57 = arith.addf %56, %55 : vector<2x128xf32>
    %58 = arith.divf %56, %57 : vector<2x128xf32>
    %59 = arith.mulf %50, %4 : vector<2x128xf32>
    %60 = arith.mulf %44, %52 : vector<2x128xf32>
    %61 = arith.addf %59, %60 : vector<2x128xf32>
    %62 = math.tanh %61 : vector<2x128xf32>
    %63 = arith.mulf %58, %62 : vector<2x128xf32>
    %c0_28 = arith.constant 0 : index
    %c0_29 = arith.constant 0 : index
    %64 = vector.load %arg17[%c0_28, %c0_29] : memref<2x128xf32, #tpu.memory_space<vmem>>, vector<2x128xf32>
    tpu.vector_store %arg17[%c0_28, %c0_29], %63 {strides = array<i32>} : memref<2x128xf32, #tpu.memory_space<vmem>>, vector<2x128xf32>,
    %c0_30 = arith.constant 0 : index
    %c0_31 = arith.constant 0 : index
    %65 = vector.load %arg18[%c0_30, %c0_31] : memref<2x128xf32, #tpu.memory_space<vmem>>, vector<2x128xf32>
    tpu.vector_store %arg18[%c0_30, %c0_31], %61 {strides = array<i32>} : memref<2x128xf32, #tpu.memory_space<vmem>>, vector<2x128xf32>,
    %c0_32 = arith.constant 0 : index
    %c0_33 = arith.constant 0 : index
    %66 = vector.load %arg14[%c0_32, %c0_33] : memref<128x128xf32, #tpu.memory_space<vmem>>, vector<128x128xf32>
    %cst_34 = arith.constant dense<0.000000e+00> : vector<2x128xf32>
    %67 = tpu.matmul %63, %66, %cst_34 {dimension_numbers = #tpu.dot_dimension_numbers<[1], [0], [0], [1], [0, 0, 1, 1], [], []>} : vector<2x128xf32>, vector<128x128xf32>, vector<2x128xf32> -> vector<2x128xf32>
    %c0_35 = arith.constant 0 : index
    %c0_36 = arith.constant 0 : index
    %68 = vector.load %arg15[%c0_35, %c0_36] : memref<1x128xf32, #tpu.memory_space<vmem>>, vector<1x128xf32>
    %69 = vector.broadcast %68 : vector<1x128xf32> to vector<2x128xf32>
    %70 = arith.addf %67, %69 : vector<2x128xf32>
    %71 = vector.shape_cast %70 : vector<2x128xf32> to vector<1x2x128xf32>
    %c0_37 = arith.constant 0 : index
    %c0_38 = arith.constant 0 : index
    %c0_39 = arith.constant 0 : index
    %72 = vector.load %arg16[%c0_37, %c0_38, %c0_39] : memref<1x2x128xf32, #tpu.memory_space<vmem>>, vector<1x2x128xf32>
    tpu.vector_store %arg16[%c0_37, %c0_38, %c0_39], %71 {strides = array<i32>} : memref<1x2x128xf32, #tpu.memory_space<vmem>>, vector<1x2x128xf32>,
    %73 = tpu.iota {dimensions = array<i32: 1>} : vector<2x128xi32>
    %cst_40 = arith.constant dense<0xFF800000> : vector<2xf32>
    %74 = vector.multi_reduction <maximumf>, %70, %cst_40 [1] : vector<2x128xf32> to vector<2xf32>
    %75 = vector.shape_cast %74 : vector<2xf32> to vector<2x1xf32>
    %76 = vector.broadcast %75 : vector<2x1xf32> to vector<2x128xf32>
    %77 = arith.cmpf oeq, %70, %76 : vector<2x128xf32>
    %c128_i32 = arith.constant 128 : i32
    %78 = vector.broadcast %c128_i32 : i32 to vector<2x128xi32>
    %79 = arith.select %77, %73, %78 : vector<2x128xi1>, vector<2x128xi32>
    %cst_41 = arith.constant dense<2147483647> : vector<2xi32>
    %80 = vector.multi_reduction <minsi>, %79, %cst_41 [1] : vector<2x128xi32> to vector<2xi32>
    %81 = vector.shape_cast %80 : vector<2xi32> to vector<2x1xi32>
    %82 = vector.broadcast %81 : vector<2x1xi32> to vector<2x128xi32>
    %83 = arith.cmpi eq, %73, %82 : vector<2x128xi32>
    %84 = arith.extui %83 : vector<2x128xi1> to vector<2x128xi32>
    %85 = arith.sitofp %84 : vector<2x128xi32> to vector<2x128xf32>
    %c0_42 = arith.constant 0 : index
    %c0_43 = arith.constant 0 : index
    %86 = vector.load %arg7[%c0_42, %c0_43] : memref<128x128xf32, #tpu.memory_space<vmem>>, vector<128x128xf32>
    %cst_44 = arith.constant dense<0.000000e+00> : vector<2x128xf32>
    %87 = tpu.matmul %85, %86, %cst_44 {dimension_numbers = #tpu.dot_dimension_numbers<[1], [0], [0], [1], [0, 0, 1, 1], [], []>} : vector<2x128xf32>, vector<128x128xf32>, vector<2x128xf32> -> vector<2x128xf32>
    %c0_45 = arith.constant 0 : index
    %c0_46 = arith.constant 0 : index
    %c0_47 = arith.constant 0 : index
    %88 = vector.load %arg6[%c0_45, %c0_46, %c0_47] : memref<1x2x128xf32, #tpu.memory_space<vmem>>, vector<1x2x128xf32>
    %89 = vector.shape_cast %88 : vector<1x2x128xf32> to vector<2x128xf32>
    %90 = arith.index_cast %arg0 : i32 to index
    %91 = memref.load %arg1[%90] : memref<5xi32, #tpu.memory_space<smem>>
    %c0_i32_48 = arith.constant 0 : i32
    %92 = arith.cmpi sgt, %91, %c0_i32_48 : i32
    %93 = arith.extui %92 : i1 to i32
    %94 = arith.sitofp %93 : i32 to f32
    %95 = vector.broadcast %94 : f32 to vector<2x128xf32>
    %96 = arith.mulf %95, %89 : vector<2x128xf32>
    %cst_49 = arith.constant 1.000000e+00 : f32
    %97 = arith.subf %cst_49, %94 : f32
    %98 = vector.broadcast %97 : f32 to vector<2x128xf32>
    %99 = arith.mulf %98, %87 : vector<2x128xf32>
    %100 = arith.addf %96, %99 : vector<2x128xf32>
    %c0_50 = arith.constant 0 : index
    %c0_51 = arith.constant 0 : index
    %101 = vector.load %arg19[%c0_50, %c0_51] : memref<2x128xf32, #tpu.memory_space<vmem>>, vector<2x128xf32>
    tpu.vector_store %arg19[%c0_50, %c0_51], %100 {strides = array<i32>} : memref<2x128xf32, #tpu.memory_space<vmem>>, vector<2x128xf32>,
    return
  }
  func.func @transform_0(%arg0: i32, %arg1: memref<5xi32, #tpu.memory_space<smem>>) -> (i32, i32) {
    %c0_i32 = arith.constant 0 : i32
    %c0_i32_0 = arith.constant 0 : i32
    %c0_i32_1 = arith.constant 0 : i32
    return %c0_i32, %c0_i32_0 : i32, i32
  }
  func.func @transform_1(%arg0: i32, %arg1: memref<5xi32, #tpu.memory_space<smem>>) -> (i32, i32) {
    %c0_i32 = arith.constant 0 : i32
    %c0_i32_0 = arith.constant 0 : i32
    %c0_i32_1 = arith.constant 0 : i32
    return %c0_i32, %c0_i32_0 : i32, i32
  }
  func.func @transform_2(%arg0: i32, %arg1: memref<5xi32, #tpu.memory_space<smem>>) -> (i32, i32, i32) {
    %c0_i32 = arith.constant 0 : i32
    %c0_i32_0 = arith.constant 0 : i32
    %c0_i32_1 = arith.constant 0 : i32
    %c0_i32_2 = arith.constant 0 : i32
    return %c0_i32, %c0_i32_0, %c0_i32_1 : i32, i32, i32
  }
  func.func @transform_3(%arg0: i32, %arg1: memref<5xi32, #tpu.memory_space<smem>>) -> (i32, i32, i32) {
    %c0_i32 = arith.constant 0 : i32
    %c0_i32_0 = arith.constant 0 : i32
    %c0_i32_1 = arith.constant 0 : i32
    %c0_i32_2 = arith.constant 0 : i32
    return %c0_i32, %c0_i32_0, %c0_i32_1 : i32, i32, i32
  }
  func.func @transform_4(%arg0: i32, %arg1: memref<5xi32, #tpu.memory_space<smem>>) -> (i32, i32, i32) {
    %c1_i32 = arith.constant 1 : i32
    %0 = arith.addi %arg0, %c1_i32 : i32
    %c0_i32 = arith.constant 0 : i32
    %c0_i32_0 = arith.constant 0 : i32
    %c0_i32_1 = arith.constant 0 : i32
    return %0, %c0_i32, %c0_i32_0 : i32, i32, i32
  }
  func.func @transform_5(%arg0: i32, %arg1: memref<5xi32, #tpu.memory_space<smem>>) -> (i32, i32) {
    %c0_i32 = arith.constant 0 : i32
    %c0_i32_0 = arith.constant 0 : i32
    %c0_i32_1 = arith.constant 0 : i32
    return %c0_i32, %c0_i32_0 : i32, i32
  }
  func.func @transform_6(%arg0: i32, %arg1: memref<5xi32, #tpu.memory_space<smem>>) -> (i32, i32) {
    %c0_i32 = arith.constant 0 : i32
    %c0_i32_0 = arith.constant 0 : i32
    %c0_i32_1 = arith.constant 0 : i32
    return %c0_i32, %c0_i32_0 : i32, i32
  }
  func.func @transform_7(%arg0: i32, %arg1: memref<5xi32, #tpu.memory_space<smem>>) -> (i32, i32) {
    %c0_i32 = arith.constant 0 : i32
    %c0_i32_0 = arith.constant 0 : i32
    %c0_i32_1 = arith.constant 0 : i32
    return %c0_i32, %c0_i32_0 : i32, i32
  }
  func.func @transform_8(%arg0: i32, %arg1: memref<5xi32, #tpu.memory_space<smem>>) -> (i32, i32) {
    %c0_i32 = arith.constant 0 : i32
    %c0_i32_0 = arith.constant 0 : i32
    %c0_i32_1 = arith.constant 0 : i32
    return %c0_i32, %c0_i32_0 : i32, i32
  }
  func.func @transform_9(%arg0: i32, %arg1: memref<5xi32, #tpu.memory_space<smem>>) -> (i32, i32) {
    %c0_i32 = arith.constant 0 : i32
    %c0_i32_0 = arith.constant 0 : i32
    %c0_i32_1 = arith.constant 0 : i32
    return %c0_i32, %c0_i32_0 : i32, i32
  }
  func.func @transform_10(%arg0: i32, %arg1: memref<5xi32, #tpu.memory_space<smem>>) -> (i32, i32) {
    %c0_i32 = arith.constant 0 : i32
    %c0_i32_0 = arith.constant 0 : i32
    %c0_i32_1 = arith.constant 0 : i32
    return %c0_i32, %c0_i32_0 : i32, i32
  }
  func.func @transform_11(%arg0: i32, %arg1: memref<5xi32, #tpu.memory_space<smem>>) -> (i32, i32) {
    %c0_i32 = arith.constant 0 : i32
    %c0_i32_0 = arith.constant 0 : i32
    %c0_i32_1 = arith.constant 0 : i32
    return %c0_i32, %c0_i32_0 : i32, i32
  }
  func.func @transform_12(%arg0: i32, %arg1: memref<5xi32, #tpu.memory_space<smem>>) -> (i32, i32) {
    %c0_i32 = arith.constant 0 : i32
    %c0_i32_0 = arith.constant 0 : i32
    %c0_i32_1 = arith.constant 0 : i32
    return %c0_i32, %c0_i32_0 : i32, i32
  }
  func.func @transform_13(%arg0: i32, %arg1: memref<5xi32, #tpu.memory_space<smem>>) -> (i32, i32) {
    %c0_i32 = arith.constant 0 : i32
    %c0_i32_0 = arith.constant 0 : i32
    %c0_i32_1 = arith.constant 0 : i32
    return %c0_i32, %c0_i32_0 : i32, i32
  }
  func.func @transform_14(%arg0: i32, %arg1: memref<5xi32, #tpu.memory_space<smem>>) -> (i32, i32, i32) {
    %c0_i32 = arith.constant 0 : i32
    %c0_i32_0 = arith.constant 0 : i32
    %c0_i32_1 = arith.constant 0 : i32
    return %arg0, %c0_i32, %c0_i32_0 : i32, i32, i32
  }
}

</mosaic_0001>

<bundles_post_ra>
// kernel: seq2seq_forward.3
= control target key start
LH: loop header
LB: loop body
LE: loop exit
PB: predicated region body
PF: predicated region fallthrough
CT: control target
= control target key end

     0   :  { %s3216_s0 = inlined_call_operand.vmem [shape: s32[5], index: 0, kind: input, shape index: {}]   ;;  %s3217_s1 = inlined_call_operand.vmem [shape: f32[2,128], index: 1, kind: input, shape index: {}]   ;;  %s3218_s2 = inlined_call_operand.vmem [shape: f32[2,128], index: 2, kind: input, shape index: {}]   ;;  %s3219_s3 = inlined_call_operand.vmem [shape: f32[2,7,256], index: 3, kind: input, shape index: {}]   ;;  %s3220_s4 = inlined_call_operand.vmem [shape: f32[6,2,128], index: 4, kind: input, shape index: {}, may-alias: {4,5}]   ;;  %s3221_s5 = inlined_call_operand.vmem [shape: f32[6,2,128], index: 5, kind: input, shape index: {}, may-alias: {4,5}]   ;;  %s3222_s6 = inlined_call_operand.vmem [shape: f32[128,128], index: 6, kind: input, shape index: {}]   ;;  %s3223_s7 = inlined_call_operand.vmem [shape: f32[1,128], index: 7, kind: input, shape index: {}]   ;;  %s3224_s8 = inlined_call_operand.vmem [shape: f32[1,256], index: 8, kind: input, shape index: {}]   ;;  %s3225_s10 = inlined_call_operand.vmem [shape: f32[384,512], index: 10, kind: input, shape index: {}]   ;;  %s3226_s11 = inlined_call_operand.vmem [shape: f32[128,512], index: 11, kind: input, shape index: {}]   ;;  %s3227_s12 = inlined_call_operand.vmem [shape: f32[1,512], index: 12, kind: input, shape index: {}]   ;;  %s3228_s13 = inlined_call_operand.vmem [shape: f32[128,128], index: 13, kind: input, shape index: {}]   ;;  %s3229_s14 = inlined_call_operand.vmem [shape: f32[1,128], index: 14, kind: input, shape index: {}]   ;;  %s3230_s15 = inlined_call_operand.vmem [shape: f32[5,2,128], index: 15, kind: output, shape index: {}]   ;;  %s3231_s9 = inlined_call_operand.<no memory space> [shape: f32[1,1], index: 9, kind: input, shape index: {}]  }
   0x1   :  { %s20_s20 = sshll.u32 %s3216_s0, 4  ;;  %v24_v0 = vstv %s3231_s9  ;;  %s21_s20 = int_to_ptr.vmem [resolvable:$true] %s20_s20 }
   0x2   :  { %25 = vst [vmem:[#allocation8] sm:$0x1] %v24_v0  ;;  %s2113_s23 = scalar_lea.vmem %s21_s20, 16  ;;  %p2118_p1 = scmp.lt.s32.totalorder %s21_s20, %s21_s20 }
   0x3   :  { %p2114_p0 = scmp.ne.s32.totalorder %s21_s20, %s2113_s23  ;;  %p2119_p2 = scmp.lt.s32.totalorder %s2113_s23, %s2113_s23 }
   0x5   :  { %p2120_p3 = por %p2119_p2, %p2118_p1 }
   0x7   :  { %p2121_p4 = pnand %p2120_p3, %p2114_p0 }
   0x9   :  { %2124 = shalt.err (!%p2121_p4)  }
   0xa   :  { %s2135_s24 = smov [#allocation7]  }
   0xb   :  { %23 = dma.vmem_to_smem %s21_s20, 16, %s2135_s24, [#allocation6] }
   0xc   :  { %2129 = dma.done.wait [#allocation6], 16 }
   0xd   :  { %2130 = vsyncadd [#allocation6], 4294967280 }
   0xe   :  { %27 = sfence }
   0xf   :  { %s2227_s25 = smov 0  }
  0x10 LB: > { %s2233_s0 = sadd.s32 4294967295, %s2133_s25   ;;  %p1647_p5 = scmp.ge.s32.totalorder %s2133_s25, 1  ;;  %s2133_s25 = sphi %s2227_s25, %s33_s25  }
  0x11   : > { %p424_p6 = scmp.lt.s32.totalorder %s2133_s25, 6 }
  0x13   : > { %p425_p7 = pnand %p1647_p5, %p424_p6 }
  0x14   : > { %s469_s9 = sadd.s32 (!%p425_p7), 1, %s2233_s0  ;;  %p475_p8 = scmp.lt.s32.totalorder (!%p425_p7), %s2233_s0, 4 }
  0x15   : > { %428 = sbr.rel (%p425_p7) target bundleno = 1960 (0x7a8), region = 76  ;;  %p470_p9 = scmp.lt.s32.totalorder (!%p425_p7), %s469_s9, 5 }
  0x16   : > { %p1650_p10 = scmp.ne.s32.totalorder (!%p425_p7), %s2233_s0, 0 }
  0x1c   : > { %s476_s26 = scalar_select %p475_p8, %s2233_s0, 4 }
  0x1d   : > { %s3233_s9 = smov (!%p470_p9, %s469_s9), 5  ;;  %482 = sbr.rel (%p1650_p10) target bundleno = 195 (0xc3), region = 80 }
  0x1e   : > { %s1649_s27 = sshll.u32 %s476_s26, 1  ;;  %s1648_s28 = sshll.u32 %s3233_s9, 1  ;;  %v495_v1 = vlaneseq (!%p1650_p10)  ;;  %v2136_v3 = vmov (!%p1650_p10), 0   ;;  %v1651_v4 = vld [vmem:[#allocation8] ss:$0 sm:$0xff] (!%p1650_p10)  ;;  %vm509_vm0 = vcmask (!%p1650_p10), 1046528  }
  0x1f   : > { %s2243_s16 = scalar_lea.vmem %s3230_s15, %s1649_s27  ;;  %s2248_s19 = scalar_lea.vmem %s3221_s5, %s1648_s28  ;;  %2091 = vset.pattern.permute.xlu1 (!%p1650_p10), %v2136_v3  ;;  %2092 = vset.pattern.permute.xlu0 (!%p1650_p10), %v2136_v3  ;;  %v493_v6 = vld [vmem:[%s3224_s8] sm:$0x3] (!%p1650_p10)  ;;  %v490_v11 = vld [vmem:[%s3219_s3 + $0x8] sm:$0x7f] (!%p1650_p10)  ;;  %v491_v12 = vld [vmem:[%s3219_s3 + $0x10] sm:$0x7f] (!%p1650_p10) }
  0x20   : > { %v496_v2 = vshrl.u32 (!%p1650_p10), %v495_v1, 7  ;;  %v535_v5 = vand.u32 (!%p1650_p10), 127, %v495_v1  ;;  %527 = vperm.xlu1 (!%p1650_p10), %2091, %v1651_v4   ;;  %v489_v7 = vld [vmem:[%s3219_s3] sm:$0x7f] (!%p1650_p10)  ;;  %v492_v13 = vld [vmem:[%s3219_s3 + $0x18] sm:$0x7f] (!%p1650_p10) }
  0x21   : > { %v483_v26 = vld [vmem:[%s3217_s1] sm:$0x3] (!%p1650_p10)  ;;  %vm544_vm1 = vcmask (!%p1650_p10), 1041409   ;;  %vm547_vm2 = vcmask (!%p1650_p10), 50176  }
  0x22   : > { %v497_v8 = vsub.s32 (!%p1650_p10), 0, %v496_v2  ;;  %v501_v9 = vsub.s32 (!%p1650_p10), 1, %v496_v2  ;;  %v538_v10 = vsub.s32 (!%p1650_p10), %v535_v5, %v496_v2  ;;  %v485_v27 = vld [vmem:[%s3218_s2] sm:$0x3] (!%p1650_p10)  ;;  %484 = vst [vmem:[#allocation2] sm:$0x3] (!%p1650_p10), %v483_v26 }
  0x23   : > { %v487_v28 = vld [vmem:[%s3220_s4] sm:$0x3] (!%p1650_p10)  ;;  %486 = vst [vmem:[#allocation3] sm:$0x3] (!%p1650_p10), %v485_v27 }
  0x24   : > { %v498_v14 = vrot.slane %v493_v6, %v497_v8  ;;  %v502_v15 = vrot.slane %v493_v6, %v501_v9  ;;  %488 = vst [vmem:[#allocation4] sm:$0x3] %v487_v28 }
  0x26   : > { %v505_v16 = vmul.f32 %v498_v14, %v489_v7  ;;  %v506_v17 = vmul.f32 %v502_v15, %v490_v11  ;;  %v507_v18 = vmul.f32 %v498_v14, %v491_v12  ;;  %v508_v19 = vmul.f32 %v502_v15, %v492_v13 }
  0x28   : > { %v510_v20 = vsel %vm509_vm0, %v505_v16, 0.0  ;;  %v511_v21 = vsel %vm509_vm0, %v506_v17, 0.0  ;;  %v515_v22 = vsel %vm509_vm0, %v507_v18, 0.0  ;;  %v516_v23 = vsel %vm509_vm0, %v508_v19, 0.0 }
  0x29   : > { %v512_v24 = vadd.f32 %v511_v21, %v510_v20  ;;  %v517_v25 = vadd.f32 %v516_v23, %v515_v22 }
  0x2b   : > { %513 = vadd.xlane.f32.xlu0 %v512_v24 }
  0x2f   : > { %518 = vadd.xlane.f32.xlu0 %v517_v25 }
  0x9f   : > { %v528_v29 = vpop.permute.xlu1 %527 }
  0xb8   : > { %v514_v30 = vpop.xlane.xlu0 %513 }
  0xb9   : > { %v530_v31 = vadd.f32 %v528_v29, %v514_v30 }
  0xbb   : > { %v539_v34 = vrot.slane %v530_v31, %v538_v10 }
  0xbc   : > { %v519_v32 = vpop.xlane.xlu0 %518 }
  0xbd   : > { %v531_v33 = vadd.f32 %v528_v29, %v519_v32 }
  0xbf   : > { %v543_v35 = vrot.slane %v531_v33, %v538_v10 }
  0xc1   : > { %v545_v36 = vsel %vm544_vm1, %v543_v35, %v539_v34 }
  0xc2   : > { %548 = vst.msk [vmem:[#allocation5] sm:$0x3] %vm547_vm2, %v545_v36 }
  0xc3 PF: > { %v1652_v38 = vld [vmem:[%s3223_s7] ss:$0 sm:$0xff]  ;;  %vm560_vm3 = vcmask 1041408   ;;  %vm567_vm4 = vcmask 50176   ;;  %v832_v51 = vld [vmem:[%s3226_s11 + $0x8] sm:$0xff]  ;;  %v834_v53 = vld [vmem:[%s3226_s11 + $0x18] sm:$0xff] }
  0xc4   : > { %v836_v52 = vld [vmem:[%s3226_s11 + $0x28] sm:$0xff]  ;;  %v838_v55 = vld [vmem:[%s3226_s11 + $0x38] sm:$0xff]  ;;  %v831_v56 = vld [vmem:[%s3226_s11] sm:$0xff]  ;;  %v2137_v58 = vmov 0.0   ;;  %vm601_vm5 = vcmask 1046528   ;;  %vm634_vm6 = vcmask 1041409  }
  0xc5   : > { %v1765_v54 = vpack.c.bf16 %v836_v52, %v832_v51  ;;  %v835_v57 = vld [vmem:[%s3226_s11 + $0x20] sm:$0xff]  ;;  %959 = vmatprep.mubr.f32.mxu0 %v2137_v58  ;;  %1030 = vmatprep.mubr.f32.mxu1 %v2137_v58  ;;  %v1797_v59 = vpack.c.bf16 %v838_v55, %v834_v53  ;;  %v833_v61 = vld [vmem:[%s3226_s11 + $0x10] sm:$0xff]  ;;  %v840_v63 = vld [vmem:[%s3226_s11 + $0x48] sm:$0xff]  ;;  %vm2139_vm7 = vmmov 0  }
  0xc6   : > { %v1767_v60 = vpack.c.bf16 %v835_v57, %v831_v56  ;;  %v837_v62 = vld [vmem:[%s3226_s11 + $0x30] sm:$0xff]  ;;  %v844_v1 = vld [vmem:[%s3226_s11 + $0x68] sm:$0xff]  ;;  %v842_v2 = vld [vmem:[%s3226_s11 + $0x58] sm:$0xff] }
  0xc7   : > { %1766 = vmatprep.subr.bf16.mxu0 %v1765_v54  ;;  %v1799_v0 = vpack.c.bf16 %v837_v62, %v833_v61  ;;  %v846_v3 = vld [vmem:[%s3226_s11 + $0x78] sm:$0xff]  ;;  %1798 = vmatprep.subr.bf16.mxu1 %v1797_v59  ;;  %v1769_v4 = vpack.c.bf16 %v844_v1, %v840_v63  ;;  %v839_v6 = vld [vmem:[%s3226_s11 + $0x40] sm:$0xff]  ;;  %v841_v8 = vld [vmem:[%s3226_s11 + $0x50] sm:$0xff] }
  0xc8   : > { %v2275_v37 = vld [vmem:[#allocation2] sm:$0x3]  ;;  %1768 = vmatpush1.bf16.msra.mxu0 %v1767_v60  ;;  %v1801_v5 = vpack.c.bf16 %v846_v3, %v842_v2  ;;  %v845_v10 = vld [vmem:[%s3226_s11 + $0x70] sm:$0xff]  ;;  %v848_v11 = vld [vmem:[%s3226_s11 + $0x88] sm:$0xff] }
  0xc9   : > { %v559_v39 = vmul.f32 %v1652_v38, %v2275_v37  ;;  %v564_v41 = vld [vmem:[#allocation5] sm:$0x3]  ;;  %1800 = vmatpush1.bf16.msra.mxu1 %v1799_v0  ;;  %v852_v12 = vld [vmem:[%s3226_s11 + $0xa8] sm:$0xff]  ;;  %1770 = vmatprep.subr.bf16.mxu0 %v1769_v4  ;;  %v1803_v13 = vpack.c.bf16 %v845_v10, %v841_v8  ;;  %v850_v15 = vld [vmem:[%s3226_s11 + $0x98] sm:$0xff] }
  0xca   : > { %v843_v7 = vld [vmem:[%s3226_s11 + $0x60] sm:$0xff]  ;;  %1802 = vmatprep.subr.bf16.mxu1 %v1801_v5  ;;  %v1773_v14 = vpack.c.bf16 %v852_v12, %v848_v11  ;;  %v854_v16 = vld [vmem:[%s3226_s11 + $0xb8] sm:$0xff]  ;;  %v849_v20 = vld [vmem:[%s3226_s11 + $0x90] sm:$0xff] }
  0xcb   : > { %v561_v40 = vsel %vm560_vm3, %v559_v39, 0.0  ;;  %v1771_v9 = vpack.c.bf16 %v843_v7, %v839_v6  ;;  %v847_v17 = vld [vmem:[%s3226_s11 + $0x80] sm:$0xff]  ;;  %v1805_v18 = vpack.c.bf16 %v854_v16, %v850_v15  ;;  %v853_v21 = vld [vmem:[%s3226_s11 + $0xb0] sm:$0xff]  ;;  %v856_v23 = vld [vmem:[%s3226_s11 + $0xc8] sm:$0xff] }
  0xcc   : > { %562 = vadd.xlane.f32.xlu0 %v561_v40  ;;  %v851_v19 = vld [vmem:[%s3226_s11 + $0xa0] sm:$0xff]  ;;  %v860_v24 = vld [vmem:[%s3226_s11 + $0xe8] sm:$0xff]  ;;  %v858_v25 = vld [vmem:[%s3226_s11 + $0xd8] sm:$0xff]  ;;  %v1807_v26 = vpack.c.bf16 %v853_v21, %v849_v20 }
  0xcd   : > { %1772 = vmatpush1.bf16.msra.mxu0 %v1771_v9  ;;  %v1775_v22 = vpack.c.bf16 %v851_v19, %v847_v17  ;;  %1804 = vmatpush1.bf16.msra.mxu1 %v1803_v13  ;;  %v1777_v27 = vpack.c.bf16 %v860_v24, %v856_v23  ;;  %v862_v28 = vld [vmem:[%s3226_s11 + $0xf8] sm:$0xff]  ;;  %v855_v29 = vld [vmem:[%s3226_s11 + $0xc0] sm:$0xff]  ;;  %v857_v32 = vld [vmem:[%s3226_s11 + $0xd0] sm:$0xff] }
  0xce   : > { %1774 = vmatprep.subr.bf16.mxu0 %v1773_v14  ;;  %v859_v30 = vld [vmem:[%s3226_s11 + $0xe0] sm:$0xff]  ;;  %1806 = vmatprep.subr.bf16.mxu1 %v1805_v18  ;;  %v1809_v31 = vpack.c.bf16 %v862_v28, %v858_v25  ;;  %v861_v33 = vld [vmem:[%s3226_s11 + $0xf0] sm:$0xff]  ;;  %v864_v34 = vld [vmem:[%s3226_s11 + $0x108] sm:$0xff] }
  0xcf   : > { %v868_v35 = vld [vmem:[%s3226_s11 + $0x128] sm:$0xff]  ;;  %v866_v36 = vld [vmem:[%s3226_s11 + $0x118] sm:$0xff]  ;;  %v1779_v39 = vpack.c.bf16 %v859_v30, %v855_v29  ;;  %v1811_v40 = vpack.c.bf16 %v861_v33, %v857_v32  ;;  %v871_v55 = vld [vmem:[%s3226_s11 + $0x140] sm:$0xff] }
  0xd0   : > { %v870_v38 = vld [vmem:[%s3226_s11 + $0x138] sm:$0xff]  ;;  %v875_v56 = vld [vmem:[%s3226_s11 + $0x160] sm:$0xff]  ;;  %v873_v57 = vld [vmem:[%s3226_s11 + $0x150] sm:$0xff] }
  0xd1   : > { %1776 = vmatpush1.bf16.msra.mxu0 %v1775_v22  ;;  %1808 = vmatpush1.bf16.msra.mxu1 %v1807_v26  ;;  %v878_v51 = vld [vmem:[%s3226_s11 + $0x178] sm:$0xff]  ;;  %v877_v60 = vld [vmem:[%s3226_s11 + $0x170] sm:$0xff]  ;;  %v880_v61 = vld [vmem:[%s3226_s11 + $0x188] sm:$0xff]  ;;  %v1787_v1 = vpack.c.bf16 %v875_v56, %v871_v55 }
  0xd2   : > { %1778 = vmatprep.subr.bf16.mxu0 %v1777_v27  ;;  %1810 = vmatprep.subr.bf16.mxu1 %v1809_v31  ;;  %v884_v62 = vld [vmem:[%s3226_s11 + $0x1a8] sm:$0xff]  ;;  %v882_v63 = vld [vmem:[%s3226_s11 + $0x198] sm:$0xff]  ;;  %v1819_v2 = vpack.c.bf16 %v877_v60, %v873_v57  ;;  %v879_v4 = vld [vmem:[%s3226_s11 + $0x180] sm:$0xff] }
  0xd3   : > { %v886_v0 = vld [vmem:[%s3226_s11 + $0x1b8] sm:$0xff]  ;;  %v1789_v3 = vpack.c.bf16 %v884_v62, %v880_v61  ;;  %v883_v5 = vld [vmem:[%s3226_s11 + $0x1a0] sm:$0xff]  ;;  %v881_v6 = vld [vmem:[%s3226_s11 + $0x190] sm:$0xff] }
  0xd4   : > { %v1821_v7 = vpack.c.bf16 %v886_v0, %v882_v63  ;;  %v885_v8 = vld [vmem:[%s3226_s11 + $0x1b0] sm:$0xff]  ;;  %v888_v9 = vld [vmem:[%s3226_s11 + $0x1c8] sm:$0xff]  ;;  %v890_v11 = vld [vmem:[%s3226_s11 + $0x1d8] sm:$0xff]  ;;  %v1791_v13 = vpack.c.bf16 %v883_v5, %v879_v4 }
  0xd5   : > { %1780 = vmatpush1.bf16.msra.mxu0 %v1779_v39  ;;  %1812 = vmatpush1.bf16.msra.mxu1 %v1811_v40  ;;  %v892_v10 = vld [vmem:[%s3226_s11 + $0x1e8] sm:$0xff]  ;;  %v894_v12 = vld [vmem:[%s3226_s11 + $0x1f8] sm:$0xff]  ;;  %v1823_v14 = vpack.c.bf16 %v885_v8, %v881_v6  ;;  %v887_v16 = vld [vmem:[%s3226_s11 + $0x1c0] sm:$0xff] }
  0xd6   : > { %v1793_v15 = vpack.c.bf16 %v892_v10, %v888_v9  ;;  %v891_v17 = vld [vmem:[%s3226_s11 + $0x1e0] sm:$0xff]  ;;  %v889_v18 = vld [vmem:[%s3226_s11 + $0x1d0] sm:$0xff]  ;;  %v1825_v19 = vpack.c.bf16 %v894_v12, %v890_v11  ;;  %v640_v21 = vld [vmem:[%s3225_s10 + $0x8] sm:$0xff] }
  0xd7   : > { %v893_v20 = vld [vmem:[%s3226_s11 + $0x1f0] sm:$0xff]  ;;  %v644_v22 = vld [vmem:[%s3225_s10 + $0x28] sm:$0xff]  ;;  %v642_v23 = vld [vmem:[%s3225_s10 + $0x18] sm:$0xff]  ;;  %v1795_v25 = vpack.c.bf16 %v891_v17, %v887_v16 }
  0xd8   : > { %v646_v24 = vld [vmem:[%s3225_s10 + $0x38] sm:$0xff]  ;;  %v1827_v26 = vpack.c.bf16 %v893_v20, %v889_v18  ;;  %v1829_v27 = vpack.c.bf16 %v644_v22, %v640_v21  ;;  %v639_v28 = vld [vmem:[%s3225_s10] sm:$0xff]  ;;  %v641_v30 = vld [vmem:[%s3225_s10 + $0x10] sm:$0xff] }
  0xd9   : > { %v643_v29 = vld [vmem:[%s3225_s10 + $0x20] sm:$0xff]  ;;  %v1925_v31 = vpack.c.bf16 %v646_v24, %v642_v23  ;;  %v645_v32 = vld [vmem:[%s3225_s10 + $0x30] sm:$0xff]  ;;  %v648_v33 = vld [vmem:[%s3225_s10 + $0x48] sm:$0xff] }
  0xda   : > { %v1927_v39 = vpack.c.bf16 %v645_v32, %v641_v30  ;;  %v659_v55 = vld [vmem:[%s3225_s10 + $0xa0] sm:$0xff]  ;;  %v657_v56 = vld [vmem:[%s3225_s10 + $0x90] sm:$0xff]  ;;  %v668_v60 = vld [vmem:[%s3225_s10 + $0xe8] sm:$0xff] }
  0xdb   : > { %v661_v57 = vld [vmem:[%s3225_s10 + $0xb0] sm:$0xff]  ;;  %v666_v61 = vld [vmem:[%s3225_s10 + $0xd8] sm:$0xff]  ;;  %v676_v8 = vld [vmem:[%s3225_s10 + $0x128] sm:$0xff] }
  0xdc   : > { %v670_v62 = vld [vmem:[%s3225_s10 + $0xf8] sm:$0xff]  ;;  %v1935_v0 = vpack.c.bf16 %v661_v57, %v657_v56  ;;  %v665_v4 = vld [vmem:[%s3225_s10 + $0xd0] sm:$0xff]  ;;  %v684_v20 = vld [vmem:[%s3225_s10 + $0x168] sm:$0xff] }
  0xdd   : > { %v1937_v5 = vpack.c.bf16 %v670_v62, %v666_v61  ;;  %v669_v6 = vld [vmem:[%s3225_s10 + $0xf0] sm:$0xff]  ;;  %v674_v9 = vld [vmem:[%s3225_s10 + $0x118] sm:$0xff]  ;;  %v692_v32 = vld [vmem:[%s3225_s10 + $0x1a8] sm:$0xff] }
  0xde   : > { %v678_v10 = vld [vmem:[%s3225_s10 + $0x138] sm:$0xff]  ;;  %v1939_v12 = vpack.c.bf16 %v669_v6, %v665_v4  ;;  %v673_v16 = vld [vmem:[%s3225_s10 + $0x110] sm:$0xff]  ;;  %v708_v57 = vld [vmem:[%s3225_s10 + $0x228] sm:$0xff] }
  0xdf   : > { %v1941_v17 = vpack.c.bf16 %v678_v10, %v674_v9  ;;  %v677_v18 = vld [vmem:[%s3225_s10 + $0x130] sm:$0xff]  ;;  %v682_v21 = vld [vmem:[%s3225_s10 + $0x158] sm:$0xff]  ;;  %v716_v6 = vld [vmem:[%s3225_s10 + $0x268] sm:$0xff] }
  0xe0   : > { %v686_v22 = vld [vmem:[%s3225_s10 + $0x178] sm:$0xff]  ;;  %v1943_v24 = vpack.c.bf16 %v677_v18, %v673_v16  ;;  %v685_v30 = vld [vmem:[%s3225_s10 + $0x170] sm:$0xff]  ;;  %v724_v18 = vld [vmem:[%s3225_s10 + $0x2a8] sm:$0xff] }
  0xe1   : > { %v701_v56 = vld [vmem:[%s3225_s10 + $0x1f0] sm:$0xff] }
  0xe2   : > { %v709_v4 = vld [vmem:[%s3225_s10 + $0x230] sm:$0xff] }
  0xe3   : > { %v717_v16 = vld [vmem:[%s3225_s10 + $0x270] sm:$0xff] }
 0x159   : > { %v563_v42 = vpop.xlane.xlu0 %562 }
 0x15a   : > { %v565_v43 = vadd.f32 %v564_v41, %v563_v42  ;;  %v1781_v41 = vpack.c.bf16 %v868_v35, %v864_v34  ;;  %v863_v42 = vld [vmem:[%s3226_s11 + $0x100] sm:$0xff]  ;;  %v652_v34 = vld [vmem:[%s3225_s10 + $0x68] sm:$0xff]  ;;  %v650_v35 = vld [vmem:[%s3225_s10 + $0x58] sm:$0xff] }
 0x15b   : > { %v1833_v40 = vpack.c.bf16 %v652_v34, %v648_v33  ;;  %v690_v33 = vld [vmem:[%s3225_s10 + $0x198] sm:$0xff] }
 0x15c   : > { %v566_v44 = vmax.f32 %v565_v43, 0.0  ;;  %v867_v43 = vld [vmem:[%s3226_s11 + $0x120] sm:$0xff]  ;;  %1782 = vmatprep.subr.bf16.mxu0 %v1781_v41  ;;  %v694_v34 = vld [vmem:[%s3225_s10 + $0x1b8] sm:$0xff] }
 0x15d   : > { %v1783_v52 = vpack.c.bf16 %v867_v43, %v863_v42  ;;  %v647_v41 = vld [vmem:[%s3225_s10 + $0x40] sm:$0xff]  ;;  %v649_v43 = vld [vmem:[%s3225_s10 + $0x50] sm:$0xff] }
 0x15e   : > { %v568_v45 = vsel %vm567_vm4, %v566_v44, -inf  ;;  %v651_v42 = vld [vmem:[%s3225_s10 + $0x60] sm:$0xff] }
 0x15f   : > { %569 = vmax.xlane.f32.xlu0 %v568_v45  ;;  %v1813_v45 = vpack.c.bf16 %v870_v38, %v866_v36  ;;  %1784 = vmatpush1.bf16.msra.mxu0 %v1783_v52  ;;  %v654_v36 = vld [vmem:[%s3225_s10 + $0x78] sm:$0xff]  ;;  %v1831_v38 = vpack.c.bf16 %v643_v29, %v639_v28  ;;  %v681_v28 = vld [vmem:[%s3225_s10 + $0x150] sm:$0xff]  ;;  %v1945_v29 = vpack.c.bf16 %v686_v22, %v682_v21 }
 0x161   : > { %1814 = vmatprep.subr.bf16.mxu1 %v1813_v45  ;;  %v653_v45 = vld [vmem:[%s3225_s10 + $0x70] sm:$0xff] }
 0x162   : > { %v1931_v52 = vpack.c.bf16 %v653_v45, %v649_v43  ;;  %v693_v43 = vld [vmem:[%s3225_s10 + $0x1b0] sm:$0xff]  ;;  %v700_v45 = vld [vmem:[%s3225_s10 + $0x1e8] sm:$0xff] }
 0x1ec   : > { %v570_v46 = vpop.xlane.xlu0 %569 }
 0x1ed   : > { %v571_v47 = vsub.f32 %v566_v44, %v570_v46  ;;  %v865_v44 = vld [vmem:[%s3226_s11 + $0x110] sm:$0xff] }
 0x1ee   : > { %v869_v46 = vld [vmem:[%s3226_s11 + $0x130] sm:$0xff] }
 0x1ef   : > { %v572_v48 = vmul.f32 1.442695, %v571_v47  ;;  %v872_v47 = vld [vmem:[%s3226_s11 + $0x148] sm:$0xff]  ;;  %v1815_v53 = vpack.c.bf16 %v869_v46, %v865_v44  ;;  %v1929_v44 = vpack.c.bf16 %v654_v36, %v650_v35  ;;  %v1947_v36 = vpack.c.bf16 %v685_v30, %v681_v28  ;;  %v725_v28 = vld [vmem:[%s3225_s10 + $0x2b0] sm:$0xff] }
 0x1f0   : > { %v656_v46 = vld [vmem:[%s3225_s10 + $0x88] sm:$0xff] }
 0x1f1   : > { %2093 = vpow2.f32 %v572_v48  ;;  %v876_v48 = vld [vmem:[%s3226_s11 + $0x168] sm:$0xff]  ;;  %1816 = vmatpush1.bf16.msra.mxu1 %v1815_v53 }
 0x1f2   : > { %v1785_v54 = vpack.c.bf16 %v876_v48, %v872_v47  ;;  %v660_v47 = vld [vmem:[%s3225_s10 + $0xa8] sm:$0xff]  ;;  %v658_v48 = vld [vmem:[%s3225_s10 + $0x98] sm:$0xff] }
 0x1f3   : > { %v1837_v53 = vpack.c.bf16 %v660_v47, %v656_v46  ;;  %v698_v46 = vld [vmem:[%s3225_s10 + $0x1d8] sm:$0xff]  ;;  %v732_v30 = vld [vmem:[%s3225_s10 + $0x2e8] sm:$0xff] }
 0x1f4   : > { %1786 = vmatprep.subr.bf16.mxu0 %v1785_v54  ;;  %v655_v54 = vld [vmem:[%s3225_s10 + $0x80] sm:$0xff]  ;;  %v702_v47 = vld [vmem:[%s3225_s10 + $0x1f8] sm:$0xff] }
 0x1f5   : > { %1788 = vmatpush1.bf16.msra.mxu0 %v1787_v1  ;;  %v1839_v63 = vpack.c.bf16 %v659_v55, %v655_v54  ;;  %v697_v54 = vld [vmem:[%s3225_s10 + $0x1d0] sm:$0xff]  ;;  %v1953_v55 = vpack.c.bf16 %v702_v47, %v698_v46  ;;  %v740_v46 = vld [vmem:[%s3225_s10 + $0x328] sm:$0xff]  ;;  %v738_v47 = vld [vmem:[%s3225_s10 + $0x318] sm:$0xff] }
 0x1f6   : > { %1790 = vmatprep.subr.bf16.mxu0 %v1789_v3  ;;  %v667_v3 = vld [vmem:[%s3225_s10 + $0xe0] sm:$0xff]  ;;  %v1955_v62 = vpack.c.bf16 %v701_v56, %v697_v54  ;;  %v737_v56 = vld [vmem:[%s3225_s10 + $0x310] sm:$0xff] }
 0x1f9   : > { %1792 = vmatpush1.bf16.msra.mxu0 %v1791_v13 }
 0x1fa   : > { %1794 = vmatprep.subr.bf16.mxu0 %v1793_v15  ;;  %v675_v15 = vld [vmem:[%s3225_s10 + $0x120] sm:$0xff] }
 0x1fb   : > { %v2282_v49 = vpop.eup %2093 }
 0x1fc   : > { %v574_v50 = vsel %vm567_vm4, %v2282_v49, 0.0 }
 0x1fd   : > { %575 = vadd.xlane.f32.xlu1 %v574_v50  ;;  %v874_v50 = vld [vmem:[%s3226_s11 + $0x158] sm:$0xff]  ;;  %1796 = vmatpush1.bf16.msra.mxu0 %v1795_v25 }
 0x1fe   : > { %v1817_v59 = vpack.c.bf16 %v878_v51, %v874_v50  ;;  %1830 = vmatprep.subr.bf16.mxu0 %v1829_v27  ;;  %v662_v50 = vld [vmem:[%s3225_s10 + $0xb8] sm:$0xff]  ;;  %v1835_v51 = vpack.c.bf16 %v651_v42, %v647_v41  ;;  %v683_v27 = vld [vmem:[%s3225_s10 + $0x160] sm:$0xff]  ;;  %v689_v41 = vld [vmem:[%s3225_s10 + $0x190] sm:$0xff]  ;;  %v1949_v42 = vpack.c.bf16 %v694_v34, %v690_v33 }
 0x200   : > { %1818 = vmatprep.subr.bf16.mxu1 %v1817_v59  ;;  %960 = vmatmul.mubr.f32.vlgmr.msra.gmra.mrb[0].mxu0 %v2275_v37  ;;  %v664_v59 = vld [vmem:[%s3225_s10 + $0xc8] sm:$0xff] }
 0x201   : > { %1820 = vmatpush1.bf16.msra.mxu1 %v1819_v2  ;;  %1832 = vmatpush1.bf16.msra.mxu0 %v1831_v38  ;;  %v1841_v1 = vpack.c.bf16 %v668_v60, %v664_v59  ;;  %v663_v2 = vld [vmem:[%s3225_s10 + $0xc0] sm:$0xff]  ;;  %v706_v59 = vld [vmem:[%s3225_s10 + $0x218] sm:$0xff] }
 0x202   : > { %1822 = vmatprep.subr.bf16.mxu1 %v1821_v7  ;;  %1834 = vmatprep.subr.bf16.mxu0 %v1833_v40  ;;  %v672_v7 = vld [vmem:[%s3225_s10 + $0x108] sm:$0xff]  ;;  %v1843_v11 = vpack.c.bf16 %v667_v3, %v663_v2  ;;  %v691_v40 = vld [vmem:[%s3225_s10 + $0x1a0] sm:$0xff]  ;;  %v710_v60 = vld [vmem:[%s3225_s10 + $0x238] sm:$0xff] }
 0x203   : > { %v1845_v13 = vpack.c.bf16 %v676_v8, %v672_v7  ;;  %v705_v2 = vld [vmem:[%s3225_s10 + $0x210] sm:$0xff]  ;;  %v1957_v3 = vpack.c.bf16 %v710_v60, %v706_v59  ;;  %v714_v7 = vld [vmem:[%s3225_s10 + $0x258] sm:$0xff]  ;;  %v744_v59 = vld [vmem:[%s3225_s10 + $0x348] sm:$0xff] }
 0x204   : > { %v718_v8 = vld [vmem:[%s3225_s10 + $0x278] sm:$0xff]  ;;  %v1959_v10 = vpack.c.bf16 %v709_v4, %v705_v2  ;;  %v748_v60 = vld [vmem:[%s3225_s10 + $0x368] sm:$0xff] }
 0x205   : > { %1824 = vmatpush1.bf16.msra.mxu1 %v1823_v14  ;;  %1836 = vmatpush1.bf16.msra.mxu0 %v1835_v51  ;;  %v671_v14 = vld [vmem:[%s3225_s10 + $0x100] sm:$0xff] }
 0x206   : > { %1826 = vmatprep.subr.bf16.mxu1 %v1825_v19  ;;  %1838 = vmatprep.subr.bf16.mxu0 %v1837_v53  ;;  %v680_v19 = vld [vmem:[%s3225_s10 + $0x148] sm:$0xff]  ;;  %v1847_v23 = vpack.c.bf16 %v675_v15, %v671_v14  ;;  %v699_v53 = vld [vmem:[%s3225_s10 + $0x1e0] sm:$0xff]  ;;  %v713_v14 = vld [vmem:[%s3225_s10 + $0x250] sm:$0xff]  ;;  %v1961_v15 = vpack.c.bf16 %v718_v8, %v714_v7 }
 0x207   : > { %v1849_v25 = vpack.c.bf16 %v684_v20, %v680_v19  ;;  %v722_v19 = vld [vmem:[%s3225_s10 + $0x298] sm:$0xff]  ;;  %v1963_v22 = vpack.c.bf16 %v717_v16, %v713_v14  ;;  %v752_v8 = vld [vmem:[%s3225_s10 + $0x388] sm:$0xff]  ;;  %v755_v14 = vld [vmem:[%s3225_s10 + $0x3a0] sm:$0xff] }
 0x208   : > { %v726_v20 = vld [vmem:[%s3225_s10 + $0x2b8] sm:$0xff] }
 0x209   : > { %1828 = vmatpush1.bf16.msra.mxu1 %v1827_v26  ;;  %1840 = vmatpush1.bf16.msra.mxu0 %v1839_v63  ;;  %v679_v26 = vld [vmem:[%s3225_s10 + $0x140] sm:$0xff] }
 0x20a   : > { %1926 = vmatprep.subr.bf16.mxu1 %v1925_v31  ;;  %1842 = vmatprep.subr.bf16.mxu0 %v1841_v1  ;;  %v688_v31 = vld [vmem:[%s3225_s10 + $0x188] sm:$0xff]  ;;  %v1851_v35 = vpack.c.bf16 %v683_v27, %v679_v26  ;;  %v707_v1 = vld [vmem:[%s3225_s10 + $0x220] sm:$0xff]  ;;  %v721_v26 = vld [vmem:[%s3225_s10 + $0x290] sm:$0xff]  ;;  %v1965_v27 = vpack.c.bf16 %v726_v20, %v722_v19 }
 0x20b   : > { %v1853_v38 = vpack.c.bf16 %v692_v32, %v688_v31  ;;  %v730_v31 = vld [vmem:[%s3225_s10 + $0x2d8] sm:$0xff]  ;;  %v1967_v34 = vpack.c.bf16 %v725_v28, %v721_v26  ;;  %v753_v19 = vld [vmem:[%s3225_s10 + $0x390] sm:$0xff] }
 0x20c   : > { %1031 = vmatmul.mubr.f32.vlgmr.msra.gmra.mrb[0].mxu1 %v2275_v37  ;;  %v1933_v37 = vpack.c.bf16 %v662_v50, %v658_v48  ;;  %v1951_v50 = vpack.c.bf16 %v693_v43, %v689_v41  ;;  %v734_v32 = vld [vmem:[%s3225_s10 + $0x2f8] sm:$0xff]  ;;  %v733_v41 = vld [vmem:[%s3225_s10 + $0x2f0] sm:$0xff] }
 0x20d   : > { %1928 = vmatpush1.bf16.msra.mxu1 %v1927_v39  ;;  %1844 = vmatpush1.bf16.msra.mxu0 %v1843_v11  ;;  %v687_v39 = vld [vmem:[%s3225_s10 + $0x180] sm:$0xff]  ;;  %v757_v20 = vld [vmem:[%s3225_s10 + $0x3b0] sm:$0xff]  ;;  %v762_v26 = vld [vmem:[%s3225_s10 + $0x3d8] sm:$0xff] }
 0x20e   : > { %1930 = vmatprep.subr.bf16.mxu1 %v1929_v44  ;;  %1846 = vmatprep.subr.bf16.mxu0 %v1845_v13  ;;  %v696_v44 = vld [vmem:[%s3225_s10 + $0x1c8] sm:$0xff]  ;;  %v1855_v48 = vpack.c.bf16 %v691_v40, %v687_v39  ;;  %v715_v13 = vld [vmem:[%s3225_s10 + $0x260] sm:$0xff]  ;;  %v1969_v39 = vpack.c.bf16 %v734_v32, %v730_v31  ;;  %v729_v40 = vld [vmem:[%s3225_s10 + $0x2d0] sm:$0xff] }
 0x20f   : > { %v1857_v51 = vpack.c.bf16 %v700_v45, %v696_v44  ;;  %v1971_v43 = vpack.c.bf16 %v733_v41, %v729_v40  ;;  %v736_v45 = vld [vmem:[%s3225_s10 + $0x308] sm:$0xff]  ;;  %v766_v28 = vld [vmem:[%s3225_s10 + $0x3f8] sm:$0xff] }
 0x210   : > { %v1985_v32 = vpack.c.bf16 %v766_v28, %v762_v26  ;;  %v770_v40 = vld [vmem:[%s3225_s10 + $0x418] sm:$0xff] }
 0x211   : > { %1932 = vmatpush1.bf16.msra.mxu1 %v1931_v52  ;;  %1848 = vmatpush1.bf16.msra.mxu0 %v1847_v23  ;;  %v695_v52 = vld [vmem:[%s3225_s10 + $0x1c0] sm:$0xff]  ;;  %v782_v26 = vld [vmem:[%s3225_s10 + $0x478] sm:$0xff] }
 0x212   : > { %1934 = vmatprep.subr.bf16.mxu1 %v1933_v37  ;;  %1850 = vmatprep.subr.bf16.mxu0 %v1849_v25  ;;  %v704_v37 = vld [vmem:[%s3225_s10 + $0x208] sm:$0xff]  ;;  %v1859_v61 = vpack.c.bf16 %v699_v53, %v695_v52  ;;  %v723_v25 = vld [vmem:[%s3225_s10 + $0x2a0] sm:$0xff]  ;;  %v579_v53 = vlaneseq }
 0x213   : > { %v1861_v63 = vpack.c.bf16 %v708_v57, %v704_v37  ;;  %v739_v52 = vld [vmem:[%s3225_s10 + $0x320] sm:$0xff]  ;;  %v741_v37 = vld [vmem:[%s3225_s10 + $0x330] sm:$0xff] }
 0x214   : > { %v1975_v57 = vpack.c.bf16 %v741_v37, %v737_v56  ;;  %v2812_v2 = vshrl.u32 %v579_v53, 7 }
 0x215   : > { %1936 = vmatpush1.bf16.msra.mxu1 %v1935_v0  ;;  %1852 = vmatpush1.bf16.msra.mxu0 %v1851_v35  ;;  %v703_v0 = vld [vmem:[%s3225_s10 + $0x200] sm:$0xff] }
 0x216   : > { %1938 = vmatprep.subr.bf16.mxu1 %v1937_v5  ;;  %1854 = vmatprep.subr.bf16.mxu0 %v1853_v38  ;;  %v712_v5 = vld [vmem:[%s3225_s10 + $0x248] sm:$0xff]  ;;  %v1863_v9 = vpack.c.bf16 %v707_v1, %v703_v0  ;;  %v731_v38 = vld [vmem:[%s3225_s10 + $0x2e0] sm:$0xff]  ;;  %v581_v16 = vsub.s32 0, %v2812_v2 }
 0x217   : > { %v1865_v11 = vpack.c.bf16 %v716_v6, %v712_v5  ;;  %v743_v0 = vld [vmem:[%s3225_s10 + $0x340] sm:$0xff]  ;;  %v745_v5 = vld [vmem:[%s3225_s10 + $0x350] sm:$0xff] }
 0x218   : > { %v747_v1 = vld [vmem:[%s3225_s10 + $0x360] sm:$0xff]  ;;  %v749_v6 = vld [vmem:[%s3225_s10 + $0x370] sm:$0xff] }
 0x219   : > { %1940 = vmatpush1.bf16.msra.mxu1 %v1939_v12  ;;  %1856 = vmatpush1.bf16.msra.mxu0 %v1855_v48  ;;  %v711_v12 = vld [vmem:[%s3225_s10 + $0x240] sm:$0xff]  ;;  %v1877_v48 = vpack.c.bf16 %v740_v46, %v736_v45  ;;  %v1883_v4 = vpack.c.bf16 %v747_v1, %v743_v0  ;;  %v1979_v7 = vpack.c.bf16 %v749_v6, %v745_v5  ;;  %v596_v45 = vld [vmem:[%s3219_s3 + $0x18] sm:$0x7f] }
 0x21a   : > { %1942 = vmatprep.subr.bf16.mxu1 %v1941_v17  ;;  %1858 = vmatprep.subr.bf16.mxu0 %v1857_v51  ;;  %v720_v17 = vld [vmem:[%s3225_s10 + $0x288] sm:$0xff]  ;;  %v1867_v21 = vpack.c.bf16 %v715_v13, %v711_v12  ;;  %v735_v51 = vld [vmem:[%s3225_s10 + $0x300] sm:$0xff]  ;;  %v758_v12 = vld [vmem:[%s3225_s10 + $0x3b8] sm:$0xff] }
 0x21b   : > { %v1869_v23 = vpack.c.bf16 %v724_v18, %v720_v17  ;;  %v751_v13 = vld [vmem:[%s3225_s10 + $0x380] sm:$0xff] }
 0x21c   : > { %v1887_v18 = vpack.c.bf16 %v755_v14, %v751_v13  ;;  %v593_v46 = vld [vmem:[%s3219_s3] sm:$0x7f] }
 0x21d   : > { %1944 = vmatpush1.bf16.msra.mxu1 %v1943_v24  ;;  %1860 = vmatpush1.bf16.msra.mxu0 %v1859_v61  ;;  %v719_v24 = vld [vmem:[%s3225_s10 + $0x280] sm:$0xff]  ;;  %v746_v61 = vld [vmem:[%s3225_s10 + $0x358] sm:$0xff] }
 0x21e   : > { %1946 = vmatprep.subr.bf16.mxu1 %v1945_v29  ;;  %1862 = vmatprep.subr.bf16.mxu0 %v1861_v63  ;;  %v728_v29 = vld [vmem:[%s3225_s10 + $0x2c8] sm:$0xff]  ;;  %v1871_v33 = vpack.c.bf16 %v723_v25, %v719_v24  ;;  %v750_v63 = vld [vmem:[%s3225_s10 + $0x378] sm:$0xff]  ;;  %v767_v13 = vld [vmem:[%s3225_s10 + $0x400] sm:$0xff] }
 0x21f   : > { %v1873_v35 = vpack.c.bf16 %v732_v30, %v728_v29  ;;  %v760_v24 = vld [vmem:[%s3225_s10 + $0x3c8] sm:$0xff]  ;;  %v763_v29 = vld [vmem:[%s3225_s10 + $0x3e0] sm:$0xff] }
 0x220   : > { %v764_v25 = vld [vmem:[%s3225_s10 + $0x3e8] sm:$0xff]  ;;  %v771_v14 = vld [vmem:[%s3225_s10 + $0x420] sm:$0xff] }
 0x221   : > { %1948 = vmatpush1.bf16.msra.mxu1 %v1947_v36  ;;  %1864 = vmatpush1.bf16.msra.mxu0 %v1863_v9  ;;  %v727_v36 = vld [vmem:[%s3225_s10 + $0x2c0] sm:$0xff]  ;;  %v756_v9 = vld [vmem:[%s3225_s10 + $0x3a8] sm:$0xff] }
 0x222   : > { %1950 = vmatprep.subr.bf16.mxu1 %v1949_v42  ;;  %1866 = vmatprep.subr.bf16.mxu0 %v1865_v11  ;;  %v1875_v42 = vpack.c.bf16 %v731_v38, %v727_v36  ;;  %v1885_v11 = vpack.c.bf16 %v756_v9, %v752_v8  ;;  %v768_v38 = vld [vmem:[%s3225_s10 + $0x408] sm:$0xff] }
 0x225   : > { %1952 = vmatpush1.bf16.msra.mxu1 %v1951_v50  ;;  %1868 = vmatpush1.bf16.msra.mxu0 %v1867_v21  ;;  %v742_v50 = vld [vmem:[%s3225_s10 + $0x338] sm:$0xff] }
 0x226   : > { %1954 = vmatprep.subr.bf16.mxu1 %v1953_v55  ;;  %1870 = vmatprep.subr.bf16.mxu0 %v1869_v23  ;;  %v1973_v54 = vpack.c.bf16 %v742_v50, %v738_v47  ;;  %v1879_v55 = vpack.c.bf16 %v739_v52, %v735_v51  ;;  %v594_v47 = vld [vmem:[%s3219_s3 + $0x8] sm:$0x7f] }
 0x229   : > { %1956 = vmatpush1.bf16.msra.mxu1 %v1955_v62  ;;  %1872 = vmatpush1.bf16.msra.mxu0 %v1871_v33  ;;  %v1881_v62 = vpack.c.bf16 %v748_v60, %v744_v59 }
 0x22a   : > { %1958 = vmatprep.subr.bf16.mxu1 %v1957_v3  ;;  %1874 = vmatprep.subr.bf16.mxu0 %v1873_v35  ;;  %v1977_v3 = vpack.c.bf16 %v750_v63, %v746_v61  ;;  %v765_v35 = vld [vmem:[%s3225_s10 + $0x3f0] sm:$0xff] }
 0x22d   : > { %1960 = vmatpush1.bf16.msra.mxu1 %v1959_v10  ;;  %1876 = vmatpush1.bf16.msra.mxu0 %v1875_v42  ;;  %v754_v10 = vld [vmem:[%s3225_s10 + $0x398] sm:$0xff] }
 0x22e   : > { %1962 = vmatprep.subr.bf16.mxu1 %v1961_v15  ;;  %1878 = vmatprep.subr.bf16.mxu0 %v1877_v48  ;;  %v588_v15 = vsub.s32 1, %v2812_v2  ;;  %v1981_v17 = vpack.c.bf16 %v758_v12, %v754_v10  ;;  %v774_v42 = vld [vmem:[%s3225_s10 + $0x438] sm:$0xff] }
 0x231   : > { %1964 = vmatpush1.bf16.msra.mxu1 %v1963_v22  ;;  %1880 = vmatpush1.bf16.msra.mxu0 %v1879_v55  ;;  %v1983_v22 = vpack.c.bf16 %v757_v20, %v753_v19 }
 0x232   : > { %1966 = vmatprep.subr.bf16.mxu1 %v1965_v27  ;;  %1882 = vmatprep.subr.bf16.mxu0 %v1881_v62  ;;  %v1889_v27 = vpack.c.bf16 %v764_v25, %v760_v24  ;;  %v780_v24 = vld [vmem:[%s3225_s10 + $0x468] sm:$0xff]  ;;  %v778_v25 = vld [vmem:[%s3225_s10 + $0x458] sm:$0xff] }
 0x235   : > { %1968 = vmatpush1.bf16.msra.mxu1 %v1967_v34  ;;  %1884 = vmatpush1.bf16.msra.mxu0 %v1883_v4  ;;  %v761_v34 = vld [vmem:[%s3225_s10 + $0x3d0] sm:$0xff] }
 0x236   : > { %1970 = vmatprep.subr.bf16.mxu1 %v1969_v39  ;;  %1886 = vmatprep.subr.bf16.mxu0 %v1885_v11  ;;  %v1987_v36 = vpack.c.bf16 %v765_v35, %v761_v34  ;;  %v772_v39 = vld [vmem:[%s3225_s10 + $0x428] sm:$0xff] }
 0x237   : > { %v1893_v41 = vpack.c.bf16 %v772_v39, %v768_v38  ;;  %v1993_v38 = vpack.c.bf16 %v782_v26, %v778_v25  ;;  %v777_v39 = vld [vmem:[%s3225_s10 + $0x450] sm:$0xff]  ;;  %v811_v25 = vld [vmem:[%s3225_s10 + $0x560] sm:$0xff] }
 0x239   : > { %1972 = vmatpush1.bf16.msra.mxu1 %v1971_v43  ;;  %1888 = vmatpush1.bf16.msra.mxu0 %v1887_v18  ;;  %v1989_v43 = vpack.c.bf16 %v774_v42, %v770_v40  ;;  %v781_v40 = vld [vmem:[%s3225_s10 + $0x470] sm:$0xff]  ;;  %v788_v42 = vld [vmem:[%s3225_s10 + $0x4a8] sm:$0xff] }
 0x23a   : > { %1974 = vmatprep.subr.bf16.mxu1 %v1973_v54  ;;  %1890 = vmatprep.subr.bf16.mxu0 %v1889_v27 }
 0x23d   : > { %1976 = vmatpush1.bf16.msra.mxu1 %v1975_v57 }
 0x23e   : > { %1978 = vmatprep.subr.bf16.mxu1 %v1977_v3 }
 0x241   : > { %1980 = vmatpush1.bf16.msra.mxu1 %v1979_v7 }
 0x242   : > { %1982 = vmatprep.subr.bf16.mxu1 %v1981_v17  ;;  %v769_v17 = vld [vmem:[%s3225_s10 + $0x410] sm:$0xff] }
 0x245   : > { %1984 = vmatpush1.bf16.msra.mxu1 %v1983_v22  ;;  %v773_v22 = vld [vmem:[%s3225_s10 + $0x430] sm:$0xff] }
 0x246   : > { %1986 = vmatprep.subr.bf16.mxu1 %v1985_v32  ;;  %v775_v32 = vld [vmem:[%s3225_s10 + $0x440] sm:$0xff] }
 0x249   : > { %1988 = vmatpush1.bf16.msra.mxu1 %v1987_v36 }
 0x24a   : > { %1990 = vmatprep.subr.bf16.mxu1 %v1989_v43  ;;  %v786_v43 = vld [vmem:[%s3225_s10 + $0x498] sm:$0xff] }
 0x28a   : > { %v576_v44 = vpop.xlane.xlu1 %575 }
 0x28b   : > { %2095 = vrcp.f32 %v576_v44  ;;  %v595_v44 = vld [vmem:[%s3219_s3 + $0x10] sm:$0x7f] }
 0x295   : > { %v2096_v21 = vpop.eup %2095 }
 0x296   : > { %v578_v23 = vmul.f32 %v2096_v21, %v2282_v49  ;;  %v759_v49 = vld [vmem:[%s3225_s10 + $0x3c0] sm:$0xff] }
 0x297   : > { %v1891_v33 = vpack.c.bf16 %v763_v29, %v759_v49 }
 0x298   : > { %v589_v30 = vrot.slane %v578_v23, %v588_v15  ;;  %v582_v31 = vrot.slane %v578_v23, %v581_v16  ;;  %v776_v23 = vld [vmem:[%s3225_s10 + $0x448] sm:$0xff] }
 0x299   : > { %1892 = vmatpush1.bf16.msra.mxu0 %v1891_v33  ;;  %v779_v33 = vld [vmem:[%s3225_s10 + $0x460] sm:$0xff]  ;;  %v1897_v36 = vpack.c.bf16 %v780_v24, %v776_v23 }
 0x29a   : > { %591 = vbcast.lane.b32.xlu0 %v589_v30, 256  ;;  %584 = vbcast.lane.b32.xlu1 %v582_v31, 256  ;;  %v1895_v30 = vpack.c.bf16 %v771_v14, %v767_v13  ;;  %v1991_v31 = vpack.c.bf16 %v773_v22, %v769_v17  ;;  %v801_v14 = vld [vmem:[%s3225_s10 + $0x510] sm:$0xff]  ;;  %v807_v24 = vld [vmem:[%s3225_s10 + $0x540] sm:$0xff] }
 0x29b   : > { %1894 = vmatprep.subr.bf16.mxu0 %v1893_v41  ;;  %v784_v41 = vld [vmem:[%s3225_s10 + $0x488] sm:$0xff]  ;;  %v805_v17 = vld [vmem:[%s3225_s10 + $0x530] sm:$0xff] }
 0x29c   : > { %v2007_v23 = vpack.c.bf16 %v805_v17, %v801_v14  ;;  %v1385_v14 = vld [vmem:[%s3228_s13 + $0x60] sm:$0xff] }
 0x30c   : > { %v592_v48 = vpop.permute.xlu0 %591  ;;  %v585_v50 = vpop.permute.xlu1 %584 }
 0x30d   : > { %v599_v51 = vmul.f32 %v595_v44, %v592_v48  ;;  %v600_v52 = vmul.f32 %v596_v45, %v592_v48  ;;  %v597_v54 = vmul.f32 %v593_v46, %v585_v50  ;;  %v598_v55 = vmul.f32 %v594_v47, %v585_v50  ;;  %v790_v44 = vld [vmem:[%s3225_s10 + $0x4b8] sm:$0xff]  ;;  %v783_v47 = vld [vmem:[%s3225_s10 + $0x480] sm:$0xff] }
 0x30e   : > { %v1899_v45 = vpack.c.bf16 %v779_v33, %v775_v32  ;;  %v1995_v46 = vpack.c.bf16 %v781_v40, %v777_v39  ;;  %v787_v48 = vld [vmem:[%s3225_s10 + $0x4a0] sm:$0xff]  ;;  %v1901_v50 = vpack.c.bf16 %v788_v42, %v784_v41  ;;  %v822_v32 = vld [vmem:[%s3225_s10 + $0x5b8] sm:$0xff]  ;;  %v1915_v33 = vpack.c.bf16 %v811_v25, %v807_v24  ;;  %v817_v40 = vld [vmem:[%s3225_s10 + $0x590] sm:$0xff] }
 0x30f   : > { %v616_v56 = vsel %vm601_vm5, %v599_v51, 0.0  ;;  %v623_v37 = vsel %vm601_vm5, %v600_v52, 0.0  ;;  %v602_v57 = vsel %vm601_vm5, %v597_v54, 0.0  ;;  %v609_v59 = vsel %vm601_vm5, %v598_v55, 0.0  ;;  %v785_v52 = vld [vmem:[%s3225_s10 + $0x490] sm:$0xff]  ;;  %v792_v55 = vld [vmem:[%s3225_s10 + $0x4c8] sm:$0xff] }
 0x310   : > { %v617_v60 = vrot.slane %v616_v56, 4  ;;  %v624_v61 = vrot.slane %v623_v37, 4  ;;  %v603_v62 = vrot.slane %v602_v57, 4  ;;  %v610_v63 = vrot.slane %v609_v59, 4  ;;  %v789_v54 = vld [vmem:[%s3225_s10 + $0x4b0] sm:$0xff]  ;;  %v824_v42 = vld [vmem:[%s3225_s10 + $0x5c8] sm:$0xff] }
 0x311   : > { %v1997_v51 = vpack.c.bf16 %v790_v44, %v786_v43  ;;  %v821_v41 = vld [vmem:[%s3225_s10 + $0x5b0] sm:$0xff]  ;;  %v828_v43 = vld [vmem:[%s3225_s10 + $0x5e8] sm:$0xff]  ;;  %v826_v44 = vld [vmem:[%s3225_s10 + $0x5d8] sm:$0xff] }
 0x312   : > { %v618_v0 = vadd.f32 %v617_v60, %v616_v56  ;;  %v625_v1 = vadd.f32 %v624_v61, %v623_v37  ;;  %v604_v3 = vadd.f32 %v603_v62, %v602_v57  ;;  %v611_v4 = vadd.f32 %v610_v63, %v609_v59  ;;  %v796_v56 = vld [vmem:[%s3225_s10 + $0x4e8] sm:$0xff]  ;;  %v794_v37 = vld [vmem:[%s3225_s10 + $0x4d8] sm:$0xff]  ;;  %v791_v61 = vld [vmem:[%s3225_s10 + $0x4c0] sm:$0xff] }
 0x313   : > { %v798_v57 = vld [vmem:[%s3225_s10 + $0x4f8] sm:$0xff]  ;;  %v1903_v59 = vpack.c.bf16 %v787_v48, %v783_v47  ;;  %v1999_v60 = vpack.c.bf16 %v789_v54, %v785_v52  ;;  %v795_v62 = vld [vmem:[%s3225_s10 + $0x4e0] sm:$0xff]  ;;  %v1905_v63 = vpack.c.bf16 %v796_v56, %v792_v55  ;;  %v2015_v47 = vpack.c.bf16 %v821_v41, %v817_v40  ;;  %v825_v54 = vld [vmem:[%s3225_s10 + $0x5d0] sm:$0xff] }
 0x314   : > { %v619_v5 = vrot.slane %v618_v0, 2  ;;  %v626_v6 = vrot.slane %v625_v1, 2  ;;  %v605_v7 = vrot.slane %v604_v3, 2  ;;  %v612_v8 = vrot.slane %v611_v4, 2  ;;  %v823_v48 = vld [vmem:[%s3225_s10 + $0x5c0] sm:$0xff]  ;;  %v829_v55 = vld [vmem:[%s3225_s10 + $0x5f0] sm:$0xff] }
 0x315   : > { %v827_v52 = vld [vmem:[%s3225_s10 + $0x5e0] sm:$0xff] }
 0x316   : > { %v620_v9 = vadd.f32 %v619_v5, %v618_v0  ;;  %v627_v10 = vadd.f32 %v626_v6, %v625_v1  ;;  %v606_v11 = vadd.f32 %v605_v7, %v604_v3  ;;  %v613_v12 = vadd.f32 %v612_v8, %v611_v4  ;;  %v793_v1 = vld [vmem:[%s3225_s10 + $0x4d0] sm:$0xff]  ;;  %v800_v4 = vld [vmem:[%s3225_s10 + $0x508] sm:$0xff]  ;;  %v802_v6 = vld [vmem:[%s3225_s10 + $0x518] sm:$0xff] }
 0x317   : > { %v2001_v0 = vpack.c.bf16 %v798_v57, %v794_v37  ;;  %v797_v3 = vld [vmem:[%s3225_s10 + $0x4f0] sm:$0xff]  ;;  %v804_v5 = vld [vmem:[%s3225_s10 + $0x528] sm:$0xff]  ;;  %v806_v7 = vld [vmem:[%s3225_s10 + $0x538] sm:$0xff]  ;;  %v1907_v8 = vpack.c.bf16 %v795_v62, %v791_v61  ;;  %v1923_v56 = vpack.c.bf16 %v827_v52, %v823_v48  ;;  %v2019_v37 = vpack.c.bf16 %v829_v55, %v825_v54 }
 0x318   : > { %v621_v18 = vrot.slane %v620_v9, 1  ;;  %v607_v19 = vrot.slane %v606_v11, 1  ;;  %v614_v20 = vrot.slane %v613_v12, 1  ;;  %v628_v21 = vrot.slane %v627_v10, 1  ;;  %v551_v57 = vld [vmem:[#allocation4] sm:$0x3] }
 0x319   : > { %v2005_v13 = vpack.c.bf16 %v806_v7, %v802_v6  ;;  %v2138_v62 = vmov 0.0|0.0   ;;  %v1379_v6 = vld [vmem:[%s3228_s13 + $0x30] sm:$0xff]  ;;  %v1380_v7 = vld [vmem:[%s3228_s13 + $0x38] sm:$0xff]  ;;  %v1656_v55 = vld [vmem:[%s3229_s14] ss:$0 sm:$0xff] }
 0x31a   : > { %v615_v27 = vadd.f32 %v614_v20, %v613_v12  ;;  %v629_v28 = vadd.f32 %v628_v21, %v627_v10  ;;  %v608_v49 = vadd.f32 %v607_v19, %v606_v11  ;;  %v622_v29 = vadd.f32 %v621_v18, %v620_v9  ;;  %v799_v10 = vld [vmem:[%s3225_s10 + $0x500] sm:$0xff]  ;;  %v808_v18 = vld [vmem:[%s3225_s10 + $0x548] sm:$0xff]  ;;  %v810_v20 = vld [vmem:[%s3225_s10 + $0x558] sm:$0xff] }
 0x31b   : > { %v2003_v9 = vpack.c.bf16 %v797_v3, %v793_v1  ;;  %v803_v11 = vld [vmem:[%s3225_s10 + $0x520] sm:$0xff]  ;;  %v1909_v12 = vpack.c.bf16 %v804_v5, %v800_v4  ;;  %v812_v19 = vld [vmem:[%s3225_s10 + $0x568] sm:$0xff]  ;;  %v814_v21 = vld [vmem:[%s3225_s10 + $0x578] sm:$0xff] }
 0x31c   : > { %v636_v34 = vsel %vm634_vm6, %v629_v28, %v615_v27  ;;  %v635_v35 = vsel %vm634_vm6, %v622_v29, %v608_v49  ;;  %v1911_v22 = vpack.c.bf16 %v803_v11, %v799_v10  ;;  %v1913_v26 = vpack.c.bf16 %v812_v19, %v808_v18  ;;  %v809_v28 = vld [vmem:[%s3225_s10 + $0x550] sm:$0xff]  ;;  %v816_v29 = vld [vmem:[%s3225_s10 + $0x588] sm:$0xff]  ;;  %v1377_v3 = vld [vmem:[%s3228_s13 + $0x20] sm:$0xff] }
 0x31d   : > { %1101 = vmatprep.mubr.f32.mxu0 %v636_v34  ;;  %1243 = vmatprep.mubr.f32.mxu1 %v636_v34  ;;  %v2009_v27 = vpack.c.bf16 %v814_v21, %v810_v20  ;;  %v813_v49 = vld [vmem:[%s3225_s10 + $0x570] sm:$0xff]  ;;  %v1378_v4 = vld [vmem:[%s3228_s13 + $0x28] sm:$0xff]  ;;  %v1388_v21 = vld [vmem:[%s3228_s13 + $0x78] sm:$0xff] }
 0x31e   : > { %1102 = vmatmul.mubr.f32.vlgmr.msra.gmra.mrb[0].mxu0 %v635_v35  ;;  %1244 = vmatmul.mubr.f32.vlgmr.msra.gmra.mrb[0].mxu1 %v635_v35  ;;  %v2011_v34 = vpack.c.bf16 %v813_v49, %v809_v28  ;;  %v815_v35 = vld [vmem:[%s3225_s10 + $0x580] sm:$0xff]  ;;  %v2028_v5 = vpack.c.bf16 %v1378_v4, %v1377_v3  ;;  %v1382_v10 = vld [vmem:[%s3228_s13 + $0x48] sm:$0xff]  ;;  %v1387_v20 = vld [vmem:[%s3228_s13 + $0x70] sm:$0xff] }
 0x31f   : > { %1896 = vmatpush1.bf16.msra.mxu0 %v1895_v30  ;;  %1992 = vmatpush1.bf16.msra.mxu1 %v1991_v31  ;;  %v820_v30 = vld [vmem:[%s3225_s10 + $0x5a8] sm:$0xff]  ;;  %v818_v31 = vld [vmem:[%s3225_s10 + $0x598] sm:$0xff]  ;;  %v1492_v4 = vld [vmem:[%s3222_s6] sm:$0xff] }
 0x320   : > { %1898 = vmatprep.subr.bf16.mxu0 %v1897_v36  ;;  %1994 = vmatprep.subr.bf16.mxu1 %v1993_v38  ;;  %v819_v36 = vld [vmem:[%s3225_s10 + $0x5a0] sm:$0xff]  ;;  %v1917_v38 = vpack.c.bf16 %v820_v30, %v816_v29  ;;  %v2013_v39 = vpack.c.bf16 %v822_v32, %v818_v31  ;;  %v1386_v18 = vld [vmem:[%s3228_s13 + $0x68] sm:$0xff] }
 0x321   : > { %1172 = vmatprep.mubr.f32.mxu0 %v2137_v58  ;;  %1314 = vmatprep.mubr.f32.mxu1 %v2137_v58  ;;  %v2040_v19 = vpack.c.bf16 %v1386_v18, %v1385_v14  ;;  %v1501_v18 = vld [vmem:[%s3222_s6 + $0x48] sm:$0xff] }
 0x323   : > { %1900 = vmatpush1.bf16.msra.mxu0 %v1899_v45  ;;  %1996 = vmatpush1.bf16.msra.mxu1 %v1995_v46  ;;  %v830_v45 = vld [vmem:[%s3225_s10 + $0x5f8] sm:$0xff]  ;;  %v1919_v46 = vpack.c.bf16 %v819_v36, %v815_v35 }
 0x324   : > { %1902 = vmatprep.subr.bf16.mxu0 %v1901_v50  ;;  %1998 = vmatprep.subr.bf16.mxu1 %v1997_v51  ;;  %v1921_v50 = vpack.c.bf16 %v828_v43, %v824_v42  ;;  %v2017_v51 = vpack.c.bf16 %v830_v45, %v826_v44  ;;  %v550_v44 = vld [vmem:[#allocation3] sm:$0x3] }
 0x327   : > { %1904 = vmatpush1.bf16.msra.mxu0 %v1903_v59  ;;  %2000 = vmatpush1.bf16.msra.mxu1 %v1999_v60  ;;  %v1373_v59 = vld [vmem:[%s3228_s13] sm:$0xff]  ;;  %v1374_v60 = vld [vmem:[%s3228_s13 + $0x8] sm:$0xff] }
 0x328   : > { %1906 = vmatprep.subr.bf16.mxu0 %v1905_v63  ;;  %2002 = vmatprep.subr.bf16.mxu1 %v2001_v0  ;;  %v2022_v61 = vpack.c.bf16 %v1374_v60, %v1373_v59  ;;  %v1375_v63 = vld [vmem:[%s3228_s13 + $0x10] sm:$0xff]  ;;  %v1376_v0 = vld [vmem:[%s3228_s13 + $0x18] sm:$0xff]  ;;  %v1468_v60 = vand.u32 127, %v579_v53 }
 0x329   : > { %v2025_v1 = vpack.c.bf16 %v1376_v0, %v1375_v63  ;;  %v1494_v53 = vld [vmem:[%s3222_s6 + $0x10] sm:$0xff] }
 0x32b   : > { %1908 = vmatpush1.bf16.msra.mxu0 %v1907_v8  ;;  %2004 = vmatpush1.bf16.msra.mxu1 %v2003_v9  ;;  %v2031_v8 = vpack.c.bf16 %v1380_v7, %v1379_v6  ;;  %v1381_v9 = vld [vmem:[%s3228_s13 + $0x40] sm:$0xff]  ;;  %v1495_v7 = vld [vmem:[%s3222_s6 + $0x18] sm:$0xff] }
 0x32c   : > { %1910 = vmatprep.subr.bf16.mxu0 %v1909_v12  ;;  %2006 = vmatprep.subr.bf16.mxu1 %v2005_v13  ;;  %v2034_v11 = vpack.c.bf16 %v1382_v10, %v1381_v9  ;;  %v1383_v12 = vld [vmem:[%s3228_s13 + $0x50] sm:$0xff]  ;;  %v1384_v13 = vld [vmem:[%s3228_s13 + $0x58] sm:$0xff]  ;;  %v1496_v9 = vld [vmem:[%s3222_s6 + $0x20] sm:$0xff] }
 0x32d   : > { %v2037_v17 = vpack.c.bf16 %v1384_v13, %v1383_v12  ;;  %v1497_v10 = vld [vmem:[%s3222_s6 + $0x28] sm:$0xff]  ;;  %v1498_v12 = vld [vmem:[%s3222_s6 + $0x30] sm:$0xff]  ;;  %v1499_v13 = vld [vmem:[%s3222_s6 + $0x38] sm:$0xff] }
 0x32e   : > { %v2055_v14 = vpack.c.bf16 %v1499_v13, %v1498_v12 }
 0x32f   : > { %1912 = vmatpush1.bf16.msra.mxu0 %v1911_v22  ;;  %2008 = vmatpush1.bf16.msra.mxu1 %v2007_v23  ;;  %v2043_v22 = vpack.c.bf16 %v1388_v21, %v1387_v20  ;;  %v1502_v20 = vld [vmem:[%s3222_s6 + $0x50] sm:$0xff]  ;;  %v1503_v21 = vld [vmem:[%s3222_s6 + $0x58] sm:$0xff] }
 0x330   : > { %1914 = vmatprep.subr.bf16.mxu0 %v1913_v26  ;;  %2010 = vmatprep.subr.bf16.mxu1 %v2009_v27  ;;  %v1337_v27 = vsub.s32 3, %v2812_v2 }
 0x333   : > { %1916 = vmatpush1.bf16.msra.mxu0 %v1915_v33  ;;  %2012 = vmatpush1.bf16.msra.mxu1 %v2011_v34  ;;  %v1333_v34 = vsub.s32 2, %v2812_v2 }
 0x334   : > { %1918 = vmatprep.subr.bf16.mxu0 %v1917_v38  ;;  %2014 = vmatprep.subr.bf16.mxu1 %v2013_v39 }
 0x337   : > { %1920 = vmatpush1.bf16.msra.mxu0 %v1919_v46  ;;  %2016 = vmatpush1.bf16.msra.mxu1 %v2015_v47 }
 0x338   : > { %1922 = vmatprep.subr.bf16.mxu0 %v1921_v50  ;;  %2018 = vmatprep.subr.bf16.mxu1 %v2017_v51 }
 0x33b   : > { %1924 = vmatpush1.bf16.msra.mxu0 %v1923_v56  ;;  %2020 = vmatpush1.bf16.msra.mxu1 %v2019_v37 }
 0x33c   : > { %2021 = vmatprep.subr.bf16.mxu0 %v2138_v62  ;;  %2045 = vmatprep.subr.bf16.mxu1 %v2138_v62 }
 0x33e   : > { %1173 = vmatmul.mubr.f32.vlgmr.msra.gmra.mrb[0].mxu0 %v551_v57  ;;  %1315 = vmatmul.mubr.f32.vlgmr.msra.gmra.mrb[0].mxu1 %v551_v57 }
 0x33f   : > { %2023 = vmatpush3.bf16.msra.mxu0 %v2022_v61  ;;  %1727 = vmatprep.mubr.msk.f32.mxu0 %vm2139_vm7, %v2137_v58 }
 0x340   : > { %2024 = vmatprep.subr.bf16.mxu0 %v2138_v62  ;;  %1762 = vmatprep.mubr.msk.f32.mxu1 %vm2139_vm7, %v2137_v58  ;;  %v1321_v58 = vld [vmem:[%s3227_s12] sm:$0xf] }
 0x341   : > { %v1326_v23 = vrot.slane %v1321_v58, %v581_v16  ;;  %v1330_v24 = vrot.slane %v1321_v58, %v588_v15  ;;  %v1338_v33 = vrot.slane %v1321_v58, %v1337_v27  ;;  %v1334_v16 = vrot.slane %v1321_v58, %v1333_v34  ;;  %v1504_v58 = vld [vmem:[%s3222_s6 + $0x60] sm:$0xff] }
 0x343   : > { %2026 = vmatpush3.bf16.msra.mxu0 %v2025_v1 }
 0x344   : > { %2027 = vmatprep.subr.bf16.mxu0 %v2138_v62 }
 0x347   : > { %2029 = vmatpush3.bf16.msra.mxu0 %v2028_v5  ;;  %v1493_v5 = vld [vmem:[%s3222_s6 + $0x8] sm:$0xff] }
 0x348   : > { %2030 = vmatprep.subr.bf16.mxu0 %v2138_v62  ;;  %v2046_v6 = vpack.c.bf16 %v1493_v5, %v1492_v4 }
 0x34a   : > { %2047 = vmatpush3.bf16.msra.mxu1 %v2046_v6 }
 0x34b   : > { %2032 = vmatpush3.bf16.msra.mxu0 %v2031_v8  ;;  %v2049_v8 = vpack.c.bf16 %v1495_v7, %v1494_v53  ;;  %2048 = vmatprep.subr.bf16.mxu1 %v2138_v62 }
 0x34c   : > { %2033 = vmatprep.subr.bf16.mxu0 %v2138_v62 }
 0x34e   : > { %2050 = vmatpush3.bf16.msra.mxu1 %v2049_v8 }
 0x34f   : > { %2035 = vmatpush3.bf16.msra.mxu0 %v2034_v11  ;;  %v2052_v11 = vpack.c.bf16 %v1497_v10, %v1496_v9  ;;  %2051 = vmatprep.subr.bf16.mxu1 %v2138_v62 }
 0x350   : > { %2036 = vmatprep.subr.bf16.mxu0 %v2138_v62 }
 0x352   : > { %2053 = vmatpush3.bf16.msra.mxu1 %v2052_v11 }
 0x353   : > { %2038 = vmatpush3.bf16.msra.mxu0 %v2037_v17  ;;  %2054 = vmatprep.subr.bf16.mxu1 %v2138_v62  ;;  %v1500_v17 = vld [vmem:[%s3222_s6 + $0x40] sm:$0xff] }
 0x354   : > { %2039 = vmatprep.subr.bf16.mxu0 %v2138_v62 }
 0x356   : > { %2056 = vmatpush3.bf16.msra.mxu1 %v2055_v14 }
 0x357   : > { %2041 = vmatpush3.bf16.msra.mxu0 %v2040_v19  ;;  %v2058_v19 = vpack.c.bf16 %v1501_v18, %v1500_v17  ;;  %2057 = vmatprep.subr.bf16.mxu1 %v2138_v62 }
 0x358   : > { %2042 = vmatprep.subr.bf16.mxu0 %v2138_v62 }
 0x35a   : > { %2059 = vmatpush3.bf16.msra.mxu1 %v2058_v19 }
 0x35b   : > { %2044 = vmatpush3.bf16.msra.mxu0 %v2043_v22  ;;  %v2061_v22 = vpack.c.bf16 %v1503_v21, %v1502_v20  ;;  %2060 = vmatprep.subr.bf16.mxu1 %v2138_v62 }
 0x35e   : > { %2062 = vmatpush3.bf16.msra.mxu1 %v2061_v22 }
 0x35f   : > { %2063 = vmatprep.subr.bf16.mxu1 %v2138_v62 }
 0x411   : > { %v1174_v25 = vpop.f32.mrb[0].mxu0  ;;  %v1316_v26 = vpop.f32.mrb[0].mxu1 }
 0x412   : > { %v1343_v28 = vadd.f32 %v1326_v23, %v1174_v25  ;;  %v1176_v49 = vpop.f32.mrb[1].mxu0  ;;  %v1318_v29 = vpop.f32.mrb[1].mxu1  ;;  %v1345_v38 = vadd.f32 %v1334_v16, %v1316_v26  ;;  %v1505_v23 = vld [vmem:[%s3222_s6 + $0x68] sm:$0xff]  ;;  %v1578_v16 = vld [vmem:[%s2248_s19] sm:$0x3] }
 0x413   : > { %v1344_v30 = vadd.f32 %v1330_v24, %v1176_v49  ;;  %v1346_v35 = vadd.f32 %v1338_v33, %v1318_v29  ;;  %v2064_v24 = vpack.c.bf16 %v1505_v23, %v1504_v58  ;;  %v1506_v49 = vld [vmem:[%s3222_s6 + $0x70] sm:$0xff]  ;;  %v1507_v29 = vld [vmem:[%s3222_s6 + $0x78] sm:$0xff] }
 0x414   : > { %v1653_v31 = vmul.f32 -1.442695, %v1343_v28 }
 0x415   : > { %v1654_v32 = vmul.f32 -1.442695, %v1344_v30  ;;  %v1655_v36 = vmul.f32 -1.442695, %v1346_v35  ;;  %2065 = vmatpush3.bf16.msra.mxu1 %v2064_v24  ;;  %v2067_v30 = vpack.c.bf16 %v1507_v29, %v1506_v49  ;;  %v2140_v35 = vmov 1.0  }
 0x416   : > { %2097 = vpow2.f32 %v1653_v31  ;;  %2066 = vmatprep.subr.bf16.mxu1 %v2138_v62 }
 0x417   : > { %2099 = vpow2.f32 %v1654_v32 }
 0x418   : > { %2101 = vpow2.f32 %v1655_v36 }
 0x419   : > { %2103 = vtanh.f32 %v1345_v38  ;;  %2068 = vmatpush3.bf16.msra.mxu1 %v2067_v30 }
 0x420   : > { %v2098_v15 = vpop.eup %2097 }
 0x421   : > { %v2100_v39 = vpop.eup %2099  ;;  %v1350_v40 = vadd.f32 1.0, %v2098_v15 }
 0x422   : > { %v1356_v41 = vadd.f32 1.0, %v2100_v39  ;;  %v2102_v42 = vpop.eup %2101 }
 0x423   : > { %2105 = vrcp.f32 %v1350_v40  ;;  %v2104_v43 = vpop.eup %2103  ;;  %v1363_v2 = vadd.f32 1.0, %v2102_v42 }
 0x424   : > { %2107 = vrcp.f32 %v1356_v41 }
 0x425   : > { %2109 = vrcp.f32 %v1363_v2 }
 0x42d   : > { %v2106_v45 = vpop.eup %2105 }
 0x42e   : > { %v2108_v46 = vpop.eup %2107  ;;  %v1367_v47 = vmul.f32 %v2106_v45, %v2104_v43 }
 0x42f   : > { %v1366_v48 = vmul.f32 %v2108_v46, %v550_v44  ;;  %v2110_v51 = vpop.eup %2109 }
 0x431   : > { %v1368_v50 = vadd.f32 %v1367_v47, %v1366_v48 }
 0x433   : > { %1372 = vst [vmem:[#allocation3] sm:$0x3] %v1368_v50  ;;  %2111 = vtanh.f32 %v1368_v50 }
 0x43d   : > { %v2112_v52 = vpop.eup %2111 }
 0x43e   : > { %v1370_v54 = vmul.f32 %v2112_v52, %v2110_v51 }
 0x440   : > { %1371 = vst [vmem:[#allocation2] sm:$0x3] %v1370_v54  ;;  %1728 = vmatmul.mubr.f32.vlgmr.msra.gmra.mrb[2].mxu0 %v1370_v54 }
 0x513   : > { %v1462_v56 = vpop.f32.mrb[2].mxu0 }
 0x514   : > { %v1463_v37 = vadd.f32 %v1656_v55, %v1462_v56  ;;  %v1729_v57 = vpop.f32.mrb[3].mxu0 }
 0x516   : > { %1466 = vst [vmem:[%s2243_s16] sm:$0x3] %v1463_v37  ;;  %v1469_v59 = vsel %vm560_vm3, %v1463_v37, -inf  ;;  %s1579_s16 = sld [smem:[#allocation7 + %s2233_s0]] }
 0x517   : > { %1470 = vmax.xlane.f32.xlu1 %v1469_v59 }
 0x51c   : > { %p1580_p11 = scmp.gt.s32.totalorder %s1579_s16, 0 }
 0x51e   : > { %s1581_s26 = scalar_select %p1580_p11, 1, 0 }
 0x520   : > { %s1582_s27 = scvt.s32.f32 %s1581_s26 }
 0x522   : > { %s1585_s28 = ssub.f32 1.0, %s1582_s27  ;;  %v1583_v36 = vstv %s1582_s27 }
 0x523   : > { %v1584_v15 = vmul.f32 %v1583_v36, %v1578_v16 }
 0x524   : > { %v1586_v38 = vstv %s1585_s28 }
 0x5a4   : > { %v1471_v61 = vpop.xlane.xlu1 %1470 }
 0x5a5   : > { %vm1472_vm8 = vcmp.eq.f32.partialorder %v1463_v37, %v1471_v61 }
 0x5a6   : > { %v1473_v63 = vsel %vm1472_vm8, %v1468_v60, 128 }
 0x5a7   : > { %v1474_v0 = vsel %vm560_vm3, %v1473_v63, 2147483647 }
 0x5a8   : > { %v1476_v1 = vshra.s32 %v1474_v0, 16  ;;  %v1475_v25 = vand.u32 65535, %v1474_v0 }
 0x5aa   : > { %v1478_v3 = vcvt.s32.f32 %v1476_v1  ;;  %v1477_v27 = vcvt.s32.f32 %v1475_v25 }
 0x5ac   : > { %1479 = vmin.xlane.f32.xlu0 %v1478_v3 }
 0x639   : > { %v1480_v26 = vpop.xlane.xlu0 %1479 }
 0x63a   : > { %vm1481_vm9 = vcmp.eq.f32.partialorder %v1478_v3, %v1480_v26  ;;  %v1486_v31 = vcvt.f32.s32 %v1480_v26 }
 0x63b   : > { %v1482_v28 = vsel %vm1481_vm9, %v1477_v27, inf }
 0x63c   : > { %1483 = vmin.xlane.f32.xlu1 %v1482_v28  ;;  %v1487_v32 = vshll.u32 %v1486_v31, 16 }
 0x6c9   : > { %v1484_v62 = vpop.xlane.xlu1 %1483 }
 0x6ca   : > { %v1485_v33 = vcvt.f32.s32 %v1484_v62 }
 0x6cc   : > { %v1488_v34 = vadd.s32 %v1487_v32, %v1485_v33 }
 0x6ce   : > { %vm1489_vm10 = vcmp.eq.s32.totalorder %v1468_v60, %v1488_v34 }
 0x6cf   : > { %1763 = vmatmul.mubr.msk.f32.vlgmr.msra.gmra.mrb[2].mxu1 %vm1489_vm10, %v2140_v35 }
 0x7a2   : > { %v1574_v39 = vpop.f32.mrb[2].mxu1 }
 0x7a3   : > { %v1587_v40 = vmul.f32 %v1586_v38, %v1574_v39  ;;  %v1764_v41 = vpop.f32.mrb[3].mxu1 }
 0x7a5   : > { %v1588_v42 = vadd.f32 %v1587_v40, %v1584_v15 }
 0x7a7   : > { %1589 = vst [vmem:[#allocation4] sm:$0x3] %v1588_v42 }
 0x7a8 PF: > { %s33_s25 = sadd.s32 1, %s2133_s25  }
 0x7a9   : > { %p30_p12 = scmp.ge.s32.totalorder %s33_s25, 7  }
 0x7ab   :  { %32 = sbr.rel (!%p30_p12) target bundleno = 16 (0x10), region = 110 }

// kernel: seq2seq_forward.2
= control target key start
LH: loop header
LB: loop body
LE: loop exit
PB: predicated region body
PF: predicated region fallthrough
CT: control target
= control target key end

     0   :  { %s3034_s0 = inlined_call_operand.vmem [shape: f32[7,2,128], index: 0, kind: input, shape index: {}, may-alias: {0,1}]   ;;  %s3035_s1 = inlined_call_operand.vmem [shape: f32[7,2,128], index: 1, kind: input, shape index: {}, may-alias: {0,1}]   ;;  %s3036_s2 = inlined_call_operand.hbm [shape: f32[128,512], index: 2, kind: input, shape index: {}]   ;;  %s3037_s3 = inlined_call_operand.hbm [shape: f32[128,512], index: 3, kind: input, shape index: {}]   ;;  %s3038_s4 = inlined_call_operand.vmem [shape: f32[1,512], index: 4, kind: input, shape index: {}]   ;;  %s3039_s5 = inlined_call_operand.hbm [shape: f32[128,512], index: 5, kind: input, shape index: {}]   ;;  %s3040_s6 = inlined_call_operand.hbm [shape: f32[128,512], index: 6, kind: input, shape index: {}]   ;;  %s3041_s7 = inlined_call_operand.vmem [shape: f32[1,512], index: 7, kind: input, shape index: {}]   ;;  %s3042_s8 = inlined_call_operand.hbm [shape: f32[256,128], index: 8, kind: input, shape index: {}]   ;;  %s3043_s9 = inlined_call_operand.vmem [shape: f32[1,128], index: 9, kind: input, shape index: {}]   ;;  %s3044_s10 = inlined_call_operand.hbm [shape: f32[256,128], index: 10, kind: input, shape index: {}]   ;;  %s3045_s11 = inlined_call_operand.vmem [shape: f32[1,128], index: 11, kind: input, shape index: {}]   ;;  %s3046_s12 = inlined_call_operand.vmem [shape: f32[7,2,128], index: 12, kind: output, shape index: {0}]   ;;  %s3047_s13 = inlined_call_operand.vmem [shape: f32[7,2,128], index: 13, kind: output, shape index: {1}]   ;;  %s3048_s14 = inlined_call_operand.vmem [shape: f32[2,128], index: 14, kind: output, shape index: {2}]   ;;  %s3049_s15 = inlined_call_operand.vmem [shape: f32[2,128], index: 15, kind: output, shape index: {3}]  }
   0x1   :  { %3053 = sst [smem:[#allocation21_spill]] %s3043_s9 }
   0x2   :  { %3054 = sst [smem:[#allocation22_spill]] %s3045_s11 }
   0x3   :  { %3055 = sst [smem:[#allocation23_spill]] %s3048_s14 }
   0x4   :  { %3056 = sst [smem:[#allocation24_spill]] %s3049_s15 }
   0x5   :  { %21 = vsyncpa [#allocation7], 0 }
   0x6   :  { %22 = vsyncpa [#allocation9], 0 }
   0x7   :  { %23 = vsyncpa [#allocation12], 0 }
   0x8   :  { %24 = vsyncpa [#allocation15], 0  ;;  %s2773_s18 = smov 0  }
   0x9 LB: > { %3057 = sst [smem:[#allocation20_spill]] %s2679_s18  ;;  %s2779_s19 = sadd.s32 4294967295, %s2679_s18   ;;  %s2679_s18 = sphi %s2773_s18, %s30_s18  }
   0xa   : > { %p1953_p0 = scmp.ge.s32.totalorder %s2679_s18, 1  ;;  %p395_p1 = scmp.lt.s32.totalorder %s2679_s18, 8 }
   0xb   : > { %p3051_p3 = scmp.eq.s32.totalorder %s2779_s19, 0  ;;  %s2681_s21 = smov [#allocation8]  }
   0xc   : > { %p2785_p4 = pnand %p1953_p0, %p395_p1  ;;  %s420_s22 = sshll.u32 %s2681_s21, 4  ;;  %s2789_s22 = int_to_ptr.vmem [resolvable:$true] %s420_s22 }
   0xd   : > { %s2682_s23 = smov [#allocation11]   ;;  %s2683_s26 = smov [#allocation6]  }
   0xe   : > { %s3058_s20 = scalar_select %p2785_p4, 1, 0 }
   0xf   : > { %p2406_p5 = pneg %p2785_p4  ;;  %s449_s24 = sshll.u32 %s2682_s23, 4  ;;  %s2793_s24 = int_to_ptr.vmem [resolvable:$true] %s449_s24 }
  0x10   : > { %s407_s27 = sshll.u32 %s2683_s26, 4  ;;  %s2684_s28 = smov [#allocation10]   ;;  %s2801_s27 = int_to_ptr.vmem [resolvable:$true] %s407_s27 }
  0x11   : > { %p2797_p6 = pnand %p3051_p3, %p2406_p5  ;;  %s2803_s29 = sshll.u32 %s2684_s28, 4  ;;  %s437_s29 = int_to_ptr.vmem [resolvable:$true] %s2803_s29 }
  0x12   : > { %s2489_s17 = scalar_lea.hbm %s3037_s3, 8192 }
  0x13   : > { %p2490_p7 = scmp.ne.s32.totalorder %s3037_s3, %s2489_s17  ;;  %p2813_p8 = pneg %p2797_p6 }
  0x14   : > { %p2496_p11 = scmp.lt.u32.totalorder %s2489_s17, %s3037_s3 }
  0x15   : > { %p2492_p9 = pnand %p2813_p8, %p2490_p7 }
  0x17   : > { %p2493_p10 = pneg %p2492_p9 }
  0x19   : > { %p2498_p12 = pnand %p2496_p11, %p2493_p10 }
  0x1b   : > { %2501 = shalt.err (!%p2498_p12)
}
  0x1c   : > { %s2502_s30 = scalar_lea.vmem %s2789_s22, 8192  ;;  %p2510_p5 = scmp.lt.s32.totalorder %s2789_s22, %s2789_s22 }
  0x1d   : > { %p2503_p13 = scmp.ne.s32.totalorder %s2789_s22, %s2502_s30  ;;  %p2511_p2 = scmp.lt.s32.totalorder %s2502_s30, %s2502_s30 }
  0x1f   : > { %p2505_p0 = pnand %p2503_p13, %p2813_p8  ;;  %p2512_p7 = por %p2511_p2, %p2510_p5 }
  0x21   : > { %p2506_p1 = pneg %p2505_p0 }
  0x23   : > { %p2513_p9 = pnand %p2512_p7, %p2506_p1 }
  0x25   : > { %2516 = shalt.err (!%p2513_p9)
}
  0x26   : > { %s2685_s16 = smov 512   ;;  %s2686_s17 = smov 32  }
  0x27   : > { %2412 = dma.hbm_to_vmem [thread:$0]  (!%p2797_p6), %s3037_s3, 8192, %s2789_s22, [#allocation9], %s2685_s16, %s2685_s16, %s2686_s17  }
  0x28   : > { %s2517_s30 = scalar_lea.hbm %s3040_s6, 8192 }
  0x29   : > { %p2518_p2 = scmp.ne.s32.totalorder %s3040_s6, %s2517_s30  ;;  %p2524_p12 = scmp.lt.u32.totalorder %s2517_s30, %s3040_s6 }
  0x2b   : > { %p2520_p10 = pnand %p2518_p2, %p2813_p8 }
  0x2d   : > { %p2521_p11 = pneg %p2520_p10 }
  0x2f   : > { %p2526_p13 = pnand %p2524_p12, %p2521_p11 }
  0x31   : > { %2529 = shalt.err (!%p2526_p13)
}
  0x32   : > { %s2530_s22 = scalar_lea.vmem %s2793_s24, 8192  ;;  %p2538_p7 = scmp.lt.s32.totalorder %s2793_s24, %s2793_s24 }
  0x33   : > { %p2531_p0 = scmp.ne.s32.totalorder %s2793_s24, %s2530_s22  ;;  %p2539_p9 = scmp.lt.s32.totalorder %s2530_s22, %s2530_s22 }
  0x35   : > { %p2533_p1 = pnand %p2531_p0, %p2813_p8  ;;  %p2540_p2 = por %p2539_p9, %p2538_p7 }
  0x37   : > { %p2534_p5 = pneg %p2533_p1 }
  0x39   : > { %p2541_p10 = pnand %p2540_p2, %p2534_p5 }
  0x3b   : > { %2544 = shalt.err (!%p2541_p10)
}
  0x3c   : > { %2418 = dma.hbm_to_vmem [thread:$0]  (!%p2797_p6), %s3040_s6, 8192, %s2793_s24, [#allocation12], %s2685_s16, %s2685_s16, %s2686_s17  }
  0x3d   : > { %s2545_s21 = scalar_lea.hbm %s3036_s2, 8192 }
  0x3e   : > { %p2546_p11 = scmp.ne.s32.totalorder %s3036_s2, %s2545_s21  ;;  %p2552_p0 = scmp.lt.u32.totalorder %s2545_s21, %s3036_s2 }
  0x40   : > { %p2548_p12 = pnand %p2546_p11, %p2813_p8 }
  0x42   : > { %p2549_p13 = pneg %p2548_p12 }
  0x44   : > { %p2554_p1 = pnand %p2552_p0, %p2549_p13 }
  0x46   : > { %2557 = shalt.err (!%p2554_p1)
}
  0x47   : > { %s2558_s24 = scalar_lea.vmem %s2801_s27, 8192  ;;  %p2566_p2 = scmp.lt.s32.totalorder %s2801_s27, %s2801_s27 }
  0x48   : > { %p2559_p5 = scmp.ne.s32.totalorder %s2801_s27, %s2558_s24  ;;  %p2567_p10 = scmp.lt.s32.totalorder %s2558_s24, %s2558_s24 }
  0x4a   : > { %p2561_p7 = pnand %p2559_p5, %p2813_p8  ;;  %p2568_p11 = por %p2567_p10, %p2566_p2 }
  0x4c   : > { %p2562_p9 = pneg %p2561_p7 }
  0x4e   : > { %p2569_p12 = pnand %p2568_p11, %p2562_p9 }
  0x50   : > { %2572 = shalt.err (!%p2569_p12)
}
  0x51   : > { %2409 = dma.hbm_to_vmem [thread:$0]  (!%p2797_p6), %s3036_s2, 8192, %s2801_s27, [#allocation7], %s2685_s16, %s2685_s16, %s2686_s17  }
  0x52   : > { %s2573_s15 = scalar_lea.hbm %s3039_s5, 8192 }
  0x53   : > { %p2574_p13 = scmp.ne.s32.totalorder %s3039_s5, %s2573_s15  ;;  %p2580_p5 = scmp.lt.u32.totalorder %s2573_s15, %s3039_s5 }
  0x55   : > { %p2576_p0 = pnand %p2574_p13, %p2813_p8 }
  0x57   : > { %p2577_p1 = pneg %p2576_p0 }
  0x59   : > { %p2582_p7 = pnand %p2580_p5, %p2577_p1 }
  0x5b   : > { %2585 = shalt.err (!%p2582_p7)
}
  0x5c   : > { %s2586_s30 = scalar_lea.vmem %s437_s29, 8192  ;;  %p2594_p11 = scmp.lt.s32.totalorder %s437_s29, %s437_s29 }
  0x5d   : > { %p2587_p9 = scmp.ne.s32.totalorder %s437_s29, %s2586_s30  ;;  %p2595_p12 = scmp.lt.s32.totalorder %s2586_s30, %s2586_s30 }
  0x5f   : > { %p2589_p2 = pnand %p2587_p9, %p2813_p8  ;;  %p2596_p3 = por %p2595_p12, %p2594_p11 }
  0x61   : > { %p2590_p10 = pneg %p2589_p2 }
  0x63   : > { %p2597_p4 = pnand %p2596_p3, %p2590_p10 }
  0x65   : > { %2600 = shalt.err (!%p2597_p4)
}
  0x66   : > { %2415 = dma.hbm_to_vmem [thread:$0]  (!%p2797_p6), %s3039_s5, 8192, %s437_s29, [#allocation9], %s2685_s16, %s2685_s16, %s2686_s17  }
  0x67   : > { %s2687_s22 = smov [#allocation13]   ;;  %s2601_s15 = scalar_lea.hbm %s3042_s8, 4096 }
  0x68   : > { %s465_s9 = sshll.u32 %s2687_s22, 4  ;;  %p2602_p3 = scmp.ne.s32.totalorder %s3042_s8, %s2601_s15  ;;  %s466_s9 = int_to_ptr.vmem [resolvable:$true] %s465_s9 }
  0x69   : > { %p2608_p0 = scmp.lt.u32.totalorder %s2601_s15, %s3042_s8 }
  0x6a   : > { %p2604_p4 = pnand %p2602_p3, %p2813_p8 }
  0x6c   : > { %p2605_p13 = pneg %p2604_p4 }
  0x6e   : > { %p2610_p1 = pnand %p2608_p0, %p2605_p13 }
  0x70   : > { %2613 = shalt.err (!%p2610_p1)
}
  0x71   : > { %s2614_s29 = scalar_lea.vmem %s466_s9, 4096  ;;  %p2622_p2 = scmp.lt.s32.totalorder %s466_s9, %s466_s9 }
  0x72   : > { %p2615_p5 = scmp.ne.s32.totalorder %s466_s9, %s2614_s29  ;;  %p2623_p10 = scmp.lt.s32.totalorder %s2614_s29, %s2614_s29 }
  0x74   : > { %p2617_p7 = pnand %p2615_p5, %p2813_p8  ;;  %p2624_p11 = por %p2623_p10, %p2622_p2 }
  0x76   : > { %p2618_p9 = pneg %p2617_p7 }
  0x78   : > { %p2625_p12 = pnand %p2624_p11, %p2618_p9 }
  0x7a   : > { %2628 = shalt.err (!%p2625_p12)
}
  0x7b   : > { %s2688_s16 = smov 128   ;;  %s2689_s17 = smov 8  }
  0x7c   : > { %2421 = dma.hbm_to_vmem [thread:$0]  (!%p2797_p6), %s3042_s8, 4096, %s466_s9, [#allocation12], %s2688_s16, %s2688_s16, %s2689_s17  }
  0x7d   : > { %s2690_s24 = smov [#allocation14]   ;;  %s2629_s15 = scalar_lea.hbm %s3044_s10, 4096 }
  0x7e   : > { %s481_s22 = sshll.u32 %s2690_s24, 4  ;;  %p2630_p3 = scmp.ne.s32.totalorder %s3044_s10, %s2629_s15  ;;  %s482_s22 = int_to_ptr.vmem [resolvable:$true] %s481_s22 }
  0x7f   : > { %p2636_p0 = scmp.lt.u32.totalorder %s2629_s15, %s3044_s10 }
  0x80   : > { %p2632_p4 = pnand %p2630_p3, %p2813_p8 }
  0x82   : > { %p2633_p13 = pneg %p2632_p4 }
  0x84   : > { %p2638_p1 = pnand %p2636_p0, %p2633_p13 }
  0x86   : > { %2641 = shalt.err (!%p2638_p1)
}
  0x87   : > { %s2642_s9 = scalar_lea.vmem %s482_s22, 4096  ;;  %p2650_p2 = scmp.lt.s32.totalorder %s482_s22, %s482_s22 }
  0x88   : > { %p2643_p5 = scmp.ne.s32.totalorder %s482_s22, %s2642_s9  ;;  %p2651_p10 = scmp.lt.s32.totalorder %s2642_s9, %s2642_s9 }
  0x8a   : > { %p2645_p7 = pnand %p2643_p5, %p2813_p8  ;;  %p2652_p11 = por %p2651_p10, %p2650_p2 }
  0x8c   : > { %p2646_p9 = pneg %p2645_p7 }
  0x8e   : > { %p2653_p12 = pnand %p2652_p11, %p2646_p9 }
  0x90   : > { %2656 = shalt.err (!%p2653_p12)
}
  0x91   : > { %2424 = dma.hbm_to_vmem [thread:$0]  (!%p2797_p6), %s3044_s10, 4096, %s482_s22, [#allocation15], %s2688_s16, %s2688_s16, %s2689_s17  }
  0x92   : > { %p3061_p3 = scmp.ne.s32.totalorder %s3058_s20, 0 }
  0x93   : > { %p3062_p4 = scmp.eq.s32.totalorder (!%p3061_p3), %s2779_s19, 0 }
  0x94   : > { %516 = sbr.rel (%p3061_p3) target bundleno = 799 (0x31f), region = 68 }
  0x9b   : > { %2662 = dma.done.wait (%p3062_p4), [#allocation7], 8192   ;;  %p3063_p8 = pmov %p3062_p4 }
  0x9c   : > { %p3064_p13 = pmov %p3062_p4 }
  0x9d   : > { %2664 = vsyncadd (%p3063_p8), [#allocation7], 4294959104 }
  0x9e   : > { %2666 = dma.done.wait (%p3064_p13), [#allocation9], 16384   ;;  %p3065_p0 = pmov %p3062_p4 }
  0xa0   : > { %2668 = vsyncadd (%p3065_p0), [#allocation9], 4294950912  ;;  %p3066_p1 = pmov %p3065_p0 }
  0xa1   : > { %p3067_p6 = pmov %p3065_p0 }
  0xa2   : > { %2670 = dma.done.wait (%p3066_p1), [#allocation12], 12288  }
  0xa3   : > { %2672 = vsyncadd (%p3067_p6), [#allocation12], 4294955008  ;;  %p3068_p5 = pmov %p3065_p0 }
  0xa4   : > { %p3069_p7 = pmov %p3065_p0 }
  0xa5   : > { %2674 = dma.done.wait (%p3068_p5), [#allocation15], 4096  }
  0xa6   : > { %2676 = vsyncadd (%p3069_p7), [#allocation15], 4294963200  ;;  %p592_p9 = scmp.lt.s32.totalorder %s2779_s19, 6  ;;  %s596_s18 = ssub.s32 6, %s2779_s19 }
  0xa7   : > { %p597_p2 = scmp.lt.s32.totalorder %s596_s18, 6  ;;  %p3070_p10 = scmp.ne.s32.totalorder %s2779_s19, 0 }
  0xa8   : > { %s593_s20 = scalar_select %p592_p9, %s2779_s19, 6 }
  0xa9   : > { %s3077_s18 = smov (!%p597_p2, %s596_s18), 6  ;;  %615 = sbr.rel (%p3070_p10) target bundleno = 176 (0xb0), region = 96 }
  0xaa   : > { %s1968_s25 = sshll.u32 %s593_s20, 1  ;;  %s1969_s24 = sshll.u32 %s3077_s18, 1  ;;  %v2691_v0 = vmov (!%p3070_p10), 0.0  }
  0xab   : > { %s2971_s27 = scalar_lea.vmem %s3034_s0, %s1968_s25  ;;  %s2976_s14 = scalar_lea.vmem %s3035_s1, %s1969_s24  ;;  %616 = vst [vmem:[#allocation2] sm:$0x3] (!%p3070_p10), %v2691_v0  ;;  %617 = vst [vmem:[#allocation3] sm:$0x3] (!%p3070_p10), %v2691_v0 }
  0xac   : > { %s2981_s23 = scalar_lea.vmem %s3046_s12, %s1968_s25  ;;  %s2986_s9 = scalar_lea.vmem %s3047_s13, %s1969_s24  ;;  %618 = vst [vmem:[#allocation4] sm:$0x3] (!%p3070_p10), %v2691_v0  ;;  %619 = vst [vmem:[#allocation5] sm:$0x3] (!%p3070_p10), %v2691_v0 }
  0xb0 PF: > { %v688_v1 = vld [vmem:[#allocation8 + $0x8] sm:$0xff]  ;;  %v690_v3 = vld [vmem:[#allocation8 + $0x18] sm:$0xff]  ;;  %v687_v6 = vld [vmem:[#allocation8] sm:$0xff]  ;;  %v2692_v8 = vmov 0.0   ;;  %p1979_p11 = scmp.ne.s32.totalorder %s2779_s19, 6 }
  0xb1   : > { %v692_v2 = vld [vmem:[#allocation8 + $0x28] sm:$0xff]  ;;  %v694_v5 = vld [vmem:[#allocation8 + $0x38] sm:$0xff]  ;;  %v691_v7 = vld [vmem:[#allocation8 + $0x20] sm:$0xff]  ;;  %816 = vmatprep.mubr.f32.mxu0 %v2692_v8  ;;  %887 = vmatprep.mubr.f32.mxu1 %v2692_v8  ;;  %s3071_s16 = sld [smem:[#allocation21_spill]] (!%p1979_p11)  ;;  %s3072_s24 = sld [smem:[#allocation22_spill]] (!%p1979_p11) }
  0xb2   : > { %v2054_v4 = vpack.c.bf16 %v692_v2, %v688_v1  ;;  %v2086_v9 = vpack.c.bf16 %v694_v5, %v690_v3  ;;  %v2056_v10 = vpack.c.bf16 %v691_v7, %v687_v6  ;;  %v689_v11 = vld [vmem:[#allocation8 + $0x10] sm:$0xff]  ;;  %v696_v13 = vld [vmem:[#allocation8 + $0x48] sm:$0xff]  ;;  %v698_v16 = vld [vmem:[#allocation8 + $0x58] sm:$0xff] }
  0xb3   : > { %v693_v12 = vld [vmem:[#allocation8 + $0x30] sm:$0xff]  ;;  %v700_v15 = vld [vmem:[#allocation8 + $0x68] sm:$0xff]  ;;  %v702_v17 = vld [vmem:[#allocation8 + $0x78] sm:$0xff] }
  0xb4   : > { %2055 = vmatprep.subr.bf16.mxu0 %v2054_v4  ;;  %v2088_v14 = vpack.c.bf16 %v693_v12, %v689_v11  ;;  %2087 = vmatprep.subr.bf16.mxu1 %v2086_v9  ;;  %v2058_v18 = vpack.c.bf16 %v700_v15, %v696_v13  ;;  %v2090_v19 = vpack.c.bf16 %v702_v17, %v698_v16  ;;  %v695_v20 = vld [vmem:[#allocation8 + $0x40] sm:$0xff]  ;;  %v697_v22 = vld [vmem:[#allocation8 + $0x50] sm:$0xff]  ;;  %v704_v25 = vld [vmem:[#allocation8 + $0x88] sm:$0xff] }
  0xb5   : > { %2057 = vmatpush1.bf16.msra.mxu0 %v2056_v10  ;;  %v699_v21 = vld [vmem:[#allocation8 + $0x60] sm:$0xff]  ;;  %v701_v24 = vld [vmem:[#allocation8 + $0x70] sm:$0xff]  ;;  %v708_v26 = vld [vmem:[#allocation8 + $0xa8] sm:$0xff] }
  0xb6   : > { %2089 = vmatpush1.bf16.msra.mxu1 %v2088_v14  ;;  %v2060_v23 = vpack.c.bf16 %v699_v21, %v695_v20  ;;  %2059 = vmatprep.subr.bf16.mxu0 %v2058_v18  ;;  %v2092_v27 = vpack.c.bf16 %v701_v24, %v697_v22  ;;  %v2062_v28 = vpack.c.bf16 %v708_v26, %v704_v25  ;;  %v706_v29 = vld [vmem:[#allocation8 + $0x98] sm:$0xff]  ;;  %v703_v31 = vld [vmem:[#allocation8 + $0x80] sm:$0xff]  ;;  %v705_v34 = vld [vmem:[#allocation8 + $0x90] sm:$0xff] }
  0xb7   : > { %2091 = vmatprep.subr.bf16.mxu1 %v2090_v19  ;;  %v710_v30 = vld [vmem:[#allocation8 + $0xb8] sm:$0xff]  ;;  %v707_v33 = vld [vmem:[#allocation8 + $0xa0] sm:$0xff]  ;;  %v709_v35 = vld [vmem:[#allocation8 + $0xb0] sm:$0xff] }
  0xb8   : > { %v2094_v32 = vpack.c.bf16 %v710_v30, %v706_v29  ;;  %v2064_v36 = vpack.c.bf16 %v707_v33, %v703_v31  ;;  %v712_v37 = vld [vmem:[#allocation8 + $0xc8] sm:$0xff]  ;;  %v714_v39 = vld [vmem:[#allocation8 + $0xd8] sm:$0xff]  ;;  %v2096_v40 = vpack.c.bf16 %v709_v35, %v705_v34  ;;  %v711_v43 = vld [vmem:[#allocation8 + $0xc0] sm:$0xff] }
  0xb9   : > { %2061 = vmatpush1.bf16.msra.mxu0 %v2060_v23  ;;  %v716_v38 = vld [vmem:[#allocation8 + $0xe8] sm:$0xff]  ;;  %v718_v42 = vld [vmem:[#allocation8 + $0xf8] sm:$0xff]  ;;  %v715_v44 = vld [vmem:[#allocation8 + $0xe0] sm:$0xff] }
  0xba   : > { %2093 = vmatpush1.bf16.msra.mxu1 %v2092_v27  ;;  %2063 = vmatprep.subr.bf16.mxu0 %v2062_v28  ;;  %v2066_v41 = vpack.c.bf16 %v716_v38, %v712_v37  ;;  %v2098_v45 = vpack.c.bf16 %v718_v42, %v714_v39  ;;  %v713_v46 = vld [vmem:[#allocation8 + $0xd0] sm:$0xff]  ;;  %v720_v48 = vld [vmem:[#allocation8 + $0x108] sm:$0xff]  ;;  %v722_v50 = vld [vmem:[#allocation8 + $0x118] sm:$0xff]  ;;  %v2068_v52 = vpack.c.bf16 %v715_v44, %v711_v43 }
  0xbb   : > { %2095 = vmatprep.subr.bf16.mxu1 %v2094_v32  ;;  %v717_v47 = vld [vmem:[#allocation8 + $0xf0] sm:$0xff]  ;;  %v724_v49 = vld [vmem:[#allocation8 + $0x128] sm:$0xff]  ;;  %v726_v51 = vld [vmem:[#allocation8 + $0x138] sm:$0xff] }
  0xbc   : > { %v2100_v53 = vpack.c.bf16 %v717_v47, %v713_v46  ;;  %v2070_v54 = vpack.c.bf16 %v724_v49, %v720_v48  ;;  %v719_v55 = vld [vmem:[#allocation8 + $0x100] sm:$0xff]  ;;  %v721_v57 = vld [vmem:[#allocation8 + $0x110] sm:$0xff]  ;;  %v2102_v58 = vpack.c.bf16 %v726_v51, %v722_v50  ;;  %v728_v60 = vld [vmem:[#allocation8 + $0x148] sm:$0xff] }
  0xbd   : > { %2065 = vmatpush1.bf16.msra.mxu0 %v2064_v36  ;;  %v723_v56 = vld [vmem:[#allocation8 + $0x120] sm:$0xff]  ;;  %v725_v59 = vld [vmem:[#allocation8 + $0x130] sm:$0xff]  ;;  %v732_v61 = vld [vmem:[#allocation8 + $0x168] sm:$0xff] }
  0xbe   : > { %2097 = vmatpush1.bf16.msra.mxu1 %v2096_v40  ;;  %2067 = vmatprep.subr.bf16.mxu0 %v2066_v41  ;;  %v730_v62 = vld [vmem:[#allocation8 + $0x158] sm:$0xff]  ;;  %v2072_v0 = vpack.c.bf16 %v723_v56, %v719_v55  ;;  %v2104_v1 = vpack.c.bf16 %v725_v59, %v721_v57  ;;  %v2074_v2 = vpack.c.bf16 %v732_v61, %v728_v60  ;;  %v727_v3 = vld [vmem:[#allocation8 + $0x140] sm:$0xff]  ;;  %v729_v5 = vld [vmem:[#allocation8 + $0x150] sm:$0xff] }
  0xbf   : > { %2099 = vmatprep.subr.bf16.mxu1 %v2098_v45  ;;  %v734_v63 = vld [vmem:[#allocation8 + $0x178] sm:$0xff]  ;;  %v731_v4 = vld [vmem:[#allocation8 + $0x160] sm:$0xff]  ;;  %v733_v7 = vld [vmem:[#allocation8 + $0x170] sm:$0xff] }
  0xc0   : > { %v2106_v6 = vpack.c.bf16 %v734_v63, %v730_v62  ;;  %v736_v9 = vld [vmem:[#allocation8 + $0x188] sm:$0xff]  ;;  %v738_v11 = vld [vmem:[#allocation8 + $0x198] sm:$0xff]  ;;  %v2076_v13 = vpack.c.bf16 %v731_v4, %v727_v3  ;;  %v2108_v14 = vpack.c.bf16 %v733_v7, %v729_v5  ;;  %v735_v16 = vld [vmem:[#allocation8 + $0x180] sm:$0xff] }
  0xc1   : > { %2069 = vmatpush1.bf16.msra.mxu0 %v2068_v52  ;;  %v740_v10 = vld [vmem:[#allocation8 + $0x1a8] sm:$0xff]  ;;  %v742_v12 = vld [vmem:[#allocation8 + $0x1b8] sm:$0xff]  ;;  %v739_v17 = vld [vmem:[#allocation8 + $0x1a0] sm:$0xff] }
  0xc2   : > { %2101 = vmatpush1.bf16.msra.mxu1 %v2100_v53  ;;  %2071 = vmatprep.subr.bf16.mxu0 %v2070_v54  ;;  %v2078_v15 = vpack.c.bf16 %v740_v10, %v736_v9  ;;  %v737_v18 = vld [vmem:[#allocation8 + $0x190] sm:$0xff]  ;;  %v2110_v19 = vpack.c.bf16 %v742_v12, %v738_v11  ;;  %v744_v21 = vld [vmem:[#allocation8 + $0x1c8] sm:$0xff]  ;;  %v746_v23 = vld [vmem:[#allocation8 + $0x1d8] sm:$0xff]  ;;  %v2080_v25 = vpack.c.bf16 %v739_v17, %v735_v16 }
  0xc3   : > { %2103 = vmatprep.subr.bf16.mxu1 %v2102_v58  ;;  %v741_v20 = vld [vmem:[#allocation8 + $0x1b0] sm:$0xff]  ;;  %v748_v22 = vld [vmem:[#allocation8 + $0x1e8] sm:$0xff]  ;;  %v750_v24 = vld [vmem:[#allocation8 + $0x1f8] sm:$0xff] }
  0xc4   : > { %v2112_v26 = vpack.c.bf16 %v741_v20, %v737_v18  ;;  %v2082_v27 = vpack.c.bf16 %v748_v22, %v744_v21  ;;  %v743_v28 = vld [vmem:[#allocation8 + $0x1c0] sm:$0xff]  ;;  %v745_v30 = vld [vmem:[#allocation8 + $0x1d0] sm:$0xff]  ;;  %v2114_v31 = vpack.c.bf16 %v750_v24, %v746_v23  ;;  %v624_v33 = vld [vmem:[#allocation6 + $0x8] sm:$0xff] }
  0xc5   : > { %2073 = vmatpush1.bf16.msra.mxu0 %v2072_v0  ;;  %v747_v29 = vld [vmem:[#allocation8 + $0x1e0] sm:$0xff]  ;;  %v749_v32 = vld [vmem:[#allocation8 + $0x1f0] sm:$0xff]  ;;  %v628_v34 = vld [vmem:[#allocation6 + $0x28] sm:$0xff] }
  0xc6   : > { %2105 = vmatpush1.bf16.msra.mxu1 %v2104_v1  ;;  %2075 = vmatprep.subr.bf16.mxu0 %v2074_v2  ;;  %v626_v35 = vld [vmem:[#allocation6 + $0x18] sm:$0xff]  ;;  %v2084_v37 = vpack.c.bf16 %v747_v29, %v743_v28  ;;  %v2116_v38 = vpack.c.bf16 %v749_v32, %v745_v30  ;;  %v2118_v39 = vpack.c.bf16 %v628_v34, %v624_v33  ;;  %v623_v40 = vld [vmem:[#allocation6] sm:$0xff]  ;;  %v625_v42 = vld [vmem:[#allocation6 + $0x10] sm:$0xff] }
  0xc7   : > { %2107 = vmatprep.subr.bf16.mxu1 %v2106_v6  ;;  %v630_v36 = vld [vmem:[#allocation6 + $0x38] sm:$0xff]  ;;  %v627_v41 = vld [vmem:[#allocation6 + $0x20] sm:$0xff]  ;;  %v629_v44 = vld [vmem:[#allocation6 + $0x30] sm:$0xff] }
  0xc8   : > { %v2150_v43 = vpack.c.bf16 %v630_v36, %v626_v35  ;;  %v632_v45 = vld [vmem:[#allocation6 + $0x48] sm:$0xff]  ;;  %v634_v47 = vld [vmem:[#allocation6 + $0x58] sm:$0xff]  ;;  %v2120_v50 = vpack.c.bf16 %v627_v41, %v623_v40  ;;  %v2152_v51 = vpack.c.bf16 %v629_v44, %v625_v42  ;;  %v631_v53 = vld [vmem:[#allocation6 + $0x40] sm:$0xff] }
  0xc9   : > { %2077 = vmatpush1.bf16.msra.mxu0 %v2076_v13  ;;  %v636_v46 = vld [vmem:[#allocation6 + $0x68] sm:$0xff]  ;;  %v638_v48 = vld [vmem:[#allocation6 + $0x78] sm:$0xff]  ;;  %v635_v54 = vld [vmem:[#allocation6 + $0x60] sm:$0xff] }
  0xca   : > { %2109 = vmatpush1.bf16.msra.mxu1 %v2108_v14  ;;  %2079 = vmatprep.subr.bf16.mxu0 %v2078_v15  ;;  %v621_v49 = vld [vmem:[#allocation2] sm:$0x3]  ;;  %v2122_v52 = vpack.c.bf16 %v636_v46, %v632_v45  ;;  %v633_v55 = vld [vmem:[#allocation6 + $0x50] sm:$0xff]  ;;  %v2154_v56 = vpack.c.bf16 %v638_v48, %v634_v47  ;;  %v640_v58 = vld [vmem:[#allocation6 + $0x88] sm:$0xff]  ;;  %v2124_v62 = vpack.c.bf16 %v635_v54, %v631_v53 }
  0xcb   : > { %2111 = vmatprep.subr.bf16.mxu1 %v2110_v19  ;;  %v637_v57 = vld [vmem:[#allocation6 + $0x70] sm:$0xff]  ;;  %v644_v59 = vld [vmem:[#allocation6 + $0xa8] sm:$0xff]  ;;  %v642_v60 = vld [vmem:[#allocation6 + $0x98] sm:$0xff] }
  0xcc   : > { %v646_v61 = vld [vmem:[#allocation6 + $0xb8] sm:$0xff]  ;;  %v2156_v63 = vpack.c.bf16 %v637_v57, %v633_v55  ;;  %v2126_v0 = vpack.c.bf16 %v644_v59, %v640_v58  ;;  %v639_v1 = vld [vmem:[#allocation6 + $0x80] sm:$0xff]  ;;  %v641_v3 = vld [vmem:[#allocation6 + $0x90] sm:$0xff] }
  0xcd   : > { %2081 = vmatpush1.bf16.msra.mxu0 %v2080_v25  ;;  %v643_v2 = vld [vmem:[#allocation6 + $0xa0] sm:$0xff]  ;;  %v2158_v4 = vpack.c.bf16 %v646_v61, %v642_v60  ;;  %v645_v5 = vld [vmem:[#allocation6 + $0xb0] sm:$0xff]  ;;  %v648_v6 = vld [vmem:[#allocation6 + $0xc8] sm:$0xff] }
  0xce   : > { %2113 = vmatpush1.bf16.msra.mxu1 %v2112_v26  ;;  %2083 = vmatprep.subr.bf16.mxu0 %v2082_v27  ;;  %v652_v7 = vld [vmem:[#allocation6 + $0xe8] sm:$0xff]  ;;  %v650_v9 = vld [vmem:[#allocation6 + $0xd8] sm:$0xff]  ;;  %v2128_v11 = vpack.c.bf16 %v643_v2, %v639_v1  ;;  %v2160_v12 = vpack.c.bf16 %v645_v5, %v641_v3  ;;  %v647_v14 = vld [vmem:[#allocation6 + $0xc0] sm:$0xff] }
  0xcf   : > { %2115 = vmatprep.subr.bf16.mxu1 %v2114_v31  ;;  %v654_v10 = vld [vmem:[#allocation6 + $0xf8] sm:$0xff]  ;;  %v2130_v13 = vpack.c.bf16 %v652_v7, %v648_v6  ;;  %v651_v15 = vld [vmem:[#allocation6 + $0xe0] sm:$0xff]  ;;  %v649_v16 = vld [vmem:[#allocation6 + $0xd0] sm:$0xff] }
  0xd0   : > { %v2162_v17 = vpack.c.bf16 %v654_v10, %v650_v9  ;;  %v653_v18 = vld [vmem:[#allocation6 + $0xf0] sm:$0xff]  ;;  %v656_v19 = vld [vmem:[#allocation6 + $0x108] sm:$0xff]  ;;  %v658_v21 = vld [vmem:[#allocation6 + $0x118] sm:$0xff]  ;;  %v2132_v23 = vpack.c.bf16 %v651_v15, %v647_v14 }
  0xd1   : > { %2085 = vmatpush1.bf16.msra.mxu0 %v2084_v37  ;;  %v660_v20 = vld [vmem:[#allocation6 + $0x128] sm:$0xff]  ;;  %v662_v22 = vld [vmem:[#allocation6 + $0x138] sm:$0xff]  ;;  %v2164_v24 = vpack.c.bf16 %v653_v18, %v649_v16  ;;  %v655_v26 = vld [vmem:[#allocation6 + $0x100] sm:$0xff] }
  0xd2   : > { %2117 = vmatpush1.bf16.msra.mxu1 %v2116_v38  ;;  %2119 = vmatprep.subr.bf16.mxu0 %v2118_v39  ;;  %v2134_v25 = vpack.c.bf16 %v660_v20, %v656_v19  ;;  %v659_v27 = vld [vmem:[#allocation6 + $0x120] sm:$0xff]  ;;  %v657_v28 = vld [vmem:[#allocation6 + $0x110] sm:$0xff]  ;;  %v2166_v29 = vpack.c.bf16 %v662_v22, %v658_v21  ;;  %v664_v31 = vld [vmem:[#allocation6 + $0x148] sm:$0xff] }
  0xd3   : > { %2151 = vmatprep.subr.bf16.mxu1 %v2150_v43  ;;  %v661_v30 = vld [vmem:[#allocation6 + $0x130] sm:$0xff]  ;;  %v668_v32 = vld [vmem:[#allocation6 + $0x168] sm:$0xff]  ;;  %v666_v33 = vld [vmem:[#allocation6 + $0x158] sm:$0xff]  ;;  %v2136_v35 = vpack.c.bf16 %v659_v27, %v655_v26 }
  0xd4   : > { %817 = vmatmul.mubr.f32.vlgmr.msra.gmra.mrb[0].mxu0 %v621_v49  ;;  %v670_v34 = vld [vmem:[#allocation6 + $0x178] sm:$0xff]  ;;  %v2168_v36 = vpack.c.bf16 %v661_v30, %v657_v28  ;;  %v2138_v37 = vpack.c.bf16 %v668_v32, %v664_v31  ;;  %v663_v38 = vld [vmem:[#allocation6 + $0x140] sm:$0xff]  ;;  %v665_v40 = vld [vmem:[#allocation6 + $0x150] sm:$0xff] }
  0xd5   : > { %888 = vmatmul.mubr.f32.vlgmr.msra.gmra.mrb[0].mxu1 %v621_v49  ;;  %2121 = vmatpush1.bf16.msra.mxu0 %v2120_v50  ;;  %v667_v39 = vld [vmem:[#allocation6 + $0x160] sm:$0xff]  ;;  %v2170_v41 = vpack.c.bf16 %v670_v34, %v666_v33  ;;  %v669_v42 = vld [vmem:[#allocation6 + $0x170] sm:$0xff]  ;;  %v672_v43 = vld [vmem:[#allocation6 + $0x188] sm:$0xff] }
  0xd6   : > { %2153 = vmatpush1.bf16.msra.mxu1 %v2152_v51  ;;  %2123 = vmatprep.subr.bf16.mxu0 %v2122_v52  ;;  %v676_v44 = vld [vmem:[#allocation6 + $0x1a8] sm:$0xff]  ;;  %v674_v45 = vld [vmem:[#allocation6 + $0x198] sm:$0xff]  ;;  %v2140_v47 = vpack.c.bf16 %v667_v39, %v663_v38  ;;  %v2172_v48 = vpack.c.bf16 %v669_v42, %v665_v40  ;;  %v671_v50 = vld [vmem:[#allocation6 + $0x180] sm:$0xff] }
  0xd7   : > { %2155 = vmatprep.subr.bf16.mxu1 %v2154_v56  ;;  %958 = vmatprep.mubr.f32.mxu0 %v2692_v8  ;;  %v678_v46 = vld [vmem:[#allocation6 + $0x1b8] sm:$0xff]  ;;  %v2142_v49 = vpack.c.bf16 %v676_v44, %v672_v43  ;;  %v675_v51 = vld [vmem:[#allocation6 + $0x1a0] sm:$0xff]  ;;  %v673_v52 = vld [vmem:[#allocation6 + $0x190] sm:$0xff] }
  0xd8   : > { %1029 = vmatprep.mubr.f32.mxu1 %v2692_v8  ;;  %v2174_v53 = vpack.c.bf16 %v678_v46, %v674_v45  ;;  %v677_v54 = vld [vmem:[#allocation6 + $0x1b0] sm:$0xff]  ;;  %v680_v55 = vld [vmem:[#allocation6 + $0x1c8] sm:$0xff]  ;;  %v682_v57 = vld [vmem:[#allocation6 + $0x1d8] sm:$0xff]  ;;  %v2144_v59 = vpack.c.bf16 %v675_v51, %v671_v50 }
  0xd9   : > { %2125 = vmatpush1.bf16.msra.mxu0 %v2124_v62  ;;  %v684_v56 = vld [vmem:[#allocation6 + $0x1e8] sm:$0xff]  ;;  %v686_v58 = vld [vmem:[#allocation6 + $0x1f8] sm:$0xff]  ;;  %v2176_v60 = vpack.c.bf16 %v677_v54, %v673_v52  ;;  %v679_v62 = vld [vmem:[#allocation6 + $0x1c0] sm:$0xff] }
  0xda   : > { %2157 = vmatpush1.bf16.msra.mxu1 %v2156_v63  ;;  %2127 = vmatprep.subr.bf16.mxu0 %v2126_v0  ;;  %v2146_v61 = vpack.c.bf16 %v684_v56, %v680_v55  ;;  %v683_v63 = vld [vmem:[#allocation6 + $0x1e0] sm:$0xff]  ;;  %v681_v0 = vld [vmem:[#allocation6 + $0x1d0] sm:$0xff]  ;;  %v2178_v1 = vpack.c.bf16 %v686_v58, %v682_v57  ;;  %v1153_v3 = vld [vmem:[#allocation11 + $0x8] sm:$0xff] }
  0xdb   : > { %2159 = vmatprep.subr.bf16.mxu1 %v2158_v4  ;;  %v685_v2 = vld [vmem:[#allocation6 + $0x1f0] sm:$0xff]  ;;  %v1157_v4 = vld [vmem:[#allocation11 + $0x28] sm:$0xff]  ;;  %v1155_v5 = vld [vmem:[#allocation11 + $0x18] sm:$0xff]  ;;  %v2148_v7 = vpack.c.bf16 %v683_v63, %v679_v62 }
  0xdc   : > { %v1159_v6 = vld [vmem:[#allocation11 + $0x38] sm:$0xff]  ;;  %v2180_v9 = vpack.c.bf16 %v685_v2, %v681_v0  ;;  %v2182_v10 = vpack.c.bf16 %v1157_v4, %v1153_v3  ;;  %v1158_v15 = vld [vmem:[#allocation11 + $0x30] sm:$0xff]  ;;  %v1161_v16 = vld [vmem:[#allocation11 + $0x48] sm:$0xff] }
  0xdd   : > { %2129 = vmatpush1.bf16.msra.mxu0 %v2128_v11  ;;  %v1152_v11 = vld [vmem:[#allocation11] sm:$0xff]  ;;  %v2214_v14 = vpack.c.bf16 %v1159_v6, %v1155_v5  ;;  %v1163_v18 = vld [vmem:[#allocation11 + $0x58] sm:$0xff]  ;;  %v1162_v26 = vld [vmem:[#allocation11 + $0x50] sm:$0xff] }
  0xde   : > { %2161 = vmatpush1.bf16.msra.mxu1 %v2160_v12  ;;  %2131 = vmatprep.subr.bf16.mxu0 %v2130_v13  ;;  %v1156_v12 = vld [vmem:[#allocation11 + $0x20] sm:$0xff]  ;;  %v1154_v13 = vld [vmem:[#allocation11 + $0x10] sm:$0xff]  ;;  %v1167_v19 = vld [vmem:[#allocation11 + $0x78] sm:$0xff] }
  0xdf   : > { %2163 = vmatprep.subr.bf16.mxu1 %v2162_v17  ;;  %v1165_v17 = vld [vmem:[#allocation11 + $0x68] sm:$0xff]  ;;  %v620_v20 = vld [vmem:[%s2971_s27] sm:$0x3]  ;;  %v2184_v21 = vpack.c.bf16 %v1156_v12, %v1152_v11  ;;  %v2216_v22 = vpack.c.bf16 %v1158_v15, %v1154_v13  ;;  %v2218_v27 = vpack.c.bf16 %v1167_v19, %v1163_v18  ;;  %v1166_v28 = vld [vmem:[#allocation11 + $0x70] sm:$0xff] }
  0xe0   : > { %v1173_v30 = vld [vmem:[#allocation11 + $0xa8] sm:$0xff]  ;;  %v1171_v31 = vld [vmem:[#allocation11 + $0x98] sm:$0xff]  ;;  %v2220_v34 = vpack.c.bf16 %v1166_v28, %v1162_v26  ;;  %v1170_v38 = vld [vmem:[#allocation11 + $0x90] sm:$0xff] }
  0xe1   : > { %2133 = vmatpush1.bf16.msra.mxu0 %v2132_v23  ;;  %v2186_v23 = vpack.c.bf16 %v1165_v17, %v1161_v16  ;;  %v1175_v32 = vld [vmem:[#allocation11 + $0xb8] sm:$0xff]  ;;  %v1174_v40 = vld [vmem:[#allocation11 + $0xb0] sm:$0xff]  ;;  %v1181_v42 = vld [vmem:[#allocation11 + $0xe8] sm:$0xff] }
  0xe2   : > { %2165 = vmatpush1.bf16.msra.mxu1 %v2164_v24  ;;  %2135 = vmatprep.subr.bf16.mxu0 %v2134_v25  ;;  %v1160_v24 = vld [vmem:[#allocation11 + $0x40] sm:$0xff]  ;;  %v2222_v39 = vpack.c.bf16 %v1175_v32, %v1171_v31  ;;  %v1179_v43 = vld [vmem:[#allocation11 + $0xd8] sm:$0xff]  ;;  %v2224_v46 = vpack.c.bf16 %v1174_v40, %v1170_v38  ;;  %v1178_v50 = vld [vmem:[#allocation11 + $0xd0] sm:$0xff] }
  0xe3   : > { %2167 = vmatprep.subr.bf16.mxu1 %v2166_v29  ;;  %v1164_v25 = vld [vmem:[#allocation11 + $0x60] sm:$0xff]  ;;  %v1169_v29 = vld [vmem:[#allocation11 + $0x88] sm:$0xff]  ;;  %v1183_v44 = vld [vmem:[#allocation11 + $0xf8] sm:$0xff] }
  0xe4   : > { %v2188_v33 = vpack.c.bf16 %v1164_v25, %v1160_v24  ;;  %v2226_v51 = vpack.c.bf16 %v1183_v44, %v1179_v43  ;;  %v1182_v52 = vld [vmem:[#allocation11 + $0xf0] sm:$0xff]  ;;  %v1189_v54 = vld [vmem:[#allocation11 + $0x128] sm:$0xff]  ;;  %v1187_v55 = vld [vmem:[#allocation11 + $0x118] sm:$0xff] }
  0xe5   : > { %2137 = vmatpush1.bf16.msra.mxu0 %v2136_v35  ;;  %v2190_v35 = vpack.c.bf16 %v1173_v30, %v1169_v29  ;;  %v1191_v56 = vld [vmem:[#allocation11 + $0x138] sm:$0xff]  ;;  %v2228_v58 = vpack.c.bf16 %v1182_v52, %v1178_v50  ;;  %v1186_v62 = vld [vmem:[#allocation11 + $0x110] sm:$0xff]  ;;  %v1197_v2 = vld [vmem:[#allocation11 + $0x168] sm:$0xff] }
  0xe6   : > { %2169 = vmatpush1.bf16.msra.mxu1 %v2168_v36  ;;  %2139 = vmatprep.subr.bf16.mxu0 %v2138_v37  ;;  %v1168_v36 = vld [vmem:[#allocation11 + $0x80] sm:$0xff]  ;;  %v2230_v63 = vpack.c.bf16 %v1191_v56, %v1187_v55  ;;  %v1190_v0 = vld [vmem:[#allocation11 + $0x130] sm:$0xff]  ;;  %v1195_v3 = vld [vmem:[#allocation11 + $0x158] sm:$0xff] }
  0xe7   : > { %2171 = vmatprep.subr.bf16.mxu1 %v2170_v41  ;;  %v1172_v37 = vld [vmem:[#allocation11 + $0xa0] sm:$0xff]  ;;  %v1177_v41 = vld [vmem:[#allocation11 + $0xc8] sm:$0xff]  ;;  %v1199_v4 = vld [vmem:[#allocation11 + $0x178] sm:$0xff]  ;;  %v2232_v6 = vpack.c.bf16 %v1190_v0, %v1186_v62 }
  0xe8   : > { %v2192_v45 = vpack.c.bf16 %v1172_v37, %v1168_v36  ;;  %v1194_v11 = vld [vmem:[#allocation11 + $0x150] sm:$0xff]  ;;  %v2234_v12 = vpack.c.bf16 %v1199_v4, %v1195_v3  ;;  %v1205_v15 = vld [vmem:[#allocation11 + $0x1a8] sm:$0xff]  ;;  %v1203_v16 = vld [vmem:[#allocation11 + $0x198] sm:$0xff] }
  0xe9   : > { %2141 = vmatpush1.bf16.msra.mxu0 %v2140_v47  ;;  %v2194_v47 = vpack.c.bf16 %v1181_v42, %v1177_v41  ;;  %v1198_v13 = vld [vmem:[#allocation11 + $0x170] sm:$0xff]  ;;  %v1207_v17 = vld [vmem:[#allocation11 + $0x1b8] sm:$0xff]  ;;  %v1209_v26 = vld [vmem:[#allocation11 + $0x1c8] sm:$0xff] }
  0xea   : > { %2173 = vmatpush1.bf16.msra.mxu1 %v2172_v48  ;;  %2143 = vmatprep.subr.bf16.mxu0 %v2142_v49  ;;  %v1176_v48 = vld [vmem:[#allocation11 + $0xc0] sm:$0xff]  ;;  %v2236_v19 = vpack.c.bf16 %v1198_v13, %v1194_v11  ;;  %v2238_v24 = vpack.c.bf16 %v1207_v17, %v1203_v16  ;;  %v1206_v25 = vld [vmem:[#allocation11 + $0x1b0] sm:$0xff]  ;;  %v1211_v28 = vld [vmem:[#allocation11 + $0x1d8] sm:$0xff] }
  0xeb   : > { %2175 = vmatprep.subr.bf16.mxu1 %v2174_v53  ;;  %v1180_v49 = vld [vmem:[#allocation11 + $0xe0] sm:$0xff]  ;;  %v1185_v53 = vld [vmem:[#allocation11 + $0x108] sm:$0xff]  ;;  %v1215_v29 = vld [vmem:[#allocation11 + $0x1f8] sm:$0xff] }
  0xec   : > { %v2196_v57 = vpack.c.bf16 %v1180_v49, %v1176_v48  ;;  %v2242_v36 = vpack.c.bf16 %v1215_v29, %v1211_v28  ;;  %v1214_v37 = vld [vmem:[#allocation11 + $0x1f0] sm:$0xff]  ;;  %v1089_v38 = vld [vmem:[#allocation10 + $0x8] sm:$0xff]  ;;  %v1091_v40 = vld [vmem:[#allocation10 + $0x18] sm:$0xff] }
  0xed   : > { %2145 = vmatpush1.bf16.msra.mxu0 %v2144_v59  ;;  %v2198_v59 = vpack.c.bf16 %v1189_v54, %v1185_v53  ;;  %v1095_v41 = vld [vmem:[#allocation10 + $0x38] sm:$0xff]  ;;  %v1094_v49 = vld [vmem:[#allocation10 + $0x30] sm:$0xff]  ;;  %v1097_v50 = vld [vmem:[#allocation10 + $0x48] sm:$0xff] }
  0xee   : > { %2177 = vmatpush1.bf16.msra.mxu1 %v2176_v60  ;;  %2147 = vmatprep.subr.bf16.mxu0 %v2146_v61  ;;  %v1184_v60 = vld [vmem:[#allocation11 + $0x100] sm:$0xff]  ;;  %v2278_v48 = vpack.c.bf16 %v1095_v41, %v1091_v40  ;;  %v1099_v52 = vld [vmem:[#allocation10 + $0x58] sm:$0xff]  ;;  %v1102_v62 = vld [vmem:[#allocation10 + $0x70] sm:$0xff] }
  0xef   : > { %2179 = vmatprep.subr.bf16.mxu1 %v2178_v1  ;;  %v1188_v61 = vld [vmem:[#allocation11 + $0x120] sm:$0xff]  ;;  %v1193_v1 = vld [vmem:[#allocation11 + $0x148] sm:$0xff]  ;;  %v1103_v53 = vld [vmem:[#allocation10 + $0x78] sm:$0xff] }
  0xf0   : > { %v2200_v5 = vpack.c.bf16 %v1188_v61, %v1184_v60  ;;  %v1086_v54 = vld [vmem:[#allocation4] sm:$0x3]  ;;  %v1098_v60 = vld [vmem:[#allocation10 + $0x50] sm:$0xff]  ;;  %v2282_v61 = vpack.c.bf16 %v1103_v53, %v1099_v52  ;;  %v1109_v0 = vld [vmem:[#allocation10 + $0xa8] sm:$0xff] }
  0xf1   : > { %2149 = vmatpush1.bf16.msra.mxu0 %v2148_v7  ;;  %v2202_v7 = vpack.c.bf16 %v1197_v2, %v1193_v1  ;;  %v1107_v1 = vld [vmem:[#allocation10 + $0x98] sm:$0xff]  ;;  %v2284_v4 = vpack.c.bf16 %v1102_v62, %v1098_v60  ;;  %v1110_v11 = vld [vmem:[#allocation10 + $0xb0] sm:$0xff]  ;;  %v1117_v13 = vld [vmem:[#allocation10 + $0xe8] sm:$0xff] }
  0xf2   : > { %2181 = vmatpush1.bf16.msra.mxu1 %v2180_v9  ;;  %2183 = vmatprep.subr.bf16.mxu0 %v2182_v10  ;;  %v1192_v9 = vld [vmem:[#allocation11 + $0x140] sm:$0xff]  ;;  %v1111_v2 = vld [vmem:[#allocation10 + $0xb8] sm:$0xff]  ;;  %v1149_v60 = vld [vmem:[#allocation10 + $0x1e8] sm:$0xff] }
  0xf3   : > { %2215 = vmatprep.subr.bf16.mxu1 %v2214_v14  ;;  %v1196_v10 = vld [vmem:[#allocation11 + $0x160] sm:$0xff]  ;;  %v1201_v14 = vld [vmem:[#allocation11 + $0x188] sm:$0xff]  ;;  %v1151_v62 = vld [vmem:[#allocation10 + $0x1f8] sm:$0xff] }
  0xf4   : > { %959 = vmatmul.mubr.f32.vlgmr.msra.gmra.mrb[0].mxu0 %v620_v20  ;;  %v2204_v18 = vpack.c.bf16 %v1196_v10, %v1192_v9  ;;  %v1106_v9 = vld [vmem:[#allocation10 + $0x90] sm:$0xff]  ;;  %v2286_v10 = vpack.c.bf16 %v1111_v2, %v1107_v1  ;;  %v1144_v2 = vld [vmem:[#allocation10 + $0x1c0] sm:$0xff] }
  0xf5   : > { %1030 = vmatmul.mubr.f32.vlgmr.msra.gmra.mrb[0].mxu1 %v620_v20  ;;  %2185 = vmatpush1.bf16.msra.mxu0 %v2184_v21  ;;  %v2206_v20 = vpack.c.bf16 %v1205_v15, %v1201_v14  ;;  %v1200_v21 = vld [vmem:[#allocation11 + $0x180] sm:$0xff]  ;;  %v1115_v14 = vld [vmem:[#allocation10 + $0xd8] sm:$0xff]  ;;  %v2288_v17 = vpack.c.bf16 %v1110_v11, %v1106_v9  ;;  %v1037_v11 = vlaneseq }
  0xf6   : > { %2217 = vmatpush1.bf16.msra.mxu1 %v2216_v22  ;;  %2187 = vmatprep.subr.bf16.mxu0 %v2186_v23  ;;  %v1204_v22 = vld [vmem:[#allocation11 + $0x1a0] sm:$0xff]  ;;  %v1202_v23 = vld [vmem:[#allocation11 + $0x190] sm:$0xff]  ;;  %v1119_v15 = vld [vmem:[#allocation10 + $0xf8] sm:$0xff] }
  0xf7   : > { %2219 = vmatprep.subr.bf16.mxu1 %v2218_v27  ;;  %1281 = vmatprep.mubr.f32.mxu0 %v2692_v8  ;;  %v1213_v27 = vld [vmem:[#allocation11 + $0x1e8] sm:$0xff]  ;;  %v2208_v30 = vpack.c.bf16 %v1204_v22, %v1200_v21  ;;  %v2240_v31 = vpack.c.bf16 %v1206_v25, %v1202_v23  ;;  %v1114_v21 = vld [vmem:[#allocation10 + $0xd0] sm:$0xff]  ;;  %v2290_v22 = vpack.c.bf16 %v1119_v15, %v1115_v14  ;;  %v751_v14 = vld [vmem:[%s3038_s4] sm:$0xf] }
  0xf8   : > { %1352 = vmatprep.mubr.f32.mxu1 %v2692_v8  ;;  %v2210_v32 = vpack.c.bf16 %v1213_v27, %v1209_v26  ;;  %v1118_v23 = vld [vmem:[#allocation10 + $0xf0] sm:$0xff]  ;;  %v1125_v25 = vld [vmem:[#allocation10 + $0x128] sm:$0xff]  ;;  %v1123_v26 = vld [vmem:[#allocation10 + $0x118] sm:$0xff] }
  0xf9   : > { %2189 = vmatpush1.bf16.msra.mxu0 %v2188_v33  ;;  %v1208_v33 = vld [vmem:[#allocation11 + $0x1c0] sm:$0xff]  ;;  %v1127_v27 = vld [vmem:[#allocation10 + $0x138] sm:$0xff] }
  0xfa   : > { %2221 = vmatpush1.bf16.msra.mxu1 %v2220_v34  ;;  %2191 = vmatprep.subr.bf16.mxu0 %v2190_v35  ;;  %v1212_v34 = vld [vmem:[#allocation11 + $0x1e0] sm:$0xff]  ;;  %v1210_v35 = vld [vmem:[#allocation11 + $0x1d0] sm:$0xff] }
  0xfb   : > { %2223 = vmatprep.subr.bf16.mxu1 %v2222_v39  ;;  %v1093_v39 = vld [vmem:[#allocation10 + $0x28] sm:$0xff]  ;;  %v2212_v42 = vpack.c.bf16 %v1212_v34, %v1208_v33  ;;  %v2244_v43 = vpack.c.bf16 %v1214_v37, %v1210_v35  ;;  %v2294_v33 = vpack.c.bf16 %v1127_v27, %v1123_v26  ;;  %v1126_v34 = vld [vmem:[#allocation10 + $0x130] sm:$0xff]  ;;  %v1131_v37 = vld [vmem:[#allocation10 + $0x158] sm:$0xff] }
  0xfc   : > { %v2246_v44 = vpack.c.bf16 %v1093_v39, %v1089_v38  ;;  %v1129_v35 = vld [vmem:[#allocation10 + $0x148] sm:$0xff]  ;;  %v1135_v38 = vld [vmem:[#allocation10 + $0x178] sm:$0xff] }
  0xfd   : > { %2193 = vmatpush1.bf16.msra.mxu0 %v2192_v45  ;;  %v1088_v45 = vld [vmem:[#allocation10] sm:$0xff] }
  0xfe   : > { %2225 = vmatpush1.bf16.msra.mxu1 %v2224_v46  ;;  %2195 = vmatprep.subr.bf16.mxu0 %v2194_v47  ;;  %v1092_v46 = vld [vmem:[#allocation10 + $0x20] sm:$0xff]  ;;  %v1090_v47 = vld [vmem:[#allocation10 + $0x10] sm:$0xff] }
  0xff   : > { %2227 = vmatprep.subr.bf16.mxu1 %v2226_v51  ;;  %v1101_v51 = vld [vmem:[#allocation10 + $0x68] sm:$0xff]  ;;  %v2248_v55 = vpack.c.bf16 %v1092_v46, %v1088_v45  ;;  %v2280_v56 = vpack.c.bf16 %v1094_v49, %v1090_v47  ;;  %v2298_v45 = vpack.c.bf16 %v1135_v38, %v1131_v37  ;;  %v1134_v46 = vld [vmem:[#allocation10 + $0x170] sm:$0xff]  ;;  %v1139_v49 = vld [vmem:[#allocation10 + $0x198] sm:$0xff] }
 0x100   : > { %v1137_v47 = vld [vmem:[#allocation10 + $0x188] sm:$0xff]  ;;  %v622_v38 = vld [vmem:[#allocation3] sm:$0x3] }
 0x101   : > { %2197 = vmatpush1.bf16.msra.mxu0 %v2196_v57  ;;  %v2250_v57 = vpack.c.bf16 %v1101_v51, %v1097_v50  ;;  %v1143_v50 = vld [vmem:[#allocation10 + $0x1b8] sm:$0xff] }
 0x102   : > { %2229 = vmatpush1.bf16.msra.mxu1 %v2228_v58  ;;  %2199 = vmatprep.subr.bf16.mxu0 %v2198_v59  ;;  %v1096_v58 = vld [vmem:[#allocation10 + $0x40] sm:$0xff] }
 0x103   : > { %2231 = vmatprep.subr.bf16.mxu1 %v2230_v63  ;;  %v1100_v59 = vld [vmem:[#allocation10 + $0x60] sm:$0xff]  ;;  %v1105_v63 = vld [vmem:[#allocation10 + $0x88] sm:$0xff] }
 0x104   : > { %v2252_v3 = vpack.c.bf16 %v1100_v59, %v1096_v58  ;;  %v1142_v58 = vld [vmem:[#allocation10 + $0x1b0] sm:$0xff]  ;;  %v1145_v59 = vld [vmem:[#allocation10 + $0x1c8] sm:$0xff] }
 0x105   : > { %2201 = vmatpush1.bf16.msra.mxu0 %v2200_v5  ;;  %v2254_v5 = vpack.c.bf16 %v1109_v0, %v1105_v63  ;;  %v2274_v1 = vpack.c.bf16 %v1149_v60, %v1145_v59 }
 0x106   : > { %2233 = vmatpush1.bf16.msra.mxu1 %v2232_v6  ;;  %2203 = vmatprep.subr.bf16.mxu0 %v2202_v7  ;;  %v1104_v6 = vld [vmem:[#allocation10 + $0x80] sm:$0xff] }
 0x107   : > { %2235 = vmatprep.subr.bf16.mxu1 %v2234_v12  ;;  %v1108_v7 = vld [vmem:[#allocation10 + $0xa0] sm:$0xff]  ;;  %v1113_v12 = vld [vmem:[#allocation10 + $0xc8] sm:$0xff] }
 0x108   : > { %v2256_v16 = vpack.c.bf16 %v1108_v7, %v1104_v6  ;;  %v1150_v6 = vld [vmem:[#allocation10 + $0x1f0] sm:$0xff] }
 0x109   : > { %2205 = vmatpush1.bf16.msra.mxu0 %v2204_v18  ;;  %v2258_v18 = vpack.c.bf16 %v1117_v13, %v1113_v12  ;;  %v1038_v12 = vshrl.u32 %v1037_v11, 7 }
 0x10a   : > { %2237 = vmatpush1.bf16.msra.mxu1 %v2236_v19  ;;  %2207 = vmatprep.subr.bf16.mxu0 %v2206_v20  ;;  %v1112_v19 = vld [vmem:[#allocation10 + $0xc0] sm:$0xff] }
 0x10b   : > { %2239 = vmatprep.subr.bf16.mxu1 %v2238_v24  ;;  %v1116_v20 = vld [vmem:[#allocation10 + $0xe0] sm:$0xff]  ;;  %v1121_v24 = vld [vmem:[#allocation10 + $0x108] sm:$0xff]  ;;  %v1039_v13 = vsub.s32 0, %v1038_v12  ;;  %v1043_v15 = vsub.s32 1, %v1038_v12 }
 0x10c   : > { %v2260_v28 = vpack.c.bf16 %v1116_v20, %v1112_v19  ;;  %v2262_v29 = vpack.c.bf16 %v1125_v25, %v1121_v24  ;;  %v1051_v19 = vsub.s32 3, %v1038_v12 }
 0x10d   : > { %2209 = vmatpush1.bf16.msra.mxu0 %v2208_v30  ;;  %v1120_v30 = vld [vmem:[#allocation10 + $0x100] sm:$0xff] }
 0x10e   : > { %2241 = vmatpush1.bf16.msra.mxu1 %v2240_v31  ;;  %2211 = vmatprep.subr.bf16.mxu0 %v2210_v32  ;;  %v1124_v31 = vld [vmem:[#allocation10 + $0x120] sm:$0xff]  ;;  %v1122_v32 = vld [vmem:[#allocation10 + $0x110] sm:$0xff]  ;;  %v1052_v27 = vrot.slane %v751_v14, %v1051_v19 }
 0x10f   : > { %2243 = vmatprep.subr.bf16.mxu1 %v2242_v36  ;;  %v1133_v36 = vld [vmem:[#allocation10 + $0x168] sm:$0xff]  ;;  %v2264_v39 = vpack.c.bf16 %v1124_v31, %v1120_v30  ;;  %v2296_v40 = vpack.c.bf16 %v1126_v34, %v1122_v32 }
 0x110   : > { %v2266_v41 = vpack.c.bf16 %v1133_v36, %v1129_v35 }
 0x111   : > { %2213 = vmatpush1.bf16.msra.mxu0 %v2212_v42  ;;  %v1128_v42 = vld [vmem:[#allocation10 + $0x140] sm:$0xff] }
 0x112   : > { %2245 = vmatpush1.bf16.msra.mxu1 %v2244_v43  ;;  %2247 = vmatprep.subr.bf16.mxu0 %v2246_v44  ;;  %v1132_v43 = vld [vmem:[#allocation10 + $0x160] sm:$0xff]  ;;  %v1130_v44 = vld [vmem:[#allocation10 + $0x150] sm:$0xff] }
 0x113   : > { %2279 = vmatprep.subr.bf16.mxu1 %v2278_v48  ;;  %v1141_v48 = vld [vmem:[#allocation10 + $0x1a8] sm:$0xff]  ;;  %v2268_v51 = vpack.c.bf16 %v1132_v43, %v1128_v42  ;;  %v2300_v52 = vpack.c.bf16 %v1134_v46, %v1130_v44 }
 0x114   : > { %1282 = vmatmul.mubr.f32.vlgmr.msra.gmra.mrb[2].mxu0 %v1086_v54  ;;  %v2270_v53 = vpack.c.bf16 %v1141_v48, %v1137_v47  ;;  %v1216_v48 = vld [vmem:[%s3041_s7] sm:$0xf] }
 0x115   : > { %1353 = vmatmul.mubr.f32.vlgmr.msra.gmra.mrb[2].mxu1 %v1086_v54  ;;  %2249 = vmatpush1.bf16.msra.mxu0 %v2248_v55  ;;  %v1136_v54 = vld [vmem:[#allocation10 + $0x180] sm:$0xff] }
 0x116   : > { %2281 = vmatpush1.bf16.msra.mxu1 %v2280_v56  ;;  %2251 = vmatprep.subr.bf16.mxu0 %v2250_v57  ;;  %v1140_v55 = vld [vmem:[#allocation10 + $0x1a0] sm:$0xff]  ;;  %v1138_v56 = vld [vmem:[#allocation10 + $0x190] sm:$0xff]  ;;  %v2302_v57 = vpack.c.bf16 %v1143_v50, %v1139_v49  ;;  %v1505_v49 = vrot.slane %v1216_v48, %v1039_v13 }
 0x117   : > { %2283 = vmatprep.subr.bf16.mxu1 %v2282_v61  ;;  %1423 = vmatprep.mubr.f32.mxu0 %v2692_v8  ;;  %v1147_v61 = vld [vmem:[#allocation10 + $0x1d8] sm:$0xff]  ;;  %v2272_v63 = vpack.c.bf16 %v1140_v55, %v1136_v54  ;;  %v2304_v0 = vpack.c.bf16 %v1142_v58, %v1138_v56 }
 0x118   : > { %1494 = vmatprep.mubr.f32.mxu1 %v2692_v8  ;;  %v2292_v8 = vpack.c.bf16 %v1118_v23, %v1114_v21 }
 0x119   : > { %2253 = vmatpush1.bf16.msra.mxu0 %v2252_v3  ;;  %v1148_v3 = vld [vmem:[#allocation10 + $0x1e0] sm:$0xff] }
 0x11a   : > { %2285 = vmatpush1.bf16.msra.mxu1 %v2284_v4  ;;  %2255 = vmatprep.subr.bf16.mxu0 %v2254_v5  ;;  %v2306_v4 = vpack.c.bf16 %v1151_v62, %v1147_v61  ;;  %v1146_v5 = vld [vmem:[#allocation10 + $0x1d0] sm:$0xff]  ;;  %v2276_v7 = vpack.c.bf16 %v1148_v3, %v1144_v2 }
 0x11b   : > { %2287 = vmatprep.subr.bf16.mxu1 %v2286_v10  ;;  %v2308_v9 = vpack.c.bf16 %v1150_v6, %v1146_v5  ;;  %v1085_v10 = vld [vmem:[%s2976_s14] sm:$0x3]  ;;  %v1087_v6 = vld [vmem:[#allocation5] sm:$0x3]  ;;  %s3073_s14 = sld [smem:[#allocation23_spill]] (!%p1979_p11) }
 0x11d   : > { %2257 = vmatpush1.bf16.msra.mxu0 %v2256_v16  ;;  %v1040_v16 = vrot.slane %v751_v14, %v1039_v13 }
 0x11e   : > { %2289 = vmatpush1.bf16.msra.mxu1 %v2288_v17  ;;  %2259 = vmatprep.subr.bf16.mxu0 %v2258_v18  ;;  %v1044_v17 = vrot.slane %v751_v14, %v1043_v15 }
 0x11f   : > { %2291 = vmatprep.subr.bf16.mxu1 %v2290_v22 }
 0x121   : > { %2261 = vmatpush1.bf16.msra.mxu0 %v2260_v28  ;;  %v1047_v28 = vsub.s32 2, %v1038_v12 }
 0x122   : > { %2293 = vmatpush1.bf16.msra.mxu1 %v2292_v8  ;;  %2263 = vmatprep.subr.bf16.mxu0 %v2262_v29 }
 0x123   : > { %2295 = vmatprep.subr.bf16.mxu1 %v2294_v33  ;;  %v1048_v29 = vrot.slane %v751_v14, %v1047_v28  ;;  %v1513_v50 = vrot.slane %v1216_v48, %v1047_v28  ;;  %v1578_v28 = vld [vmem:[#allocation13 + $0x90] sm:$0xff] (!%p1979_p11) }
 0x125   : > { %2265 = vmatpush1.bf16.msra.mxu0 %v2264_v39 }
 0x126   : > { %2297 = vmatpush1.bf16.msra.mxu1 %v2296_v40  ;;  %2267 = vmatprep.subr.bf16.mxu0 %v2266_v41 }
 0x127   : > { %2299 = vmatprep.subr.bf16.mxu1 %v2298_v45 }
 0x129   : > { %2269 = vmatpush1.bf16.msra.mxu0 %v2268_v51  ;;  %v1509_v51 = vrot.slane %v1216_v48, %v1043_v15 }
 0x12a   : > { %2301 = vmatpush1.bf16.msra.mxu1 %v2300_v52  ;;  %2271 = vmatprep.subr.bf16.mxu0 %v2270_v53  ;;  %v1517_v52 = vrot.slane %v1216_v48, %v1051_v19  ;;  %v1686_v19 = vld [vmem:[#allocation14 + $0x80] sm:$0xff] (!%p1979_p11) }
 0x12b   : > { %2303 = vmatprep.subr.bf16.mxu1 %v2302_v57 }
 0x12d   : > { %2273 = vmatpush1.bf16.msra.mxu0 %v2272_v63 }
 0x12e   : > { %2305 = vmatpush1.bf16.msra.mxu1 %v2304_v0  ;;  %2275 = vmatprep.subr.bf16.mxu0 %v2274_v1 }
 0x12f   : > { %2307 = vmatprep.subr.bf16.mxu1 %v2306_v4 }
 0x131   : > { %2277 = vmatpush1.bf16.msra.mxu0 %v2276_v7 }
 0x132   : > { %2309 = vmatpush1.bf16.msra.mxu1 %v2308_v9 }
 0x134   : > { %1424 = vmatmul.mubr.f32.vlgmr.msra.gmra.mrb[2].mxu0 %v1085_v10 }
 0x135   : > { %1495 = vmatmul.mubr.f32.vlgmr.msra.gmra.mrb[2].mxu1 %v1085_v10 }
 0x1c7   : > { %v960_v18 = vpop.f32.mrb[0].mxu0 }
 0x1c8   : > { %v1057_v20 = vadd.f32 %v1040_v16, %v960_v18  ;;  %v1031_v21 = vpop.f32.mrb[0].mxu1  ;;  %v962_v22 = vpop.f32.mrb[1].mxu0  ;;  %v1577_v18 = vld [vmem:[#allocation13 + $0x88] sm:$0xff] (!%p1979_p11) }
 0x1c9   : > { %v1058_v23 = vadd.f32 %v1044_v17, %v962_v22  ;;  %v1033_v24 = vpop.f32.mrb[1].mxu1  ;;  %v1059_v31 = vadd.f32 %v1048_v29, %v1031_v21  ;;  %v1576_v17 = vld [vmem:[#allocation13 + $0x80] sm:$0xff] (!%p1979_p11)  ;;  %v1687_v21 = vld [vmem:[#allocation14 + $0x88] sm:$0xff] (!%p1979_p11)  ;;  %v1579_v29 = vld [vmem:[#allocation13 + $0x98] sm:$0xff] (!%p1979_p11) }
 0x1ca   : > { %v1973_v25 = vmul.f32 -1.442695, %v1057_v20  ;;  %v1060_v8 = vadd.f32 %v1052_v27, %v1033_v24  ;;  %v2310_v20 = vpack.c.bf16 (!%p1979_p11), %v1577_v18, %v1576_v17  ;;  %v1560_v22 = vld [vmem:[#allocation13] sm:$0xff] (!%p1979_p11)  ;;  %v2342_v24 = vpack.c.bf16 (!%p1979_p11), %v1687_v21, %v1686_v19  ;;  %v1671_v27 = vld [vmem:[#allocation14 + $0x8] sm:$0xff] (!%p1979_p11)  ;;  %v1571_v21 = vld [vmem:[#allocation13 + $0x58] sm:$0xff] (!%p1979_p11) }
 0x1cb   : > { %v1974_v26 = vmul.f32 -1.442695, %v1058_v23  ;;  %v1561_v23 = vld [vmem:[#allocation13 + $0x8] sm:$0xff] (!%p1979_p11) }
 0x1cc   : > { %2457 = vpow2.f32 %v1973_v25  ;;  %v1975_v30 = vmul.f32 -1.442695, %v1060_v8  ;;  %v2312_v25 = vpack.c.bf16 (!%p1979_p11), %v1561_v23, %v1560_v22  ;;  %2311 = vmatprep.subr.bf16.mxu0 (!%p1979_p11), %v2310_v20  ;;  %2343 = vmatprep.subr.bf16.mxu1 (!%p1979_p11), %v2342_v24  ;;  %v1570_v20 = vld [vmem:[#allocation13 + $0x50] sm:$0xff] (!%p1979_p11)  ;;  %v1681_v24 = vld [vmem:[#allocation14 + $0x58] sm:$0xff] (!%p1979_p11) }
 0x1cd   : > { %2459 = vpow2.f32 %v1974_v26  ;;  %v1670_v26 = vld [vmem:[#allocation14] sm:$0xff] (!%p1979_p11)  ;;  %v1680_v22 = vld [vmem:[#allocation14 + $0x50] sm:$0xff] (!%p1979_p11) }
 0x1ce   : > { %2461 = vpow2.f32 %v1975_v30  ;;  %v2344_v8 = vpack.c.bf16 (!%p1979_p11), %v1671_v27, %v1670_v26  ;;  %v1688_v30 = vld [vmem:[#allocation14 + $0x90] sm:$0xff] (!%p1979_p11)  ;;  %2313 = vmatpush3.bf16.msra.mxu0 (!%p1979_p11), %v2312_v25  ;;  %v1588_v25 = vld [vmem:[#allocation13 + $0xe0] sm:$0xff] (!%p1979_p11)  ;;  %v1589_v26 = vld [vmem:[#allocation13 + $0xe8] sm:$0xff] (!%p1979_p11) }
 0x1cf   : > { %2463 = vtanh.f32 %v1059_v31  ;;  %v1689_v31 = vld [vmem:[#allocation14 + $0x98] sm:$0xff] (!%p1979_p11)  ;;  %v1698_v27 = vld [vmem:[#allocation14 + $0xe0] sm:$0xff] (!%p1979_p11) }
 0x1d0   : > { %2345 = vmatpush3.bf16.msra.mxu1 (!%p1979_p11), %v2344_v8  ;;  %v2332_v8 = vpack.c.bf16 (!%p1979_p11), %v1571_v21, %v1570_v20 }
 0x1d6   : > { %v2458_v32 = vpop.eup %2457 }
 0x1d7   : > { %v2460_v33 = vpop.eup %2459  ;;  %v1064_v34 = vadd.f32 1.0, %v2458_v32  ;;  %v2314_v32 = vpack.c.bf16 (!%p1979_p11), %v1579_v29, %v1578_v28  ;;  %v1699_v28 = vld [vmem:[#allocation14 + $0xe8] sm:$0xff] (!%p1979_p11)  ;;  %v2364_v29 = vpack.c.bf16 (!%p1979_p11), %v1681_v24, %v1680_v22 }
 0x1d8   : > { %v1070_v35 = vadd.f32 1.0, %v2460_v33  ;;  %v2462_v36 = vpop.eup %2461  ;;  %v2346_v33 = vpack.c.bf16 (!%p1979_p11), %v1689_v31, %v1688_v30  ;;  %v2334_v30 = vpack.c.bf16 (!%p1979_p11), %v1589_v26, %v1588_v25  ;;  %v1572_v31 = vld [vmem:[#allocation13 + $0x60] sm:$0xff] (!%p1979_p11) }
 0x1d9   : > { %2465 = vrcp.f32 %v1064_v34  ;;  %v2464_v37 = vpop.eup %2463  ;;  %v1077_v42 = vadd.f32 1.0, %v2462_v36  ;;  %v1562_v34 = vld [vmem:[#allocation13 + $0x10] sm:$0xff] (!%p1979_p11)  ;;  %2315 = vmatprep.subr.bf16.mxu0 (!%p1979_p11), %v2314_v32  ;;  %v1573_v32 = vld [vmem:[#allocation13 + $0x68] sm:$0xff] (!%p1979_p11) }
 0x1da   : > { %2467 = vrcp.f32 %v1070_v35  ;;  %v1563_v35 = vld [vmem:[#allocation13 + $0x18] sm:$0xff] (!%p1979_p11)  ;;  %v1672_v36 = vld [vmem:[#allocation14 + $0x10] sm:$0xff] (!%p1979_p11)  ;;  %2347 = vmatprep.subr.bf16.mxu1 (!%p1979_p11), %v2346_v33  ;;  %v1682_v33 = vld [vmem:[#allocation14 + $0x60] sm:$0xff] (!%p1979_p11) }
 0x1db   : > { %2469 = vrcp.f32 %v1077_v42 }
 0x1e3   : > { %v2466_v39 = vpop.eup %2465 }
 0x1e4   : > { %v2468_v40 = vpop.eup %2467  ;;  %v1081_v41 = vmul.f32 %v2466_v39, %v2464_v37  ;;  %v2316_v37 = vpack.c.bf16 (!%p1979_p11), %v1563_v35, %v1562_v34  ;;  %v1580_v39 = vld [vmem:[#allocation13 + $0xa0] sm:$0xff] (!%p1979_p11)  ;;  %v2366_v34 = vpack.c.bf16 (!%p1979_p11), %v1699_v28, %v1698_v27  ;;  %v1683_v35 = vld [vmem:[#allocation14 + $0x68] sm:$0xff] (!%p1979_p11) }
 0x1e5   : > { %v1080_v43 = vmul.f32 %v2468_v40, %v622_v38  ;;  %v2470_v45 = vpop.eup %2469  ;;  %v1673_v38 = vld [vmem:[#allocation14 + $0x18] sm:$0xff] (!%p1979_p11)  ;;  %v1581_v40 = vld [vmem:[#allocation13 + $0xa8] sm:$0xff] (!%p1979_p11) }
 0x1e6   : > { %v2318_v42 = vpack.c.bf16 (!%p1979_p11), %v1581_v40, %v1580_v39  ;;  %2317 = vmatpush3.bf16.msra.mxu0 (!%p1979_p11), %v2316_v37  ;;  %v1591_v37 = vld [vmem:[#allocation13 + $0xf8] sm:$0xff] (!%p1979_p11)  ;;  %v2336_v40 = vpack.c.bf16 (!%p1979_p11), %v1573_v32, %v1572_v31 }
 0x1e7   : > { %v3003_v44 = vadd.f32 %v1081_v41, %v1080_v43  ;;  %v2348_v41 = vpack.c.bf16 (!%p1979_p11), %v1673_v38, %v1672_v36  ;;  %v1690_v43 = vld [vmem:[#allocation14 + $0xa0] sm:$0xff] (!%p1979_p11)  ;;  %v1590_v36 = vld [vmem:[#allocation13 + $0xf0] sm:$0xff] (!%p1979_p11)  ;;  %v1701_v39 = vld [vmem:[#allocation14 + $0xf8] sm:$0xff] (!%p1979_p11) }
 0x1e8   : > { %2319 = vmatprep.subr.bf16.mxu0 (!%p1979_p11), %v2318_v42  ;;  %v1700_v38 = vld [vmem:[#allocation14 + $0xf0] sm:$0xff] (!%p1979_p11)  ;;  %v2338_v42 = vpack.c.bf16 (!%p1979_p11), %v1591_v37, %v1590_v36 }
 0x1e9   : > { %2471 = vtanh.f32 %v3003_v44  ;;  %1551 = vst [vmem:[#allocation3] sm:$0x3] %v3003_v44  ;;  %2349 = vmatpush3.bf16.msra.mxu1 (!%p1979_p11), %v2348_v41  ;;  %v2368_v41 = vpack.c.bf16 (!%p1979_p11), %v1683_v35, %v1682_v33 }
 0x1f3   : > { %v2472_v46 = vpop.eup %2471 }
 0x1f4   : > { %v3007_v47 = vmul.f32 %v2472_v46, %v2470_v45  ;;  %v1691_v45 = vld [vmem:[#allocation14 + $0xa8] sm:$0xff] (!%p1979_p11)  ;;  %v1564_v46 = vld [vmem:[#allocation13 + $0x20] sm:$0xff] (!%p1979_p11) }
 0x1f5   : > { %v2350_v48 = vpack.c.bf16 (!%p1979_p11), %v1691_v45, %v1690_v43  ;;  %v1574_v43 = vld [vmem:[#allocation13 + $0x70] sm:$0xff] (!%p1979_p11)  ;;  %v1575_v45 = vld [vmem:[#allocation13 + $0x78] sm:$0xff] (!%p1979_p11) }
 0x1f6   : > { %1550 = vst [vmem:[#allocation2] sm:$0x3] %v3007_v47  ;;  %1554 = vst [vmem:[%s2981_s23] sm:$0x3] %v3007_v47  ;;  %s3074_s23 = sld [smem:[#allocation24_spill]] (!%p1979_p11) }
 0x1f7   : > { %2351 = vmatprep.subr.bf16.mxu1 (!%p1979_p11), %v2350_v48  ;;  %v1684_v48 = vld [vmem:[#allocation14 + $0x70] sm:$0xff] (!%p1979_p11) }
 0x207   : > { %v1425_v53 = vpop.f32.mrb[2].mxu0 }
 0x208   : > { %v1522_v54 = vadd.f32 %v1505_v49, %v1425_v53  ;;  %v1496_v55 = vpop.f32.mrb[2].mxu1  ;;  %v1427_v56 = vpop.f32.mrb[3].mxu0  ;;  %v1565_v49 = vld [vmem:[#allocation13 + $0x28] sm:$0xff] (!%p1979_p11)  ;;  %v1582_v53 = vld [vmem:[#allocation13 + $0xb0] sm:$0xff] (!%p1979_p11) }
 0x209   : > { %v1524_v57 = vadd.f32 %v1513_v50, %v1496_v55  ;;  %v1523_v58 = vadd.f32 %v1509_v51, %v1427_v56  ;;  %v1498_v59 = vpop.f32.mrb[3].mxu1  ;;  %v1674_v50 = vld [vmem:[#allocation14 + $0x20] sm:$0xff] (!%p1979_p11)  ;;  %v1675_v51 = vld [vmem:[#allocation14 + $0x28] sm:$0xff] (!%p1979_p11)  ;;  %v1692_v55 = vld [vmem:[#allocation14 + $0xb0] sm:$0xff] (!%p1979_p11) }
 0x20a   : > { %v1976_v60 = vmul.f32 -1.442695, %v1522_v54  ;;  %v1525_v61 = vadd.f32 %v1517_v52, %v1498_v59  ;;  %v2320_v52 = vpack.c.bf16 (!%p1979_p11), %v1565_v49, %v1564_v46  ;;  %v1583_v54 = vld [vmem:[#allocation13 + $0xb8] sm:$0xff] (!%p1979_p11)  ;;  %v2352_v56 = vpack.c.bf16 (!%p1979_p11), %v1675_v51, %v1674_v50  ;;  %v1566_v59 = vld [vmem:[#allocation13 + $0x30] sm:$0xff] (!%p1979_p11) }
 0x20b   : > { %v1977_v62 = vmul.f32 -1.442695, %v1523_v58  ;;  %v1693_v58 = vld [vmem:[#allocation14 + $0xb8] sm:$0xff] (!%p1979_p11)  ;;  %v2370_v46 = vpack.c.bf16 (!%p1979_p11), %v1701_v39, %v1700_v38  ;;  %v2340_v50 = vpack.c.bf16 (!%p1979_p11), %v1575_v45, %v1574_v43 }
 0x20c   : > { %2473 = vpow2.f32 %v1976_v60  ;;  %v1978_v63 = vmul.f32 -1.442695, %v1525_v61  ;;  %v1567_v60 = vld [vmem:[#allocation13 + $0x38] sm:$0xff] (!%p1979_p11)  ;;  %v2354_v61 = vpack.c.bf16 (!%p1979_p11), %v1693_v58, %v1692_v55  ;;  %2321 = vmatpush3.bf16.msra.mxu0 (!%p1979_p11), %v2320_v52  ;;  %2353 = vmatpush3.bf16.msra.mxu1 (!%p1979_p11), %v2352_v56 }
 0x20d   : > { %2475 = vpow2.f32 %v1977_v62  ;;  %v1676_v62 = vld [vmem:[#allocation14 + $0x30] sm:$0xff] (!%p1979_p11)  ;;  %v1685_v49 = vld [vmem:[#allocation14 + $0x78] sm:$0xff] (!%p1979_p11) }
 0x20e   : > { %2477 = vpow2.f32 %v1978_v63  ;;  %v1677_v63 = vld [vmem:[#allocation14 + $0x38] sm:$0xff] (!%p1979_p11)  ;;  %2355 = vmatprep.subr.bf16.mxu1 (!%p1979_p11), %v2354_v61  ;;  %v2372_v51 = vpack.c.bf16 (!%p1979_p11), %v1685_v49, %v1684_v48 }
 0x20f   : > { %2479 = vtanh.f32 %v1524_v57  ;;  %v2322_v57 = vpack.c.bf16 (!%p1979_p11), %v1583_v54, %v1582_v53  ;;  %v1980_v54 = vld [vmem:[%s3071_s16] ss:$0 sm:$0xff] (!%p1979_p11) }
 0x211   : > { %2323 = vmatprep.subr.bf16.mxu0 (!%p1979_p11), %v2322_v57  ;;  %v1981_v57 = vld [vmem:[%s3072_s24] ss:$0 sm:$0xff] (!%p1979_p11) }
 0x216   : > { %v2474_v0 = vpop.eup %2473 }
 0x217   : > { %v2476_v1 = vpop.eup %2475  ;;  %v1529_v2 = vadd.f32 1.0, %v2474_v0  ;;  %v1584_v0 = vld [vmem:[#allocation13 + $0xc0] sm:$0xff] (!%p1979_p11) }
 0x218   : > { %v1535_v3 = vadd.f32 1.0, %v2476_v1  ;;  %v2478_v4 = vpop.eup %2477  ;;  %v1585_v1 = vld [vmem:[#allocation13 + $0xc8] sm:$0xff] (!%p1979_p11) }
 0x219   : > { %2481 = vrcp.f32 %v1529_v2  ;;  %v2480_v5 = vpop.eup %2479  ;;  %v1542_v11 = vadd.f32 1.0, %v2478_v4  ;;  %v1694_v2 = vld [vmem:[#allocation14 + $0xc0] sm:$0xff] (!%p1979_p11)  ;;  %v2324_v4 = vpack.c.bf16 (!%p1979_p11), %v1567_v60, %v1566_v59 }
 0x21a   : > { %2483 = vrcp.f32 %v1535_v3  ;;  %v1695_v3 = vld [vmem:[#allocation14 + $0xc8] sm:$0xff] (!%p1979_p11) }
 0x21b   : > { %2485 = vrcp.f32 %v1542_v11  ;;  %v2358_v11 = vpack.c.bf16 (!%p1979_p11), %v1695_v3, %v1694_v2  ;;  %2325 = vmatpush3.bf16.msra.mxu0 (!%p1979_p11), %v2324_v4 }
 0x223   : > { %v2482_v7 = vpop.eup %2481 }
 0x224   : > { %v2484_v9 = vpop.eup %2483  ;;  %v1546_v10 = vmul.f32 %v2482_v7, %v2480_v5  ;;  %v2356_v5 = vpack.c.bf16 (!%p1979_p11), %v1677_v63, %v1676_v62  ;;  %v1568_v7 = vld [vmem:[#allocation13 + $0x40] sm:$0xff] (!%p1979_p11) }
 0x225   : > { %v1545_v12 = vmul.f32 %v2484_v9, %v1087_v6  ;;  %v2486_v14 = vpop.eup %2485  ;;  %v2326_v6 = vpack.c.bf16 (!%p1979_p11), %v1585_v1, %v1584_v0  ;;  %v1569_v9 = vld [vmem:[#allocation13 + $0x48] sm:$0xff] (!%p1979_p11) }
 0x226   : > { %v2328_v17 = vpack.c.bf16 (!%p1979_p11), %v1569_v9, %v1568_v7  ;;  %2357 = vmatpush3.bf16.msra.mxu1 (!%p1979_p11), %v2356_v5 }
 0x227   : > { %v1547_v13 = vadd.f32 %v1546_v10, %v1545_v12  ;;  %v1678_v10 = vld [vmem:[#allocation14 + $0x40] sm:$0xff] (!%p1979_p11)  ;;  %v1679_v12 = vld [vmem:[#allocation14 + $0x48] sm:$0xff] (!%p1979_p11)  ;;  %2327 = vmatprep.subr.bf16.mxu0 (!%p1979_p11), %v2326_v6  ;;  %2359 = vmatprep.subr.bf16.mxu1 (!%p1979_p11), %v2358_v11 }
 0x228   : > { %v2360_v18 = vpack.c.bf16 (!%p1979_p11), %v1679_v12, %v1678_v10  ;;  %2329 = vmatpush3.bf16.msra.mxu0 (!%p1979_p11), %v2328_v17 }
 0x229   : > { %2487 = vtanh.f32 %v1547_v13  ;;  %1553 = vst [vmem:[#allocation5] sm:$0x3] %v1547_v13  ;;  %1773 = vmatprep.mubr.f32.mxu1 (!%p1979_p11), %v1547_v13  ;;  %v1586_v13 = vld [vmem:[#allocation13 + $0xd0] sm:$0xff] (!%p1979_p11) }
 0x22a   : > { %2361 = vmatpush3.bf16.msra.mxu1 (!%p1979_p11), %v2360_v18 }
 0x230   : > { %1559 = sbr.rel (%p1979_p11) target bundleno = 799 (0x31f), region = 100 }
 0x233   : > { %v2488_v15 = vpop.eup %2487 }
 0x234   : > { %v1549_v16 = vmul.f32 %v2488_v15, %v2486_v14  ;;  %v1587_v14 = vld [vmem:[#allocation13 + $0xd8] sm:$0xff] (!%p1979_p11)  ;;  %v1696_v15 = vld [vmem:[#allocation14 + $0xd0] sm:$0xff] (!%p1979_p11) }
 0x235   : > { %v2330_v19 = vpack.c.bf16 (!%p1979_p11), %v1587_v14, %v1586_v13 }
 0x236   : > { %1552 = vst [vmem:[#allocation4] sm:$0x3] %v1549_v16  ;;  %1555 = vst [vmem:[%s2986_s9] sm:$0x3] %v1549_v16  ;;  %1663 = vmatprep.mubr.f32.mxu0 (!%p1979_p11), %v1549_v16  ;;  %v1697_v16 = vld [vmem:[#allocation14 + $0xd8] sm:$0xff] (!%p1979_p11) }
 0x237   : > { %v2362_v23 = vpack.c.bf16 %v1697_v16, %v1696_v15  ;;  %2331 = vmatprep.subr.bf16.mxu0 %v2330_v19 }
 0x238   : > { %2333 = vmatpush3.bf16.msra.mxu0 %v2332_v8 }
 0x239   : > { %2363 = vmatprep.subr.bf16.mxu1 %v2362_v23  ;;  %2335 = vmatprep.subr.bf16.mxu0 %v2334_v30 }
 0x23a   : > { %2365 = vmatpush3.bf16.msra.mxu1 %v2364_v29 }
 0x23b   : > { %2367 = vmatprep.subr.bf16.mxu1 %v2366_v34 }
 0x23c   : > { %2337 = vmatpush3.bf16.msra.mxu0 %v2336_v40 }
 0x23d   : > { %2339 = vmatprep.subr.bf16.mxu0 %v2338_v42 }
 0x23e   : > { %2369 = vmatpush3.bf16.msra.mxu1 %v2368_v41 }
 0x23f   : > { %2371 = vmatprep.subr.bf16.mxu1 %v2370_v46 }
 0x240   : > { %2341 = vmatpush3.bf16.msra.mxu0 %v2340_v50 }
 0x242   : > { %2373 = vmatpush3.bf16.msra.mxu1 %v2372_v51 }
 0x243   : > { %1664 = vmatmul.mubr.f32.vlgmr.msra.gmra.mrb[0].mxu0 %v3007_v47 }
 0x245   : > { %1774 = vmatmul.mubr.f32.vlgmr.msra.gmra.mrb[0].mxu1 %v3003_v44 }
 0x316   : > { %v2016_v52 = vpop.f32.mrb[0].mxu0 }
 0x317   : > { %v2017_v55 = vpop.f32.mrb[1].mxu0 }
 0x318   : > { %v2051_v53 = vpop.f32.mrb[0].mxu1  ;;  %v2018_v56 = vadd.f32 %v2017_v55, %v2016_v52 }
 0x319   : > { %v2052_v58 = vpop.f32.mrb[1].mxu1 }
 0x31a   : > { %v2053_v59 = vadd.f32 %v2052_v58, %v2051_v53  ;;  %v1666_v60 = vadd.f32 %v2018_v56, %v1980_v54 }
 0x31c   : > { %v1776_v61 = vadd.f32 %v2053_v59, %v1981_v57  ;;  %1669 = vst [vmem:[%s3073_s14] sm:$0x3] %v1666_v60 }
 0x31e   : > { %1779 = vst [vmem:[%s3074_s23] sm:$0x3] %v1776_v61 }
 0x31f PF: > { %s3075_s26 = sld [smem:[#allocation20_spill]] }
 0x325   : > { %s30_s18 = sadd.s32 1, %s3075_s26  }
 0x326   : > { %p27_p12 = scmp.ge.s32.totalorder %s30_s18, 9  }
 0x328   :  { %29 = sbr.rel (!%p27_p12) target bundleno = 9 (0x9), region = 162 }
 0x32f   :  { %1828 = vsyncpa [#allocation7], 1 }
 0x330   :  { %1830 = vsyncpa [#allocation7 + $0x1], 1 }
 0x331   :  { %1831 = vsyncpa [#allocation9], 1 }
 0x332   :  { %1832 = vsyncpa [#allocation12], 1 }
 0x333   :  { %1833 = vsyncpa [#allocation15], 1 }

</bundles_post_ra>
